<compile_context>
chip_gen: v7x
topology: tpu7x:2x2x1
jax: 0.10.0
libtpu: 0.0.40
codegen_flags: <defaults>
</compile_context>

<pallas_src>
import functools

import jax
import jax.numpy as jnp
from jax import lax
from jax.experimental import pallas as pl
from jax.experimental.pallas import tpu as pltpu


def _round_up(x, m):
    return (x + m - 1) // m * m


def _pick_tile(n, candidates=(512, 256, 128)):
    for c in candidates:
        if n % c == 0:
            return c
    return n


def _make_lstm_kernel(L, T, Bp, Hp):
    """Multi-layer LSTM recurrence, single invocation, fori_loop over time."""

    def kernel(*refs):
        emb_ref = refs[0]                 # (T*Bp, E)      bf16, time-major flattened
        h0_ref = refs[1]                  # (L, Bp, Hp)    f32
        c0_ref = refs[2]                  # (L, Bp, Hp)    f32
        idx = 3
        layer_refs = []
        for _ in range(L):
            layer_refs.append((refs[idx], refs[idx + 1], refs[idx + 2]))
            idx += 3
        out_ref = refs[idx]               # (T*Bp, Hp)     f32, last-layer h per step
        gates_s = refs[idx + 1]           # VMEM (T*Bp, 4*Hp) f32 scratch

        for l in range(L):                # static layer loop (layer-outer)
            w_ih_ref, w_hh_ref, b_ref = layer_refs[l]

            # Hoisted input projection for the whole sequence: one big MXU matmul.
            # For l>0 the previous layer's hidden sequence lives in out_ref; it is fully
            # consumed here (as a value) before the time loop below overwrites it.
            if l == 0:
                x = emb_ref[...]                                  # bf16
            else:
                x = out_ref[...].astype(jnp.bfloat16)             # one VPU cast pass
            gates_s[...] = (
                jnp.dot(x, w_ih_ref[...], preferred_element_type=jnp.float32)
                + b_ref[...]
            )

            w_hh = w_hh_ref[...]          # (Hp, 4*Hp) bf16, hoisted load

            def step(t, carry, w_hh=w_hh):
                h, c = carry              # (Bp, Hp) f32
                row = pl.multiple_of(t * Bp, Bp)          # Bp % 8 == 0 -> aligned
                gates = gates_s[pl.ds(row, Bp), :] + jnp.dot(
                    h.astype(jnp.bfloat16), w_hh,
                    preferred_element_type=jnp.float32)   # (Bp, 4*Hp) f32
                # Lane-aligned free slices (Hp is a multiple of 128).
                i_g = jax.nn.sigmoid(gates[:, 0 * Hp:1 * Hp])
                f_g = jax.nn.sigmoid(gates[:, 1 * Hp:2 * Hp])
                g_g = jnp.tanh(gates[:, 2 * Hp:3 * Hp])
                o_g = jax.nn.sigmoid(gates[:, 3 * Hp:4 * Hp])
                c_new = f_g * c + i_g * g_g               # f32 cell update
                h_new = o_g * jnp.tanh(c_new)
                out_ref[pl.ds(row, Bp), :] = h_new        # aligned f32 (8,128) store
                return (h_new, c_new)

            lax.fori_loop(0, T, step, (h0_ref[l], c0_ref[l]),
                          unroll=(T <= 16))

    return kernel


def _fc_kernel(h_ref, w_ref, b_ref, o_ref):
    """Batched fc_out tile: (tm, Hp) @ (Hp, tv) + bias."""
    o_ref[...] = (
        jnp.dot(h_ref[...], w_ref[...], preferred_element_type=jnp.float32)
        + b_ref[...]
    )


@functools.partial(jax.jit, static_argnames=("num_layers",))
def rnn_decoder_forward(tokens, hidden, cell, params, *, num_layers):
    """Equivalent of RNNDecoder.forward(input, hidden, cell) -> prediction."""
    L = num_layers
    emb_table = params["embedding"]                 # (V, E) f32
    B, T = tokens.shape
    V, E = emb_table.shape
    H = hidden.shape[-1]
    Bp = _round_up(B, 8)                            # sublane-aligned batch
    Hp = _round_up(H, 128)                          # lane-aligned hidden / gates

    # ---- glue: embedding gather straight into time-major layout --------------
    emb_bf16 = emb_table.astype(jnp.bfloat16)
    emb_t = jnp.take(emb_bf16, tokens.T, axis=0)    # (T, B, E), no extra transpose pass
    if Bp > B:
        emb_t = jnp.pad(emb_t, ((0, 0), (0, Bp - B), (0, 0)))
    emb_flat = emb_t.reshape(T * Bp, E)

    h0 = jnp.zeros((L, Bp, Hp), jnp.float32).at[:, :B, :H].set(hidden)
    c0 = jnp.zeros((L, Bp, Hp), jnp.float32).at[:, :B, :H].set(cell)

    # ---- pack weights: gate-blocked, zero-padded to Hp, bf16 for the MXU ------
    # TODO(synk): in production pre-pack these once instead of per forward call.
    def pack_w(w, in_dim_p):
        in_dim = w.shape[0]
        out = jnp.zeros((in_dim_p, 4 * Hp), jnp.float32)
        for k in range(4):
            out = out.at[:in_dim, k * Hp:k * Hp + H].set(w[:, k * H:(k + 1) * H])
        return out.astype(jnp.bfloat16)

    def pack_b(b):
        out = jnp.zeros((1, 4 * Hp), jnp.float32)
        for k in range(4):
            out = out.at[:, k * Hp:k * Hp + H].set(b[:, k * H:(k + 1) * H])
        return out

    layer_arrays = []
    for l in range(L):
        in_dim_p = E if l == 0 else Hp
        layer_arrays += [
            pack_w(params[f"w_ih_{l}"], in_dim_p),   # (in_dim_p, 4*Hp) bf16
            pack_w(params[f"w_hh_{l}"], Hp),         # (Hp, 4*Hp)       bf16
            pack_b(params[f"b_{l}"]),                # (1, 4*Hp)        f32
        ]
    w_fc = (jnp.zeros((Hp, V), jnp.float32)
            .at[:H].set(params["w_fc"]).astype(jnp.bfloat16))
    b_fc = params["b_fc"].astype(jnp.float32)        # (1, V)

    # ---- kernel 1: LSTM recurrence (single invocation) ------------------------
    in_arrays = [emb_flat, h0, c0] + layer_arrays
    in_specs = [
        pl.BlockSpec((T * Bp, E), lambda i: (0, 0)),
        pl.BlockSpec((L, Bp, Hp), lambda i: (0, 0, 0)),
        pl.BlockSpec((L, Bp, Hp), lambda i: (0, 0, 0)),
    ] + [pl.BlockSpec(arr.shape, lambda i: (0, 0)) for arr in layer_arrays]

    h_seq = pl.pallas_call(
        _make_lstm_kernel(L, T, Bp, Hp),
        out_shape=jax.ShapeDtypeStruct((T * Bp, Hp), jnp.float32),
        grid=(1,),
        in_specs=in_specs,
        out_specs=pl.BlockSpec((T * Bp, Hp), lambda i: (0, 0)),
        scratch_shapes=[pltpu.VMEM((T * Bp, 4 * Hp), jnp.float32)],
        compiler_params=pltpu.CompilerParams(
            dimension_semantics=("arbitrary",)),
    )(*in_arrays)

    # ---- glue: batch-major hidden (small T*B*Hp tensor) -----------------------
    h_bt = jnp.transpose(h_seq.reshape(T, Bp, Hp)[:, :B, :], (1, 0, 2))
    h_bt = h_bt.reshape(B * T, Hp).astype(jnp.bfloat16)   # (B*T, Hp) bf16

    # ---- kernel 2: fc_out as one batched, tiled matmul ------------------------
    M = B * T
    tm = _pick_tile(M)
    tv = _pick_tile(V)
    logits = pl.pallas_call(
        _fc_kernel,
        out_shape=jax.ShapeDtypeStruct((M, V), jnp.float32),
        grid=(M // tm, V // tv),
        in_specs=[
            pl.BlockSpec((tm, Hp), lambda i, j: (i, 0)),
            pl.BlockSpec((Hp, tv), lambda i, j: (0, j)),
            pl.BlockSpec((1, tv), lambda i, j: (0, j)),
        ],
        out_specs=pl.BlockSpec((tm, tv), lambda i, j: (i, j)),
        compiler_params=pltpu.CompilerParams(
            dimension_semantics=("parallel", "parallel")),
    )(h_bt, w_fc, b_fc)

    return logits.reshape(B, T, V)                   # batch-major, no big transpose


def _reference_forward(tokens, hidden, cell, params, num_layers):
    """Pure-JAX f32 reference matching PyTorch LSTM semantics."""
    L = num_layers
    H = hidden.shape[-1]
    emb = jnp.take(params["embedding"], tokens, axis=0)  # (B, T, E)
    x = emb
    for l in range(L):
        w_ih = params[f"w_ih_{l}"]
        w_hh = params[f"w_hh_{l}"]
        b = params[f"b_{l}"][0]

        def step(carry, xt, w_ih=w_ih, w_hh=w_hh, b=b):
            h, c = carry
            gates = xt @ w_ih + h @ w_hh + b
            i = jax.nn.sigmoid(gates[:, 0:H])
            f = jax.nn.sigmoid(gates[:, H:2 * H])
            g = jnp.tanh(gates[:, 2 * H:3 * H])
            o = jax.nn.sigmoid(gates[:, 3 * H:4 * H])
            c_new = f * c + i * g
            h_new = o * jnp.tanh(c_new)
            return (h_new, c_new), h_new

        xs = jnp.transpose(x, (1, 0, 2))                 # (T, B, *)
        (_, _), ys = jax.lax.scan(step, (hidden[l], cell[l]), xs)
        x = jnp.transpose(ys, (1, 0, 2))                 # (B, T, H)
    return x @ params["w_fc"] + params["b_fc"][0]


if __name__ == "__main__":
    # Small shapes consistent with the module's forward.
    B, T = 2, 8           # batch, sequence length
    V = 64                # vocab_size
    E = 32                # embeded_size == input_size
    H = 32                # hidden_size
    L = 2                 # num_layers

    key = jax.random.PRNGKey(0)
    keys = jax.random.split(key, 4 + 3 * L)

    params = {
        "embedding": 0.1 * jax.random.normal(keys[0], (V, E), jnp.float32),
        "w_fc": 0.1 * jax.random.normal(keys[1], (H, V), jnp.float32),
        "b_fc": 0.1 * jax.random.normal(keys[2], (1, V), jnp.float32),
    }
    for l in range(L):
        in_dim = E if l == 0 else H
        params[f"w_ih_{l}"] = 0.1 * jax.random.normal(keys[3 + 3 * l], (in_dim, 4 * H), jnp.float32)
        params[f"w_hh_{l}"] = 0.1 * jax.random.normal(keys[4 + 3 * l], (H, 4 * H), jnp.float32)
        params[f"b_{l}"] = 0.1 * jax.random.normal(keys[5 + 3 * l], (1, 4 * H), jnp.float32)

    tok_key, h_key, c_key = jax.random.split(keys[-1], 3)
    tokens = jax.random.randint(tok_key, (B, T), 0, V, dtype=jnp.int32)
    hidden = 0.1 * jax.random.normal(h_key, (L, B, H), jnp.float32)
    cell = 0.1 * jax.random.normal(c_key, (L, B, H), jnp.float32)

    pred = rnn_decoder_forward(tokens, hidden, cell, params, num_layers=L)
    pred = jax.block_until_ready(pred)

    ref = _reference_forward(tokens, hidden, cell, params, L)
    assert pred.shape == (B, T, V), pred.shape
    # bf16 MXU inputs vs f32 reference -> loose tolerance.
    max_err = float(jnp.max(jnp.abs(pred - ref)))
    assert jnp.allclose(pred, ref, atol=2e-2, rtol=2e-2), max_err

    print("KERNEL_OK")
</pallas_src>

<mosaic_0001>
module attributes {stable_mosaic.version = 11 : i64} {
  func.func @kernel(%arg0: i32, %arg1: memref<64x32xbf16, #tpu.memory_space<vmem>>, %arg2: memref<2x8x128xf32, #tpu.memory_space<vmem>>, %arg3: memref<2x8x128xf32, #tpu.memory_space<vmem>>, %arg4: memref<32x512xbf16, #tpu.memory_space<vmem>>, %arg5: memref<128x512xbf16, #tpu.memory_space<vmem>>, %arg6: memref<1x512xf32, #tpu.memory_space<vmem>>, %arg7: memref<128x512xbf16, #tpu.memory_space<vmem>>, %arg8: memref<128x512xbf16, #tpu.memory_space<vmem>>, %arg9: memref<1x512xf32, #tpu.memory_space<vmem>>, %arg10: memref<64x128xf32, #tpu.memory_space<vmem>>, %arg11: memref<64x512xf32, #tpu.memory_space<vmem>>) attributes {dimension_semantics = [#tpu.dimension_semantics<arbitrary>], iteration_bounds = array<i64: 1>, scalar_prefetch = 0 : i64, scratch_operands = 1 : i64, tpu.core_type = #tpu.core_type<tc>, window_params = [{pipeline_mode = #tpu.pipeline_mode<synchronous>, transform_indices = @transform_0, window_bounds = array<i64: 64, 32>}, {pipeline_mode = #tpu.pipeline_mode<synchronous>, transform_indices = @transform_1, window_bounds = array<i64: 2, 8, 128>}, {pipeline_mode = #tpu.pipeline_mode<synchronous>, transform_indices = @transform_2, window_bounds = array<i64: 2, 8, 128>}, {pipeline_mode = #tpu.pipeline_mode<synchronous>, transform_indices = @transform_3, window_bounds = array<i64: 32, 512>}, {pipeline_mode = #tpu.pipeline_mode<synchronous>, transform_indices = @transform_4, window_bounds = array<i64: 128, 512>}, {pipeline_mode = #tpu.pipeline_mode<synchronous>, transform_indices = @transform_5, window_bounds = array<i64: 1, 512>}, {pipeline_mode = #tpu.pipeline_mode<synchronous>, transform_indices = @transform_6, window_bounds = array<i64: 128, 512>}, {pipeline_mode = #tpu.pipeline_mode<synchronous>, transform_indices = @transform_7, window_bounds = array<i64: 128, 512>}, {pipeline_mode = #tpu.pipeline_mode<synchronous>, transform_indices = @transform_8, window_bounds = array<i64: 1, 512>}, {pipeline_mode = #tpu.pipeline_mode<synchronous>, transform_indices = @transform_9, window_bounds = array<i64: 64, 128>}]} {
    %c0 = arith.constant 0 : index
    %c0_0 = arith.constant 0 : index
    %0 = vector.load %arg1[%c0, %c0_0] : memref<64x32xbf16, #tpu.memory_space<vmem>>, vector<64x32xbf16>
    %c0_1 = arith.constant 0 : index
    %c0_2 = arith.constant 0 : index
    %1 = vector.load %arg4[%c0_1, %c0_2] : memref<32x512xbf16, #tpu.memory_space<vmem>>, vector<32x512xbf16>
    %cst = arith.constant dense<0.000000e+00> : vector<64x512xf32>
    %2 = tpu.matmul %0, %1, %cst {dimension_numbers = #tpu.dot_dimension_numbers<[1], [0], [0], [1], [0, 0, 1, 1], [], []>} : vector<64x32xbf16>, vector<32x512xbf16>, vector<64x512xf32> -> vector<64x512xf32>
    %c0_3 = arith.constant 0 : index
    %c0_4 = arith.constant 0 : index
    %3 = vector.load %arg6[%c0_3, %c0_4] : memref<1x512xf32, #tpu.memory_space<vmem>>, vector<1x512xf32>
    %4 = vector.broadcast %3 : vector<1x512xf32> to vector<64x512xf32>
    %5 = arith.addf %2, %4 : vector<64x512xf32>
    %c0_5 = arith.constant 0 : index
    %c0_6 = arith.constant 0 : index
    %6 = vector.load %arg11[%c0_5, %c0_6] : memref<64x512xf32, #tpu.memory_space<vmem>>, vector<64x512xf32>
    tpu.vector_store %arg11[%c0_5, %c0_6], %5 {strides = array<i32>} : memref<64x512xf32, #tpu.memory_space<vmem>>, vector<64x512xf32>,
    %c0_7 = arith.constant 0 : index
    %c0_8 = arith.constant 0 : index
    %7 = vector.load %arg5[%c0_7, %c0_8] : memref<128x512xbf16, #tpu.memory_space<vmem>>, vector<128x512xbf16>
    %c0_9 = arith.constant 0 : index
    %c0_10 = arith.constant 0 : index
    %c0_11 = arith.constant 0 : index
    %8 = vector.load %arg2[%c0_9, %c0_10, %c0_11] : memref<2x8x128xf32, #tpu.memory_space<vmem>>, vector<1x8x128xf32>
    %9 = vector.shape_cast %8 : vector<1x8x128xf32> to vector<8x128xf32>
    %c0_12 = arith.constant 0 : index
    %c0_13 = arith.constant 0 : index
    %c0_14 = arith.constant 0 : index
    %10 = vector.load %arg3[%c0_12, %c0_13, %c0_14] : memref<2x8x128xf32, #tpu.memory_space<vmem>>, vector<1x8x128xf32>
    %11 = vector.shape_cast %10 : vector<1x8x128xf32> to vector<8x128xf32>
    %c0_i32 = arith.constant 0 : i32
    %c8_i32 = arith.constant 8 : i32
    %12 = arith.muli %c0_i32, %c8_i32 : i32
    %13 = tpu.assume_multiple %12, 8 : i32
    %14 = arith.index_cast %13 : i32 to index
    %c0_15 = arith.constant 0 : index
    %15 = vector.load %arg11[%14, %c0_15] : memref<64x512xf32, #tpu.memory_space<vmem>>, vector<8x512xf32>
    %16 = arith.truncf %9 : vector<8x128xf32> to vector<8x128xbf16>
    %cst_16 = arith.constant dense<0.000000e+00> : vector<8x512xf32>
    %17 = tpu.matmul %16, %7, %cst_16 {dimension_numbers = #tpu.dot_dimension_numbers<[1], [0], [0], [1], [0, 0, 1, 1], [], []>} : vector<8x128xbf16>, vector<128x512xbf16>, vector<8x512xf32> -> vector<8x512xf32>
    %18 = arith.addf %15, %17 : vector<8x512xf32>
    %19 = vector.extract_strided_slice %18 {offsets = [0, 0], sizes = [8, 128], strides = [1, 1]} : vector<8x512xf32> to vector<8x128xf32>
    %20 = arith.negf %19 : vector<8x128xf32>
    %21 = math.exp %20 : vector<8x128xf32>
    %cst_17 = arith.constant 1.000000e+00 : f32
    %22 = vector.broadcast %cst_17 : f32 to vector<8x128xf32>
    %23 = arith.addf %22, %21 : vector<8x128xf32>
    %24 = arith.divf %22, %23 : vector<8x128xf32>
    %25 = vector.extract_strided_slice %18 {offsets = [0, 128], sizes = [8, 128], strides = [1, 1]} : vector<8x512xf32> to vector<8x128xf32>
    %26 = arith.negf %25 : vector<8x128xf32>
    %27 = math.exp %26 : vector<8x128xf32>
    %cst_18 = arith.constant 1.000000e+00 : f32
    %28 = vector.broadcast %cst_18 : f32 to vector<8x128xf32>
    %29 = arith.addf %28, %27 : vector<8x128xf32>
    %30 = arith.divf %28, %29 : vector<8x128xf32>
    %31 = vector.extract_strided_slice %18 {offsets = [0, 256], sizes = [8, 128], strides = [1, 1]} : vector<8x512xf32> to vector<8x128xf32>
    %32 = math.tanh %31 : vector<8x128xf32>
    %33 = vector.extract_strided_slice %18 {offsets = [0, 384], sizes = [8, 128], strides = [1, 1]} : vector<8x512xf32> to vector<8x128xf32>
    %34 = arith.negf %33 : vector<8x128xf32>
    %35 = math.exp %34 : vector<8x128xf32>
    %cst_19 = arith.constant 1.000000e+00 : f32
    %36 = vector.broadcast %cst_19 : f32 to vector<8x128xf32>
    %37 = arith.addf %36, %35 : vector<8x128xf32>
    %38 = arith.divf %36, %37 : vector<8x128xf32>
    %39 = arith.mulf %30, %11 : vector<8x128xf32>
    %40 = arith.mulf %24, %32 : vector<8x128xf32>
    %41 = arith.addf %39, %40 : vector<8x128xf32>
    %42 = math.tanh %41 : vector<8x128xf32>
    %43 = arith.mulf %38, %42 : vector<8x128xf32>
    %44 = arith.index_cast %13 : i32 to index
    %c0_20 = arith.constant 0 : index
    %45 = vector.load %arg10[%44, %c0_20] : memref<64x128xf32, #tpu.memory_space<vmem>>, vector<8x128xf32>
    tpu.vector_store %arg10[%44, %c0_20], %43 {strides = array<i32>} : memref<64x128xf32, #tpu.memory_space<vmem>>, vector<8x128xf32>,
    %c1_i32 = arith.constant 1 : i32
    %c8_i32_21 = arith.constant 8 : i32
    %46 = arith.muli %c1_i32, %c8_i32_21 : i32
    %47 = tpu.assume_multiple %46, 8 : i32
    %48 = arith.index_cast %47 : i32 to index
    %c0_22 = arith.constant 0 : index
    %49 = vector.load %arg11[%48, %c0_22] : memref<64x512xf32, #tpu.memory_space<vmem>>, vector<8x512xf32>
    %50 = arith.truncf %43 : vector<8x128xf32> to vector<8x128xbf16>
    %cst_23 = arith.constant dense<0.000000e+00> : vector<8x512xf32>
    %51 = tpu.matmul %50, %7, %cst_23 {dimension_numbers = #tpu.dot_dimension_numbers<[1], [0], [0], [1], [0, 0, 1, 1], [], []>} : vector<8x128xbf16>, vector<128x512xbf16>, vector<8x512xf32> -> vector<8x512xf32>
    %52 = arith.addf %49, %51 : vector<8x512xf32>
    %53 = vector.extract_strided_slice %52 {offsets = [0, 0], sizes = [8, 128], strides = [1, 1]} : vector<8x512xf32> to vector<8x128xf32>
    %54 = arith.negf %53 : vector<8x128xf32>
    %55 = math.exp %54 : vector<8x128xf32>
    %cst_24 = arith.constant 1.000000e+00 : f32
    %56 = vector.broadcast %cst_24 : f32 to vector<8x128xf32>
    %57 = arith.addf %56, %55 : vector<8x128xf32>
    %58 = arith.divf %56, %57 : vector<8x128xf32>
    %59 = vector.extract_strided_slice %52 {offsets = [0, 128], sizes = [8, 128], strides = [1, 1]} : vector<8x512xf32> to vector<8x128xf32>
    %60 = arith.negf %59 : vector<8x128xf32>
    %61 = math.exp %60 : vector<8x128xf32>
    %cst_25 = arith.constant 1.000000e+00 : f32
    %62 = vector.broadcast %cst_25 : f32 to vector<8x128xf32>
    %63 = arith.addf %62, %61 : vector<8x128xf32>
    %64 = arith.divf %62, %63 : vector<8x128xf32>
    %65 = vector.extract_strided_slice %52 {offsets = [0, 256], sizes = [8, 128], strides = [1, 1]} : vector<8x512xf32> to vector<8x128xf32>
    %66 = math.tanh %65 : vector<8x128xf32>
    %67 = vector.extract_strided_slice %52 {offsets = [0, 384], sizes = [8, 128], strides = [1, 1]} : vector<8x512xf32> to vector<8x128xf32>
    %68 = arith.negf %67 : vector<8x128xf32>
    %69 = math.exp %68 : vector<8x128xf32>
    %cst_26 = arith.constant 1.000000e+00 : f32
    %70 = vector.broadcast %cst_26 : f32 to vector<8x128xf32>
    %71 = arith.addf %70, %69 : vector<8x128xf32>
    %72 = arith.divf %70, %71 : vector<8x128xf32>
    %73 = arith.mulf %64, %41 : vector<8x128xf32>
    %74 = arith.mulf %58, %66 : vector<8x128xf32>
    %75 = arith.addf %73, %74 : vector<8x128xf32>
    %76 = math.tanh %75 : vector<8x128xf32>
    %77 = arith.mulf %72, %76 : vector<8x128xf32>
    %78 = arith.index_cast %47 : i32 to index
    %c0_27 = arith.constant 0 : index
    %79 = vector.load %arg10[%78, %c0_27] : memref<64x128xf32, #tpu.memory_space<vmem>>, vector<8x128xf32>
    tpu.vector_store %arg10[%78, %c0_27], %77 {strides = array<i32>} : memref<64x128xf32, #tpu.memory_space<vmem>>, vector<8x128xf32>,
    %c2_i32 = arith.constant 2 : i32
    %c8_i32_28 = arith.constant 8 : i32
    %80 = arith.muli %c2_i32, %c8_i32_28 : i32
    %81 = tpu.assume_multiple %80, 8 : i32
    %82 = arith.index_cast %81 : i32 to index
    %c0_29 = arith.constant 0 : index
    %83 = vector.load %arg11[%82, %c0_29] : memref<64x512xf32, #tpu.memory_space<vmem>>, vector<8x512xf32>
    %84 = arith.truncf %77 : vector<8x128xf32> to vector<8x128xbf16>
    %cst_30 = arith.constant dense<0.000000e+00> : vector<8x512xf32>
    %85 = tpu.matmul %84, %7, %cst_30 {dimension_numbers = #tpu.dot_dimension_numbers<[1], [0], [0], [1], [0, 0, 1, 1], [], []>} : vector<8x128xbf16>, vector<128x512xbf16>, vector<8x512xf32> -> vector<8x512xf32>
    %86 = arith.addf %83, %85 : vector<8x512xf32>
    %87 = vector.extract_strided_slice %86 {offsets = [0, 0], sizes = [8, 128], strides = [1, 1]} : vector<8x512xf32> to vector<8x128xf32>
    %88 = arith.negf %87 : vector<8x128xf32>
    %89 = math.exp %88 : vector<8x128xf32>
    %cst_31 = arith.constant 1.000000e+00 : f32
    %90 = vector.broadcast %cst_31 : f32 to vector<8x128xf32>
    %91 = arith.addf %90, %89 : vector<8x128xf32>
    %92 = arith.divf %90, %91 : vector<8x128xf32>
    %93 = vector.extract_strided_slice %86 {offsets = [0, 128], sizes = [8, 128], strides = [1, 1]} : vector<8x512xf32> to vector<8x128xf32>
    %94 = arith.negf %93 : vector<8x128xf32>
    %95 = math.exp %94 : vector<8x128xf32>
    %cst_32 = arith.constant 1.000000e+00 : f32
    %96 = vector.broadcast %cst_32 : f32 to vector<8x128xf32>
    %97 = arith.addf %96, %95 : vector<8x128xf32>
    %98 = arith.divf %96, %97 : vector<8x128xf32>
    %99 = vector.extract_strided_slice %86 {offsets = [0, 256], sizes = [8, 128], strides = [1, 1]} : vector<8x512xf32> to vector<8x128xf32>
    %100 = math.tanh %99 : vector<8x128xf32>
    %101 = vector.extract_strided_slice %86 {offsets = [0, 384], sizes = [8, 128], strides = [1, 1]} : vector<8x512xf32> to vector<8x128xf32>
    %102 = arith.negf %101 : vector<8x128xf32>
    %103 = math.exp %102 : vector<8x128xf32>
    %cst_33 = arith.constant 1.000000e+00 : f32
    %104 = vector.broadcast %cst_33 : f32 to vector<8x128xf32>
    %105 = arith.addf %104, %103 : vector<8x128xf32>
    %106 = arith.divf %104, %105 : vector<8x128xf32>
    %107 = arith.mulf %98, %75 : vector<8x128xf32>
    %108 = arith.mulf %92, %100 : vector<8x128xf32>
    %109 = arith.addf %107, %108 : vector<8x128xf32>
    %110 = math.tanh %109 : vector<8x128xf32>
    %111 = arith.mulf %106, %110 : vector<8x128xf32>
    %112 = arith.index_cast %81 : i32 to index
    %c0_34 = arith.constant 0 : index
    %113 = vector.load %arg10[%112, %c0_34] : memref<64x128xf32, #tpu.memory_space<vmem>>, vector<8x128xf32>
    tpu.vector_store %arg10[%112, %c0_34], %111 {strides = array<i32>} : memref<64x128xf32, #tpu.memory_space<vmem>>, vector<8x128xf32>,
    %c3_i32 = arith.constant 3 : i32
    %c8_i32_35 = arith.constant 8 : i32
    %114 = arith.muli %c3_i32, %c8_i32_35 : i32
    %115 = tpu.assume_multiple %114, 8 : i32
    %116 = arith.index_cast %115 : i32 to index
    %c0_36 = arith.constant 0 : index
    %117 = vector.load %arg11[%116, %c0_36] : memref<64x512xf32, #tpu.memory_space<vmem>>, vector<8x512xf32>
    %118 = arith.truncf %111 : vector<8x128xf32> to vector<8x128xbf16>
    %cst_37 = arith.constant dense<0.000000e+00> : vector<8x512xf32>
    %119 = tpu.matmul %118, %7, %cst_37 {dimension_numbers = #tpu.dot_dimension_numbers<[1], [0], [0], [1], [0, 0, 1, 1], [], []>} : vector<8x128xbf16>, vector<128x512xbf16>, vector<8x512xf32> -> vector<8x512xf32>
    %120 = arith.addf %117, %119 : vector<8x512xf32>
    %121 = vector.extract_strided_slice %120 {offsets = [0, 0], sizes = [8, 128], strides = [1, 1]} : vector<8x512xf32> to vector<8x128xf32>
    %122 = arith.negf %121 : vector<8x128xf32>
    %123 = math.exp %122 : vector<8x128xf32>
    %cst_38 = arith.constant 1.000000e+00 : f32
    %124 = vector.broadcast %cst_38 : f32 to vector<8x128xf32>
    %125 = arith.addf %124, %123 : vector<8x128xf32>
    %126 = arith.divf %124, %125 : vector<8x128xf32>
    %127 = vector.extract_strided_slice %120 {offsets = [0, 128], sizes = [8, 128], strides = [1, 1]} : vector<8x512xf32> to vector<8x128xf32>
    %128 = arith.negf %127 : vector<8x128xf32>
    %129 = math.exp %128 : vector<8x128xf32>
    %cst_39 = arith.constant 1.000000e+00 : f32
    %130 = vector.broadcast %cst_39 : f32 to vector<8x128xf32>
    %131 = arith.addf %130, %129 : vector<8x128xf32>
    %132 = arith.divf %130, %131 : vector<8x128xf32>
    %133 = vector.extract_strided_slice %120 {offsets = [0, 256], sizes = [8, 128], strides = [1, 1]} : vector<8x512xf32> to vector<8x128xf32>
    %134 = math.tanh %133 : vector<8x128xf32>
    %135 = vector.extract_strided_slice %120 {offsets = [0, 384], sizes = [8, 128], strides = [1, 1]} : vector<8x512xf32> to vector<8x128xf32>
    %136 = arith.negf %135 : vector<8x128xf32>
    %137 = math.exp %136 : vector<8x128xf32>
    %cst_40 = arith.constant 1.000000e+00 : f32
    %138 = vector.broadcast %cst_40 : f32 to vector<8x128xf32>
    %139 = arith.addf %138, %137 : vector<8x128xf32>
    %140 = arith.divf %138, %139 : vector<8x128xf32>
    %141 = arith.mulf %132, %109 : vector<8x128xf32>
    %142 = arith.mulf %126, %134 : vector<8x128xf32>
    %143 = arith.addf %141, %142 : vector<8x128xf32>
    %144 = math.tanh %143 : vector<8x128xf32>
    %145 = arith.mulf %140, %144 : vector<8x128xf32>
    %146 = arith.index_cast %115 : i32 to index
    %c0_41 = arith.constant 0 : index
    %147 = vector.load %arg10[%146, %c0_41] : memref<64x128xf32, #tpu.memory_space<vmem>>, vector<8x128xf32>
    tpu.vector_store %arg10[%146, %c0_41], %145 {strides = array<i32>} : memref<64x128xf32, #tpu.memory_space<vmem>>, vector<8x128xf32>,
    %c4_i32 = arith.constant 4 : i32
    %c8_i32_42 = arith.constant 8 : i32
    %148 = arith.muli %c4_i32, %c8_i32_42 : i32
    %149 = tpu.assume_multiple %148, 8 : i32
    %150 = arith.index_cast %149 : i32 to index
    %c0_43 = arith.constant 0 : index
    %151 = vector.load %arg11[%150, %c0_43] : memref<64x512xf32, #tpu.memory_space<vmem>>, vector<8x512xf32>
    %152 = arith.truncf %145 : vector<8x128xf32> to vector<8x128xbf16>
    %cst_44 = arith.constant dense<0.000000e+00> : vector<8x512xf32>
    %153 = tpu.matmul %152, %7, %cst_44 {dimension_numbers = #tpu.dot_dimension_numbers<[1], [0], [0], [1], [0, 0, 1, 1], [], []>} : vector<8x128xbf16>, vector<128x512xbf16>, vector<8x512xf32> -> vector<8x512xf32>
    %154 = arith.addf %151, %153 : vector<8x512xf32>
    %155 = vector.extract_strided_slice %154 {offsets = [0, 0], sizes = [8, 128], strides = [1, 1]} : vector<8x512xf32> to vector<8x128xf32>
    %156 = arith.negf %155 : vector<8x128xf32>
    %157 = math.exp %156 : vector<8x128xf32>
    %cst_45 = arith.constant 1.000000e+00 : f32
    %158 = vector.broadcast %cst_45 : f32 to vector<8x128xf32>
    %159 = arith.addf %158, %157 : vector<8x128xf32>
    %160 = arith.divf %158, %159 : vector<8x128xf32>
    %161 = vector.extract_strided_slice %154 {offsets = [0, 128], sizes = [8, 128], strides = [1, 1]} : vector<8x512xf32> to vector<8x128xf32>
    %162 = arith.negf %161 : vector<8x128xf32>
    %163 = math.exp %162 : vector<8x128xf32>
    %cst_46 = arith.constant 1.000000e+00 : f32
    %164 = vector.broadcast %cst_46 : f32 to vector<8x128xf32>
    %165 = arith.addf %164, %163 : vector<8x128xf32>
    %166 = arith.divf %164, %165 : vector<8x128xf32>
    %167 = vector.extract_strided_slice %154 {offsets = [0, 256], sizes = [8, 128], strides = [1, 1]} : vector<8x512xf32> to vector<8x128xf32>
    %168 = math.tanh %167 : vector<8x128xf32>
    %169 = vector.extract_strided_slice %154 {offsets = [0, 384], sizes = [8, 128], strides = [1, 1]} : vector<8x512xf32> to vector<8x128xf32>
    %170 = arith.negf %169 : vector<8x128xf32>
    %171 = math.exp %170 : vector<8x128xf32>
    %cst_47 = arith.constant 1.000000e+00 : f32
    %172 = vector.broadcast %cst_47 : f32 to vector<8x128xf32>
    %173 = arith.addf %172, %171 : vector<8x128xf32>
    %174 = arith.divf %172, %173 : vector<8x128xf32>
    %175 = arith.mulf %166, %143 : vector<8x128xf32>
    %176 = arith.mulf %160, %168 : vector<8x128xf32>
    %177 = arith.addf %175, %176 : vector<8x128xf32>
    %178 = math.tanh %177 : vector<8x128xf32>
    %179 = arith.mulf %174, %178 : vector<8x128xf32>
    %180 = arith.index_cast %149 : i32 to index
    %c0_48 = arith.constant 0 : index
    %181 = vector.load %arg10[%180, %c0_48] : memref<64x128xf32, #tpu.memory_space<vmem>>, vector<8x128xf32>
    tpu.vector_store %arg10[%180, %c0_48], %179 {strides = array<i32>} : memref<64x128xf32, #tpu.memory_space<vmem>>, vector<8x128xf32>,
    %c5_i32 = arith.constant 5 : i32
    %c8_i32_49 = arith.constant 8 : i32
    %182 = arith.muli %c5_i32, %c8_i32_49 : i32
    %183 = tpu.assume_multiple %182, 8 : i32
    %184 = arith.index_cast %183 : i32 to index
    %c0_50 = arith.constant 0 : index
    %185 = vector.load %arg11[%184, %c0_50] : memref<64x512xf32, #tpu.memory_space<vmem>>, vector<8x512xf32>
    %186 = arith.truncf %179 : vector<8x128xf32> to vector<8x128xbf16>
    %cst_51 = arith.constant dense<0.000000e+00> : vector<8x512xf32>
    %187 = tpu.matmul %186, %7, %cst_51 {dimension_numbers = #tpu.dot_dimension_numbers<[1], [0], [0], [1], [0, 0, 1, 1], [], []>} : vector<8x128xbf16>, vector<128x512xbf16>, vector<8x512xf32> -> vector<8x512xf32>
    %188 = arith.addf %185, %187 : vector<8x512xf32>
    %189 = vector.extract_strided_slice %188 {offsets = [0, 0], sizes = [8, 128], strides = [1, 1]} : vector<8x512xf32> to vector<8x128xf32>
    %190 = arith.negf %189 : vector<8x128xf32>
    %191 = math.exp %190 : vector<8x128xf32>
    %cst_52 = arith.constant 1.000000e+00 : f32
    %192 = vector.broadcast %cst_52 : f32 to vector<8x128xf32>
    %193 = arith.addf %192, %191 : vector<8x128xf32>
    %194 = arith.divf %192, %193 : vector<8x128xf32>
    %195 = vector.extract_strided_slice %188 {offsets = [0, 128], sizes = [8, 128], strides = [1, 1]} : vector<8x512xf32> to vector<8x128xf32>
    %196 = arith.negf %195 : vector<8x128xf32>
    %197 = math.exp %196 : vector<8x128xf32>
    %cst_53 = arith.constant 1.000000e+00 : f32
    %198 = vector.broadcast %cst_53 : f32 to vector<8x128xf32>
    %199 = arith.addf %198, %197 : vector<8x128xf32>
    %200 = arith.divf %198, %199 : vector<8x128xf32>
    %201 = vector.extract_strided_slice %188 {offsets = [0, 256], sizes = [8, 128], strides = [1, 1]} : vector<8x512xf32> to vector<8x128xf32>
    %202 = math.tanh %201 : vector<8x128xf32>
    %203 = vector.extract_strided_slice %188 {offsets = [0, 384], sizes = [8, 128], strides = [1, 1]} : vector<8x512xf32> to vector<8x128xf32>
    %204 = arith.negf %203 : vector<8x128xf32>
    %205 = math.exp %204 : vector<8x128xf32>
    %cst_54 = arith.constant 1.000000e+00 : f32
    %206 = vector.broadcast %cst_54 : f32 to vector<8x128xf32>
    %207 = arith.addf %206, %205 : vector<8x128xf32>
    %208 = arith.divf %206, %207 : vector<8x128xf32>
    %209 = arith.mulf %200, %177 : vector<8x128xf32>
    %210 = arith.mulf %194, %202 : vector<8x128xf32>
    %211 = arith.addf %209, %210 : vector<8x128xf32>
    %212 = math.tanh %211 : vector<8x128xf32>
    %213 = arith.mulf %208, %212 : vector<8x128xf32>
    %214 = arith.index_cast %183 : i32 to index
    %c0_55 = arith.constant 0 : index
    %215 = vector.load %arg10[%214, %c0_55] : memref<64x128xf32, #tpu.memory_space<vmem>>, vector<8x128xf32>
    tpu.vector_store %arg10[%214, %c0_55], %213 {strides = array<i32>} : memref<64x128xf32, #tpu.memory_space<vmem>>, vector<8x128xf32>,
    %c6_i32 = arith.constant 6 : i32
    %c8_i32_56 = arith.constant 8 : i32
    %216 = arith.muli %c6_i32, %c8_i32_56 : i32
    %217 = tpu.assume_multiple %216, 8 : i32
    %218 = arith.index_cast %217 : i32 to index
    %c0_57 = arith.constant 0 : index
    %219 = vector.load %arg11[%218, %c0_57] : memref<64x512xf32, #tpu.memory_space<vmem>>, vector<8x512xf32>
    %220 = arith.truncf %213 : vector<8x128xf32> to vector<8x128xbf16>
    %cst_58 = arith.constant dense<0.000000e+00> : vector<8x512xf32>
    %221 = tpu.matmul %220, %7, %cst_58 {dimension_numbers = #tpu.dot_dimension_numbers<[1], [0], [0], [1], [0, 0, 1, 1], [], []>} : vector<8x128xbf16>, vector<128x512xbf16>, vector<8x512xf32> -> vector<8x512xf32>
    %222 = arith.addf %219, %221 : vector<8x512xf32>
    %223 = vector.extract_strided_slice %222 {offsets = [0, 0], sizes = [8, 128], strides = [1, 1]} : vector<8x512xf32> to vector<8x128xf32>
    %224 = arith.negf %223 : vector<8x128xf32>
    %225 = math.exp %224 : vector<8x128xf32>
    %cst_59 = arith.constant 1.000000e+00 : f32
    %226 = vector.broadcast %cst_59 : f32 to vector<8x128xf32>
    %227 = arith.addf %226, %225 : vector<8x128xf32>
    %228 = arith.divf %226, %227 : vector<8x128xf32>
    %229 = vector.extract_strided_slice %222 {offsets = [0, 128], sizes = [8, 128], strides = [1, 1]} : vector<8x512xf32> to vector<8x128xf32>
    %230 = arith.negf %229 : vector<8x128xf32>
    %231 = math.exp %230 : vector<8x128xf32>
    %cst_60 = arith.constant 1.000000e+00 : f32
    %232 = vector.broadcast %cst_60 : f32 to vector<8x128xf32>
    %233 = arith.addf %232, %231 : vector<8x128xf32>
    %234 = arith.divf %232, %233 : vector<8x128xf32>
    %235 = vector.extract_strided_slice %222 {offsets = [0, 256], sizes = [8, 128], strides = [1, 1]} : vector<8x512xf32> to vector<8x128xf32>
    %236 = math.tanh %235 : vector<8x128xf32>
    %237 = vector.extract_strided_slice %222 {offsets = [0, 384], sizes = [8, 128], strides = [1, 1]} : vector<8x512xf32> to vector<8x128xf32>
    %238 = arith.negf %237 : vector<8x128xf32>
    %239 = math.exp %238 : vector<8x128xf32>
    %cst_61 = arith.constant 1.000000e+00 : f32
    %240 = vector.broadcast %cst_61 : f32 to vector<8x128xf32>
    %241 = arith.addf %240, %239 : vector<8x128xf32>
    %242 = arith.divf %240, %241 : vector<8x128xf32>
    %243 = arith.mulf %234, %211 : vector<8x128xf32>
    %244 = arith.mulf %228, %236 : vector<8x128xf32>
    %245 = arith.addf %243, %244 : vector<8x128xf32>
    %246 = math.tanh %245 : vector<8x128xf32>
    %247 = arith.mulf %242, %246 : vector<8x128xf32>
    %248 = arith.index_cast %217 : i32 to index
    %c0_62 = arith.constant 0 : index
    %249 = vector.load %arg10[%248, %c0_62] : memref<64x128xf32, #tpu.memory_space<vmem>>, vector<8x128xf32>
    tpu.vector_store %arg10[%248, %c0_62], %247 {strides = array<i32>} : memref<64x128xf32, #tpu.memory_space<vmem>>, vector<8x128xf32>,
    %c7_i32 = arith.constant 7 : i32
    %c8_i32_63 = arith.constant 8 : i32
    %250 = arith.muli %c7_i32, %c8_i32_63 : i32
    %251 = tpu.assume_multiple %250, 8 : i32
    %252 = arith.index_cast %251 : i32 to index
    %c0_64 = arith.constant 0 : index
    %253 = vector.load %arg11[%252, %c0_64] : memref<64x512xf32, #tpu.memory_space<vmem>>, vector<8x512xf32>
    %254 = arith.truncf %247 : vector<8x128xf32> to vector<8x128xbf16>
    %cst_65 = arith.constant dense<0.000000e+00> : vector<8x512xf32>
    %255 = tpu.matmul %254, %7, %cst_65 {dimension_numbers = #tpu.dot_dimension_numbers<[1], [0], [0], [1], [0, 0, 1, 1], [], []>} : vector<8x128xbf16>, vector<128x512xbf16>, vector<8x512xf32> -> vector<8x512xf32>
    %256 = arith.addf %253, %255 : vector<8x512xf32>
    %257 = vector.extract_strided_slice %256 {offsets = [0, 0], sizes = [8, 128], strides = [1, 1]} : vector<8x512xf32> to vector<8x128xf32>
    %258 = arith.negf %257 : vector<8x128xf32>
    %259 = math.exp %258 : vector<8x128xf32>
    %cst_66 = arith.constant 1.000000e+00 : f32
    %260 = vector.broadcast %cst_66 : f32 to vector<8x128xf32>
    %261 = arith.addf %260, %259 : vector<8x128xf32>
    %262 = arith.divf %260, %261 : vector<8x128xf32>
    %263 = vector.extract_strided_slice %256 {offsets = [0, 128], sizes = [8, 128], strides = [1, 1]} : vector<8x512xf32> to vector<8x128xf32>
    %264 = arith.negf %263 : vector<8x128xf32>
    %265 = math.exp %264 : vector<8x128xf32>
    %cst_67 = arith.constant 1.000000e+00 : f32
    %266 = vector.broadcast %cst_67 : f32 to vector<8x128xf32>
    %267 = arith.addf %266, %265 : vector<8x128xf32>
    %268 = arith.divf %266, %267 : vector<8x128xf32>
    %269 = vector.extract_strided_slice %256 {offsets = [0, 256], sizes = [8, 128], strides = [1, 1]} : vector<8x512xf32> to vector<8x128xf32>
    %270 = math.tanh %269 : vector<8x128xf32>
    %271 = vector.extract_strided_slice %256 {offsets = [0, 384], sizes = [8, 128], strides = [1, 1]} : vector<8x512xf32> to vector<8x128xf32>
    %272 = arith.negf %271 : vector<8x128xf32>
    %273 = math.exp %272 : vector<8x128xf32>
    %cst_68 = arith.constant 1.000000e+00 : f32
    %274 = vector.broadcast %cst_68 : f32 to vector<8x128xf32>
    %275 = arith.addf %274, %273 : vector<8x128xf32>
    %276 = arith.divf %274, %275 : vector<8x128xf32>
    %277 = arith.mulf %268, %245 : vector<8x128xf32>
    %278 = arith.mulf %262, %270 : vector<8x128xf32>
    %279 = arith.addf %277, %278 : vector<8x128xf32>
    %280 = math.tanh %279 : vector<8x128xf32>
    %281 = arith.mulf %276, %280 : vector<8x128xf32>
    %282 = arith.index_cast %251 : i32 to index
    %c0_69 = arith.constant 0 : index
    %283 = vector.load %arg10[%282, %c0_69] : memref<64x128xf32, #tpu.memory_space<vmem>>, vector<8x128xf32>
    tpu.vector_store %arg10[%282, %c0_69], %281 {strides = array<i32>} : memref<64x128xf32, #tpu.memory_space<vmem>>, vector<8x128xf32>,
    %c8_i32_70 = arith.constant 8 : i32
    %c0_71 = arith.constant 0 : index
    %c0_72 = arith.constant 0 : index
    %284 = vector.load %arg10[%c0_71, %c0_72] : memref<64x128xf32, #tpu.memory_space<vmem>>, vector<64x128xf32>
    %285 = arith.truncf %284 : vector<64x128xf32> to vector<64x128xbf16>
    %c0_73 = arith.constant 0 : index
    %c0_74 = arith.constant 0 : index
    %286 = vector.load %arg7[%c0_73, %c0_74] : memref<128x512xbf16, #tpu.memory_space<vmem>>, vector<128x512xbf16>
    %cst_75 = arith.constant dense<0.000000e+00> : vector<64x512xf32>
    %287 = tpu.matmul %285, %286, %cst_75 {dimension_numbers = #tpu.dot_dimension_numbers<[1], [0], [0], [1], [0, 0, 1, 1], [], []>} : vector<64x128xbf16>, vector<128x512xbf16>, vector<64x512xf32> -> vector<64x512xf32>
    %c0_76 = arith.constant 0 : index
    %c0_77 = arith.constant 0 : index
    %288 = vector.load %arg9[%c0_76, %c0_77] : memref<1x512xf32, #tpu.memory_space<vmem>>, vector<1x512xf32>
    %289 = vector.broadcast %288 : vector<1x512xf32> to vector<64x512xf32>
    %290 = arith.addf %287, %289 : vector<64x512xf32>
    %c0_78 = arith.constant 0 : index
    %c0_79 = arith.constant 0 : index
    %291 = vector.load %arg11[%c0_78, %c0_79] : memref<64x512xf32, #tpu.memory_space<vmem>>, vector<64x512xf32>
    tpu.vector_store %arg11[%c0_78, %c0_79], %290 {strides = array<i32>} : memref<64x512xf32, #tpu.memory_space<vmem>>, vector<64x512xf32>,
    %c0_80 = arith.constant 0 : index
    %c0_81 = arith.constant 0 : index
    %292 = vector.load %arg8[%c0_80, %c0_81] : memref<128x512xbf16, #tpu.memory_space<vmem>>, vector<128x512xbf16>
    %c1 = arith.constant 1 : index
    %c0_82 = arith.constant 0 : index
    %c0_83 = arith.constant 0 : index
    %293 = vector.load %arg2[%c1, %c0_82, %c0_83] : memref<2x8x128xf32, #tpu.memory_space<vmem>>, vector<1x8x128xf32>
    %294 = vector.shape_cast %293 : vector<1x8x128xf32> to vector<8x128xf32>
    %c1_84 = arith.constant 1 : index
    %c0_85 = arith.constant 0 : index
    %c0_86 = arith.constant 0 : index
    %295 = vector.load %arg3[%c1_84, %c0_85, %c0_86] : memref<2x8x128xf32, #tpu.memory_space<vmem>>, vector<1x8x128xf32>
    %296 = vector.shape_cast %295 : vector<1x8x128xf32> to vector<8x128xf32>
    %c0_i32_87 = arith.constant 0 : i32
    %c8_i32_88 = arith.constant 8 : i32
    %297 = arith.muli %c0_i32_87, %c8_i32_88 : i32
    %298 = tpu.assume_multiple %297, 8 : i32
    %299 = arith.index_cast %298 : i32 to index
    %c0_89 = arith.constant 0 : index
    %300 = vector.load %arg11[%299, %c0_89] : memref<64x512xf32, #tpu.memory_space<vmem>>, vector<8x512xf32>
    %301 = arith.truncf %294 : vector<8x128xf32> to vector<8x128xbf16>
    %cst_90 = arith.constant dense<0.000000e+00> : vector<8x512xf32>
    %302 = tpu.matmul %301, %292, %cst_90 {dimension_numbers = #tpu.dot_dimension_numbers<[1], [0], [0], [1], [0, 0, 1, 1], [], []>} : vector<8x128xbf16>, vector<128x512xbf16>, vector<8x512xf32> -> vector<8x512xf32>
    %303 = arith.addf %300, %302 : vector<8x512xf32>
    %304 = vector.extract_strided_slice %303 {offsets = [0, 0], sizes = [8, 128], strides = [1, 1]} : vector<8x512xf32> to vector<8x128xf32>
    %305 = arith.negf %304 : vector<8x128xf32>
    %306 = math.exp %305 : vector<8x128xf32>
    %cst_91 = arith.constant 1.000000e+00 : f32
    %307 = vector.broadcast %cst_91 : f32 to vector<8x128xf32>
    %308 = arith.addf %307, %306 : vector<8x128xf32>
    %309 = arith.divf %307, %308 : vector<8x128xf32>
    %310 = vector.extract_strided_slice %303 {offsets = [0, 128], sizes = [8, 128], strides = [1, 1]} : vector<8x512xf32> to vector<8x128xf32>
    %311 = arith.negf %310 : vector<8x128xf32>
    %312 = math.exp %311 : vector<8x128xf32>
    %cst_92 = arith.constant 1.000000e+00 : f32
    %313 = vector.broadcast %cst_92 : f32 to vector<8x128xf32>
    %314 = arith.addf %313, %312 : vector<8x128xf32>
    %315 = arith.divf %313, %314 : vector<8x128xf32>
    %316 = vector.extract_strided_slice %303 {offsets = [0, 256], sizes = [8, 128], strides = [1, 1]} : vector<8x512xf32> to vector<8x128xf32>
    %317 = math.tanh %316 : vector<8x128xf32>
    %318 = vector.extract_strided_slice %303 {offsets = [0, 384], sizes = [8, 128], strides = [1, 1]} : vector<8x512xf32> to vector<8x128xf32>
    %319 = arith.negf %318 : vector<8x128xf32>
    %320 = math.exp %319 : vector<8x128xf32>
    %cst_93 = arith.constant 1.000000e+00 : f32
    %321 = vector.broadcast %cst_93 : f32 to vector<8x128xf32>
    %322 = arith.addf %321, %320 : vector<8x128xf32>
    %323 = arith.divf %321, %322 : vector<8x128xf32>
    %324 = arith.mulf %315, %296 : vector<8x128xf32>
    %325 = arith.mulf %309, %317 : vector<8x128xf32>
    %326 = arith.addf %324, %325 : vector<8x128xf32>
    %327 = math.tanh %326 : vector<8x128xf32>
    %328 = arith.mulf %323, %327 : vector<8x128xf32>
    %329 = arith.index_cast %298 : i32 to index
    %c0_94 = arith.constant 0 : index
    %330 = vector.load %arg10[%329, %c0_94] : memref<64x128xf32, #tpu.memory_space<vmem>>, vector<8x128xf32>
    tpu.vector_store %arg10[%329, %c0_94], %328 {strides = array<i32>} : memref<64x128xf32, #tpu.memory_space<vmem>>, vector<8x128xf32>,
    %c1_i32_95 = arith.constant 1 : i32
    %c8_i32_96 = arith.constant 8 : i32
    %331 = arith.muli %c1_i32_95, %c8_i32_96 : i32
    %332 = tpu.assume_multiple %331, 8 : i32
    %333 = arith.index_cast %332 : i32 to index
    %c0_97 = arith.constant 0 : index
    %334 = vector.load %arg11[%333, %c0_97] : memref<64x512xf32, #tpu.memory_space<vmem>>, vector<8x512xf32>
    %335 = arith.truncf %328 : vector<8x128xf32> to vector<8x128xbf16>
    %cst_98 = arith.constant dense<0.000000e+00> : vector<8x512xf32>
    %336 = tpu.matmul %335, %292, %cst_98 {dimension_numbers = #tpu.dot_dimension_numbers<[1], [0], [0], [1], [0, 0, 1, 1], [], []>} : vector<8x128xbf16>, vector<128x512xbf16>, vector<8x512xf32> -> vector<8x512xf32>
    %337 = arith.addf %334, %336 : vector<8x512xf32>
    %338 = vector.extract_strided_slice %337 {offsets = [0, 0], sizes = [8, 128], strides = [1, 1]} : vector<8x512xf32> to vector<8x128xf32>
    %339 = arith.negf %338 : vector<8x128xf32>
    %340 = math.exp %339 : vector<8x128xf32>
    %cst_99 = arith.constant 1.000000e+00 : f32
    %341 = vector.broadcast %cst_99 : f32 to vector<8x128xf32>
    %342 = arith.addf %341, %340 : vector<8x128xf32>
    %343 = arith.divf %341, %342 : vector<8x128xf32>
    %344 = vector.extract_strided_slice %337 {offsets = [0, 128], sizes = [8, 128], strides = [1, 1]} : vector<8x512xf32> to vector<8x128xf32>
    %345 = arith.negf %344 : vector<8x128xf32>
    %346 = math.exp %345 : vector<8x128xf32>
    %cst_100 = arith.constant 1.000000e+00 : f32
    %347 = vector.broadcast %cst_100 : f32 to vector<8x128xf32>
    %348 = arith.addf %347, %346 : vector<8x128xf32>
    %349 = arith.divf %347, %348 : vector<8x128xf32>
    %350 = vector.extract_strided_slice %337 {offsets = [0, 256], sizes = [8, 128], strides = [1, 1]} : vector<8x512xf32> to vector<8x128xf32>
    %351 = math.tanh %350 : vector<8x128xf32>
    %352 = vector.extract_strided_slice %337 {offsets = [0, 384], sizes = [8, 128], strides = [1, 1]} : vector<8x512xf32> to vector<8x128xf32>
    %353 = arith.negf %352 : vector<8x128xf32>
    %354 = math.exp %353 : vector<8x128xf32>
    %cst_101 = arith.constant 1.000000e+00 : f32
    %355 = vector.broadcast %cst_101 : f32 to vector<8x128xf32>
    %356 = arith.addf %355, %354 : vector<8x128xf32>
    %357 = arith.divf %355, %356 : vector<8x128xf32>
    %358 = arith.mulf %349, %326 : vector<8x128xf32>
    %359 = arith.mulf %343, %351 : vector<8x128xf32>
    %360 = arith.addf %358, %359 : vector<8x128xf32>
    %361 = math.tanh %360 : vector<8x128xf32>
    %362 = arith.mulf %357, %361 : vector<8x128xf32>
    %363 = arith.index_cast %332 : i32 to index
    %c0_102 = arith.constant 0 : index
    %364 = vector.load %arg10[%363, %c0_102] : memref<64x128xf32, #tpu.memory_space<vmem>>, vector<8x128xf32>
    tpu.vector_store %arg10[%363, %c0_102], %362 {strides = array<i32>} : memref<64x128xf32, #tpu.memory_space<vmem>>, vector<8x128xf32>,
    %c2_i32_103 = arith.constant 2 : i32
    %c8_i32_104 = arith.constant 8 : i32
    %365 = arith.muli %c2_i32_103, %c8_i32_104 : i32
    %366 = tpu.assume_multiple %365, 8 : i32
    %367 = arith.index_cast %366 : i32 to index
    %c0_105 = arith.constant 0 : index
    %368 = vector.load %arg11[%367, %c0_105] : memref<64x512xf32, #tpu.memory_space<vmem>>, vector<8x512xf32>
    %369 = arith.truncf %362 : vector<8x128xf32> to vector<8x128xbf16>
    %cst_106 = arith.constant dense<0.000000e+00> : vector<8x512xf32>
    %370 = tpu.matmul %369, %292, %cst_106 {dimension_numbers = #tpu.dot_dimension_numbers<[1], [0], [0], [1], [0, 0, 1, 1], [], []>} : vector<8x128xbf16>, vector<128x512xbf16>, vector<8x512xf32> -> vector<8x512xf32>
    %371 = arith.addf %368, %370 : vector<8x512xf32>
    %372 = vector.extract_strided_slice %371 {offsets = [0, 0], sizes = [8, 128], strides = [1, 1]} : vector<8x512xf32> to vector<8x128xf32>
    %373 = arith.negf %372 : vector<8x128xf32>
    %374 = math.exp %373 : vector<8x128xf32>
    %cst_107 = arith.constant 1.000000e+00 : f32
    %375 = vector.broadcast %cst_107 : f32 to vector<8x128xf32>
    %376 = arith.addf %375, %374 : vector<8x128xf32>
    %377 = arith.divf %375, %376 : vector<8x128xf32>
    %378 = vector.extract_strided_slice %371 {offsets = [0, 128], sizes = [8, 128], strides = [1, 1]} : vector<8x512xf32> to vector<8x128xf32>
    %379 = arith.negf %378 : vector<8x128xf32>
    %380 = math.exp %379 : vector<8x128xf32>
    %cst_108 = arith.constant 1.000000e+00 : f32
    %381 = vector.broadcast %cst_108 : f32 to vector<8x128xf32>
    %382 = arith.addf %381, %380 : vector<8x128xf32>
    %383 = arith.divf %381, %382 : vector<8x128xf32>
    %384 = vector.extract_strided_slice %371 {offsets = [0, 256], sizes = [8, 128], strides = [1, 1]} : vector<8x512xf32> to vector<8x128xf32>
    %385 = math.tanh %384 : vector<8x128xf32>
    %386 = vector.extract_strided_slice %371 {offsets = [0, 384], sizes = [8, 128], strides = [1, 1]} : vector<8x512xf32> to vector<8x128xf32>
    %387 = arith.negf %386 : vector<8x128xf32>
    %388 = math.exp %387 : vector<8x128xf32>
    %cst_109 = arith.constant 1.000000e+00 : f32
    %389 = vector.broadcast %cst_109 : f32 to vector<8x128xf32>
    %390 = arith.addf %389, %388 : vector<8x128xf32>
    %391 = arith.divf %389, %390 : vector<8x128xf32>
    %392 = arith.mulf %383, %360 : vector<8x128xf32>
    %393 = arith.mulf %377, %385 : vector<8x128xf32>
    %394 = arith.addf %392, %393 : vector<8x128xf32>
    %395 = math.tanh %394 : vector<8x128xf32>
    %396 = arith.mulf %391, %395 : vector<8x128xf32>
    %397 = arith.index_cast %366 : i32 to index
    %c0_110 = arith.constant 0 : index
    %398 = vector.load %arg10[%397, %c0_110] : memref<64x128xf32, #tpu.memory_space<vmem>>, vector<8x128xf32>
    tpu.vector_store %arg10[%397, %c0_110], %396 {strides = array<i32>} : memref<64x128xf32, #tpu.memory_space<vmem>>, vector<8x128xf32>,
    %c3_i32_111 = arith.constant 3 : i32
    %c8_i32_112 = arith.constant 8 : i32
    %399 = arith.muli %c3_i32_111, %c8_i32_112 : i32
    %400 = tpu.assume_multiple %399, 8 : i32
    %401 = arith.index_cast %400 : i32 to index
    %c0_113 = arith.constant 0 : index
    %402 = vector.load %arg11[%401, %c0_113] : memref<64x512xf32, #tpu.memory_space<vmem>>, vector<8x512xf32>
    %403 = arith.truncf %396 : vector<8x128xf32> to vector<8x128xbf16>
    %cst_114 = arith.constant dense<0.000000e+00> : vector<8x512xf32>
    %404 = tpu.matmul %403, %292, %cst_114 {dimension_numbers = #tpu.dot_dimension_numbers<[1], [0], [0], [1], [0, 0, 1, 1], [], []>} : vector<8x128xbf16>, vector<128x512xbf16>, vector<8x512xf32> -> vector<8x512xf32>
    %405 = arith.addf %402, %404 : vector<8x512xf32>
    %406 = vector.extract_strided_slice %405 {offsets = [0, 0], sizes = [8, 128], strides = [1, 1]} : vector<8x512xf32> to vector<8x128xf32>
    %407 = arith.negf %406 : vector<8x128xf32>
    %408 = math.exp %407 : vector<8x128xf32>
    %cst_115 = arith.constant 1.000000e+00 : f32
    %409 = vector.broadcast %cst_115 : f32 to vector<8x128xf32>
    %410 = arith.addf %409, %408 : vector<8x128xf32>
    %411 = arith.divf %409, %410 : vector<8x128xf32>
    %412 = vector.extract_strided_slice %405 {offsets = [0, 128], sizes = [8, 128], strides = [1, 1]} : vector<8x512xf32> to vector<8x128xf32>
    %413 = arith.negf %412 : vector<8x128xf32>
    %414 = math.exp %413 : vector<8x128xf32>
    %cst_116 = arith.constant 1.000000e+00 : f32
    %415 = vector.broadcast %cst_116 : f32 to vector<8x128xf32>
    %416 = arith.addf %415, %414 : vector<8x128xf32>
    %417 = arith.divf %415, %416 : vector<8x128xf32>
    %418 = vector.extract_strided_slice %405 {offsets = [0, 256], sizes = [8, 128], strides = [1, 1]} : vector<8x512xf32> to vector<8x128xf32>
    %419 = math.tanh %418 : vector<8x128xf32>
    %420 = vector.extract_strided_slice %405 {offsets = [0, 384], sizes = [8, 128], strides = [1, 1]} : vector<8x512xf32> to vector<8x128xf32>
    %421 = arith.negf %420 : vector<8x128xf32>
    %422 = math.exp %421 : vector<8x128xf32>
    %cst_117 = arith.constant 1.000000e+00 : f32
    %423 = vector.broadcast %cst_117 : f32 to vector<8x128xf32>
    %424 = arith.addf %423, %422 : vector<8x128xf32>
    %425 = arith.divf %423, %424 : vector<8x128xf32>
    %426 = arith.mulf %417, %394 : vector<8x128xf32>
    %427 = arith.mulf %411, %419 : vector<8x128xf32>
    %428 = arith.addf %426, %427 : vector<8x128xf32>
    %429 = math.tanh %428 : vector<8x128xf32>
    %430 = arith.mulf %425, %429 : vector<8x128xf32>
    %431 = arith.index_cast %400 : i32 to index
    %c0_118 = arith.constant 0 : index
    %432 = vector.load %arg10[%431, %c0_118] : memref<64x128xf32, #tpu.memory_space<vmem>>, vector<8x128xf32>
    tpu.vector_store %arg10[%431, %c0_118], %430 {strides = array<i32>} : memref<64x128xf32, #tpu.memory_space<vmem>>, vector<8x128xf32>,
    %c4_i32_119 = arith.constant 4 : i32
    %c8_i32_120 = arith.constant 8 : i32
    %433 = arith.muli %c4_i32_119, %c8_i32_120 : i32
    %434 = tpu.assume_multiple %433, 8 : i32
    %435 = arith.index_cast %434 : i32 to index
    %c0_121 = arith.constant 0 : index
    %436 = vector.load %arg11[%435, %c0_121] : memref<64x512xf32, #tpu.memory_space<vmem>>, vector<8x512xf32>
    %437 = arith.truncf %430 : vector<8x128xf32> to vector<8x128xbf16>
    %cst_122 = arith.constant dense<0.000000e+00> : vector<8x512xf32>
    %438 = tpu.matmul %437, %292, %cst_122 {dimension_numbers = #tpu.dot_dimension_numbers<[1], [0], [0], [1], [0, 0, 1, 1], [], []>} : vector<8x128xbf16>, vector<128x512xbf16>, vector<8x512xf32> -> vector<8x512xf32>
    %439 = arith.addf %436, %438 : vector<8x512xf32>
    %440 = vector.extract_strided_slice %439 {offsets = [0, 0], sizes = [8, 128], strides = [1, 1]} : vector<8x512xf32> to vector<8x128xf32>
    %441 = arith.negf %440 : vector<8x128xf32>
    %442 = math.exp %441 : vector<8x128xf32>
    %cst_123 = arith.constant 1.000000e+00 : f32
    %443 = vector.broadcast %cst_123 : f32 to vector<8x128xf32>
    %444 = arith.addf %443, %442 : vector<8x128xf32>
    %445 = arith.divf %443, %444 : vector<8x128xf32>
    %446 = vector.extract_strided_slice %439 {offsets = [0, 128], sizes = [8, 128], strides = [1, 1]} : vector<8x512xf32> to vector<8x128xf32>
    %447 = arith.negf %446 : vector<8x128xf32>
    %448 = math.exp %447 : vector<8x128xf32>
    %cst_124 = arith.constant 1.000000e+00 : f32
    %449 = vector.broadcast %cst_124 : f32 to vector<8x128xf32>
    %450 = arith.addf %449, %448 : vector<8x128xf32>
    %451 = arith.divf %449, %450 : vector<8x128xf32>
    %452 = vector.extract_strided_slice %439 {offsets = [0, 256], sizes = [8, 128], strides = [1, 1]} : vector<8x512xf32> to vector<8x128xf32>
    %453 = math.tanh %452 : vector<8x128xf32>
    %454 = vector.extract_strided_slice %439 {offsets = [0, 384], sizes = [8, 128], strides = [1, 1]} : vector<8x512xf32> to vector<8x128xf32>
    %455 = arith.negf %454 : vector<8x128xf32>
    %456 = math.exp %455 : vector<8x128xf32>
    %cst_125 = arith.constant 1.000000e+00 : f32
    %457 = vector.broadcast %cst_125 : f32 to vector<8x128xf32>
    %458 = arith.addf %457, %456 : vector<8x128xf32>
    %459 = arith.divf %457, %458 : vector<8x128xf32>
    %460 = arith.mulf %451, %428 : vector<8x128xf32>
    %461 = arith.mulf %445, %453 : vector<8x128xf32>
    %462 = arith.addf %460, %461 : vector<8x128xf32>
    %463 = math.tanh %462 : vector<8x128xf32>
    %464 = arith.mulf %459, %463 : vector<8x128xf32>
    %465 = arith.index_cast %434 : i32 to index
    %c0_126 = arith.constant 0 : index
    %466 = vector.load %arg10[%465, %c0_126] : memref<64x128xf32, #tpu.memory_space<vmem>>, vector<8x128xf32>
    tpu.vector_store %arg10[%465, %c0_126], %464 {strides = array<i32>} : memref<64x128xf32, #tpu.memory_space<vmem>>, vector<8x128xf32>,
    %c5_i32_127 = arith.constant 5 : i32
    %c8_i32_128 = arith.constant 8 : i32
    %467 = arith.muli %c5_i32_127, %c8_i32_128 : i32
    %468 = tpu.assume_multiple %467, 8 : i32
    %469 = arith.index_cast %468 : i32 to index
    %c0_129 = arith.constant 0 : index
    %470 = vector.load %arg11[%469, %c0_129] : memref<64x512xf32, #tpu.memory_space<vmem>>, vector<8x512xf32>
    %471 = arith.truncf %464 : vector<8x128xf32> to vector<8x128xbf16>
    %cst_130 = arith.constant dense<0.000000e+00> : vector<8x512xf32>
    %472 = tpu.matmul %471, %292, %cst_130 {dimension_numbers = #tpu.dot_dimension_numbers<[1], [0], [0], [1], [0, 0, 1, 1], [], []>} : vector<8x128xbf16>, vector<128x512xbf16>, vector<8x512xf32> -> vector<8x512xf32>
    %473 = arith.addf %470, %472 : vector<8x512xf32>
    %474 = vector.extract_strided_slice %473 {offsets = [0, 0], sizes = [8, 128], strides = [1, 1]} : vector<8x512xf32> to vector<8x128xf32>
    %475 = arith.negf %474 : vector<8x128xf32>
    %476 = math.exp %475 : vector<8x128xf32>
    %cst_131 = arith.constant 1.000000e+00 : f32
    %477 = vector.broadcast %cst_131 : f32 to vector<8x128xf32>
    %478 = arith.addf %477, %476 : vector<8x128xf32>
    %479 = arith.divf %477, %478 : vector<8x128xf32>
    %480 = vector.extract_strided_slice %473 {offsets = [0, 128], sizes = [8, 128], strides = [1, 1]} : vector<8x512xf32> to vector<8x128xf32>
    %481 = arith.negf %480 : vector<8x128xf32>
    %482 = math.exp %481 : vector<8x128xf32>
    %cst_132 = arith.constant 1.000000e+00 : f32
    %483 = vector.broadcast %cst_132 : f32 to vector<8x128xf32>
    %484 = arith.addf %483, %482 : vector<8x128xf32>
    %485 = arith.divf %483, %484 : vector<8x128xf32>
    %486 = vector.extract_strided_slice %473 {offsets = [0, 256], sizes = [8, 128], strides = [1, 1]} : vector<8x512xf32> to vector<8x128xf32>
    %487 = math.tanh %486 : vector<8x128xf32>
    %488 = vector.extract_strided_slice %473 {offsets = [0, 384], sizes = [8, 128], strides = [1, 1]} : vector<8x512xf32> to vector<8x128xf32>
    %489 = arith.negf %488 : vector<8x128xf32>
    %490 = math.exp %489 : vector<8x128xf32>
    %cst_133 = arith.constant 1.000000e+00 : f32
    %491 = vector.broadcast %cst_133 : f32 to vector<8x128xf32>
    %492 = arith.addf %491, %490 : vector<8x128xf32>
    %493 = arith.divf %491, %492 : vector<8x128xf32>
    %494 = arith.mulf %485, %462 : vector<8x128xf32>
    %495 = arith.mulf %479, %487 : vector<8x128xf32>
    %496 = arith.addf %494, %495 : vector<8x128xf32>
    %497 = math.tanh %496 : vector<8x128xf32>
    %498 = arith.mulf %493, %497 : vector<8x128xf32>
    %499 = arith.index_cast %468 : i32 to index
    %c0_134 = arith.constant 0 : index
    %500 = vector.load %arg10[%499, %c0_134] : memref<64x128xf32, #tpu.memory_space<vmem>>, vector<8x128xf32>
    tpu.vector_store %arg10[%499, %c0_134], %498 {strides = array<i32>} : memref<64x128xf32, #tpu.memory_space<vmem>>, vector<8x128xf32>,
    %c6_i32_135 = arith.constant 6 : i32
    %c8_i32_136 = arith.constant 8 : i32
    %501 = arith.muli %c6_i32_135, %c8_i32_136 : i32
    %502 = tpu.assume_multiple %501, 8 : i32
    %503 = arith.index_cast %502 : i32 to index
    %c0_137 = arith.constant 0 : index
    %504 = vector.load %arg11[%503, %c0_137] : memref<64x512xf32, #tpu.memory_space<vmem>>, vector<8x512xf32>
    %505 = arith.truncf %498 : vector<8x128xf32> to vector<8x128xbf16>
    %cst_138 = arith.constant dense<0.000000e+00> : vector<8x512xf32>
    %506 = tpu.matmul %505, %292, %cst_138 {dimension_numbers = #tpu.dot_dimension_numbers<[1], [0], [0], [1], [0, 0, 1, 1], [], []>} : vector<8x128xbf16>, vector<128x512xbf16>, vector<8x512xf32> -> vector<8x512xf32>
    %507 = arith.addf %504, %506 : vector<8x512xf32>
    %508 = vector.extract_strided_slice %507 {offsets = [0, 0], sizes = [8, 128], strides = [1, 1]} : vector<8x512xf32> to vector<8x128xf32>
    %509 = arith.negf %508 : vector<8x128xf32>
    %510 = math.exp %509 : vector<8x128xf32>
    %cst_139 = arith.constant 1.000000e+00 : f32
    %511 = vector.broadcast %cst_139 : f32 to vector<8x128xf32>
    %512 = arith.addf %511, %510 : vector<8x128xf32>
    %513 = arith.divf %511, %512 : vector<8x128xf32>
    %514 = vector.extract_strided_slice %507 {offsets = [0, 128], sizes = [8, 128], strides = [1, 1]} : vector<8x512xf32> to vector<8x128xf32>
    %515 = arith.negf %514 : vector<8x128xf32>
    %516 = math.exp %515 : vector<8x128xf32>
    %cst_140 = arith.constant 1.000000e+00 : f32
    %517 = vector.broadcast %cst_140 : f32 to vector<8x128xf32>
    %518 = arith.addf %517, %516 : vector<8x128xf32>
    %519 = arith.divf %517, %518 : vector<8x128xf32>
    %520 = vector.extract_strided_slice %507 {offsets = [0, 256], sizes = [8, 128], strides = [1, 1]} : vector<8x512xf32> to vector<8x128xf32>
    %521 = math.tanh %520 : vector<8x128xf32>
    %522 = vector.extract_strided_slice %507 {offsets = [0, 384], sizes = [8, 128], strides = [1, 1]} : vector<8x512xf32> to vector<8x128xf32>
    %523 = arith.negf %522 : vector<8x128xf32>
    %524 = math.exp %523 : vector<8x128xf32>
    %cst_141 = arith.constant 1.000000e+00 : f32
    %525 = vector.broadcast %cst_141 : f32 to vector<8x128xf32>
    %526 = arith.addf %525, %524 : vector<8x128xf32>
    %527 = arith.divf %525, %526 : vector<8x128xf32>
    %528 = arith.mulf %519, %496 : vector<8x128xf32>
    %529 = arith.mulf %513, %521 : vector<8x128xf32>
    %530 = arith.addf %528, %529 : vector<8x128xf32>
    %531 = math.tanh %530 : vector<8x128xf32>
    %532 = arith.mulf %527, %531 : vector<8x128xf32>
    %533 = arith.index_cast %502 : i32 to index
    %c0_142 = arith.constant 0 : index
    %534 = vector.load %arg10[%533, %c0_142] : memref<64x128xf32, #tpu.memory_space<vmem>>, vector<8x128xf32>
    tpu.vector_store %arg10[%533, %c0_142], %532 {strides = array<i32>} : memref<64x128xf32, #tpu.memory_space<vmem>>, vector<8x128xf32>,
    %c7_i32_143 = arith.constant 7 : i32
    %c8_i32_144 = arith.constant 8 : i32
    %535 = arith.muli %c7_i32_143, %c8_i32_144 : i32
    %536 = tpu.assume_multiple %535, 8 : i32
    %537 = arith.index_cast %536 : i32 to index
    %c0_145 = arith.constant 0 : index
    %538 = vector.load %arg11[%537, %c0_145] : memref<64x512xf32, #tpu.memory_space<vmem>>, vector<8x512xf32>
    %539 = arith.truncf %532 : vector<8x128xf32> to vector<8x128xbf16>
    %cst_146 = arith.constant dense<0.000000e+00> : vector<8x512xf32>
    %540 = tpu.matmul %539, %292, %cst_146 {dimension_numbers = #tpu.dot_dimension_numbers<[1], [0], [0], [1], [0, 0, 1, 1], [], []>} : vector<8x128xbf16>, vector<128x512xbf16>, vector<8x512xf32> -> vector<8x512xf32>
    %541 = arith.addf %538, %540 : vector<8x512xf32>
    %542 = vector.extract_strided_slice %541 {offsets = [0, 0], sizes = [8, 128], strides = [1, 1]} : vector<8x512xf32> to vector<8x128xf32>
    %543 = arith.negf %542 : vector<8x128xf32>
    %544 = math.exp %543 : vector<8x128xf32>
    %cst_147 = arith.constant 1.000000e+00 : f32
    %545 = vector.broadcast %cst_147 : f32 to vector<8x128xf32>
    %546 = arith.addf %545, %544 : vector<8x128xf32>
    %547 = arith.divf %545, %546 : vector<8x128xf32>
    %548 = vector.extract_strided_slice %541 {offsets = [0, 128], sizes = [8, 128], strides = [1, 1]} : vector<8x512xf32> to vector<8x128xf32>
    %549 = arith.negf %548 : vector<8x128xf32>
    %550 = math.exp %549 : vector<8x128xf32>
    %cst_148 = arith.constant 1.000000e+00 : f32
    %551 = vector.broadcast %cst_148 : f32 to vector<8x128xf32>
    %552 = arith.addf %551, %550 : vector<8x128xf32>
    %553 = arith.divf %551, %552 : vector<8x128xf32>
    %554 = vector.extract_strided_slice %541 {offsets = [0, 256], sizes = [8, 128], strides = [1, 1]} : vector<8x512xf32> to vector<8x128xf32>
    %555 = math.tanh %554 : vector<8x128xf32>
    %556 = vector.extract_strided_slice %541 {offsets = [0, 384], sizes = [8, 128], strides = [1, 1]} : vector<8x512xf32> to vector<8x128xf32>
    %557 = arith.negf %556 : vector<8x128xf32>
    %558 = math.exp %557 : vector<8x128xf32>
    %cst_149 = arith.constant 1.000000e+00 : f32
    %559 = vector.broadcast %cst_149 : f32 to vector<8x128xf32>
    %560 = arith.addf %559, %558 : vector<8x128xf32>
    %561 = arith.divf %559, %560 : vector<8x128xf32>
    %562 = arith.mulf %553, %530 : vector<8x128xf32>
    %563 = arith.mulf %547, %555 : vector<8x128xf32>
    %564 = arith.addf %562, %563 : vector<8x128xf32>
    %565 = math.tanh %564 : vector<8x128xf32>
    %566 = arith.mulf %561, %565 : vector<8x128xf32>
    %567 = arith.index_cast %536 : i32 to index
    %c0_150 = arith.constant 0 : index
    %568 = vector.load %arg10[%567, %c0_150] : memref<64x128xf32, #tpu.memory_space<vmem>>, vector<8x128xf32>
    tpu.vector_store %arg10[%567, %c0_150], %566 {strides = array<i32>} : memref<64x128xf32, #tpu.memory_space<vmem>>, vector<8x128xf32>,
    %c8_i32_151 = arith.constant 8 : i32
    return
  }
  func.func @transform_0(%arg0: i32) -> (i32, i32) {
    %c0_i32 = arith.constant 0 : i32
    %c0_i32_0 = arith.constant 0 : i32
    %c0_i32_1 = arith.constant 0 : i32
    return %c0_i32, %c0_i32_0 : i32, i32
  }
  func.func @transform_1(%arg0: i32) -> (i32, i32, i32) {
    %c0_i32 = arith.constant 0 : i32
    %c0_i32_0 = arith.constant 0 : i32
    %c0_i32_1 = arith.constant 0 : i32
    %c0_i32_2 = arith.constant 0 : i32
    return %c0_i32, %c0_i32_0, %c0_i32_1 : i32, i32, i32
  }
  func.func @transform_2(%arg0: i32) -> (i32, i32, i32) {
    %c0_i32 = arith.constant 0 : i32
    %c0_i32_0 = arith.constant 0 : i32
    %c0_i32_1 = arith.constant 0 : i32
    %c0_i32_2 = arith.constant 0 : i32
    return %c0_i32, %c0_i32_0, %c0_i32_1 : i32, i32, i32
  }
  func.func @transform_3(%arg0: i32) -> (i32, i32) {
    %c0_i32 = arith.constant 0 : i32
    %c0_i32_0 = arith.constant 0 : i32
    %c0_i32_1 = arith.constant 0 : i32
    return %c0_i32, %c0_i32_0 : i32, i32
  }
  func.func @transform_4(%arg0: i32) -> (i32, i32) {
    %c0_i32 = arith.constant 0 : i32
    %c0_i32_0 = arith.constant 0 : i32
    %c0_i32_1 = arith.constant 0 : i32
    return %c0_i32, %c0_i32_0 : i32, i32
  }
  func.func @transform_5(%arg0: i32) -> (i32, i32) {
    %c0_i32 = arith.constant 0 : i32
    %c0_i32_0 = arith.constant 0 : i32
    %c0_i32_1 = arith.constant 0 : i32
    return %c0_i32, %c0_i32_0 : i32, i32
  }
  func.func @transform_6(%arg0: i32) -> (i32, i32) {
    %c0_i32 = arith.constant 0 : i32
    %c0_i32_0 = arith.constant 0 : i32
    %c0_i32_1 = arith.constant 0 : i32
    return %c0_i32, %c0_i32_0 : i32, i32
  }
  func.func @transform_7(%arg0: i32) -> (i32, i32) {
    %c0_i32 = arith.constant 0 : i32
    %c0_i32_0 = arith.constant 0 : i32
    %c0_i32_1 = arith.constant 0 : i32
    return %c0_i32, %c0_i32_0 : i32, i32
  }
  func.func @transform_8(%arg0: i32) -> (i32, i32) {
    %c0_i32 = arith.constant 0 : i32
    %c0_i32_0 = arith.constant 0 : i32
    %c0_i32_1 = arith.constant 0 : i32
    return %c0_i32, %c0_i32_0 : i32, i32
  }
  func.func @transform_9(%arg0: i32) -> (i32, i32) {
    %c0_i32 = arith.constant 0 : i32
    %c0_i32_0 = arith.constant 0 : i32
    %c0_i32_1 = arith.constant 0 : i32
    return %c0_i32, %c0_i32_0 : i32, i32
  }
}

module attributes {stable_mosaic.version = 11 : i64} {
  func.func @_fc_kernel(%arg0: i32, %arg1: i32, %arg2: memref<16x128xbf16, #tpu.memory_space<vmem>>, %arg3: memref<128x64xbf16, #tpu.memory_space<vmem>>, %arg4: memref<1x64xf32, #tpu.memory_space<vmem>>, %arg5: memref<16x64xf32, #tpu.memory_space<vmem>>) attributes {dimension_semantics = [#tpu.dimension_semantics<parallel>, #tpu.dimension_semantics<parallel>], iteration_bounds = array<i64: 1, 1>, scalar_prefetch = 0 : i64, scratch_operands = 0 : i64, tpu.core_type = #tpu.core_type<tc>, window_params = [{transform_indices = @transform_0, window_bounds = array<i64: 16, 128>}, {transform_indices = @transform_1, window_bounds = array<i64: 128, 64>}, {transform_indices = @transform_2, window_bounds = array<i64: 1, 64>}, {transform_indices = @transform_3, window_bounds = array<i64: 16, 64>}]} {
    %c0 = arith.constant 0 : index
    %c0_0 = arith.constant 0 : index
    %0 = vector.load %arg2[%c0, %c0_0] : memref<16x128xbf16, #tpu.memory_space<vmem>>, vector<16x128xbf16>
    %c0_1 = arith.constant 0 : index
    %c0_2 = arith.constant 0 : index
    %1 = vector.load %arg3[%c0_1, %c0_2] : memref<128x64xbf16, #tpu.memory_space<vmem>>, vector<128x64xbf16>
    %cst = arith.constant dense<0.000000e+00> : vector<16x64xf32>
    %2 = tpu.matmul %0, %1, %cst {dimension_numbers = #tpu.dot_dimension_numbers<[1], [0], [0], [1], [0, 0, 1, 1], [], []>} : vector<16x128xbf16>, vector<128x64xbf16>, vector<16x64xf32> -> vector<16x64xf32>
    %c0_3 = arith.constant 0 : index
    %c0_4 = arith.constant 0 : index
    %3 = vector.load %arg4[%c0_3, %c0_4] : memref<1x64xf32, #tpu.memory_space<vmem>>, vector<1x64xf32>
    %4 = vector.broadcast %3 : vector<1x64xf32> to vector<16x64xf32>
    %5 = arith.addf %2, %4 : vector<16x64xf32>
    %c0_5 = arith.constant 0 : index
    %c0_6 = arith.constant 0 : index
    %6 = vector.load %arg5[%c0_5, %c0_6] : memref<16x64xf32, #tpu.memory_space<vmem>>, vector<16x64xf32>
    tpu.vector_store %arg5[%c0_5, %c0_6], %5 {strides = array<i32>} : memref<16x64xf32, #tpu.memory_space<vmem>>, vector<16x64xf32>,
    return
  }
  func.func @transform_0(%arg0: i32, %arg1: i32) -> (i32, i32) {
    %c0_i32 = arith.constant 0 : i32
    %c0_i32_0 = arith.constant 0 : i32
    return %arg0, %c0_i32 : i32, i32
  }
  func.func @transform_1(%arg0: i32, %arg1: i32) -> (i32, i32) {
    %c0_i32 = arith.constant 0 : i32
    %c0_i32_0 = arith.constant 0 : i32
    return %c0_i32, %arg1 : i32, i32
  }
  func.func @transform_2(%arg0: i32, %arg1: i32) -> (i32, i32) {
    %c0_i32 = arith.constant 0 : i32
    %c0_i32_0 = arith.constant 0 : i32
    return %c0_i32, %arg1 : i32, i32
  }
  func.func @transform_3(%arg0: i32, %arg1: i32) -> (i32, i32) {
    %c0_i32 = arith.constant 0 : i32
    return %arg0, %arg1 : i32, i32
  }
}

</mosaic_0001>

<bundles_post_ra>
// kernel: rnn_decoder_forward.3
= control target key start
LH: loop header
LB: loop body
LE: loop exit
PB: predicated region body
PF: predicated region fallthrough
CT: control target
= control target key end

     0   :  { %v232_v1 = vmov 0.0   ;;  %vm233_vm0 = vmmov 0   ;;  %s299_s0 = inlined_call_operand.vmem [shape: bf16[16,128], index: 0, kind: input, shape index: {}]   ;;  %s300_s1 = inlined_call_operand.vmem [shape: bf16[128,64], index: 1, kind: input, shape index: {}]   ;;  %s301_s2 = inlined_call_operand.vmem [shape: f32[1,64], index: 2, kind: input, shape index: {}]   ;;  %s302_s3 = inlined_call_operand.hbm [shape: f32[16,64], index: 3, kind: output, shape index: {}]  }
   0x1   :  { %v199_v0 = vld [vmem:[%s300_s1] sm:$0xff]   ;;  %174 = vmatprep.subr.bf16.mxu0 %v232_v1  ;;  %v200_v2 = vld [vmem:[%s300_s1 + $0x8] sm:$0xff]   ;;  %190 = vmatprep.mubr.msk.bf16.mxu0 %vm233_vm0, %v232_v1  ;;  %v201_v3 = vld [vmem:[%s300_s1 + $0x10] sm:$0xff]  }
   0x2   :  { %175 = vmatpush3.bf16.msra.mxu0 %v199_v0 }
   0x3   :  { %176 = vmatprep.subr.bf16.mxu0 %v232_v1 }
   0x6   :  { %177 = vmatpush3.bf16.msra.mxu0 %v200_v2 }
   0x7   :  { %178 = vmatprep.subr.bf16.mxu0 %v232_v1 }
   0x8   :  { %8 = vsyncpa [#allocation3], 0  ;;  %v202_v4 = vld [vmem:[%s300_s1 + $0x18] sm:$0xff]   ;;  %v203_v5 = vld [vmem:[%s300_s1 + $0x20] sm:$0xff]   ;;  %s234_s5 = smov [#allocation2]   ;;  %vm136_vm1 = vcmask 523264  }
   0x9   :  { %v204_v6 = vld [vmem:[%s300_s1 + $0x28] sm:$0xff]   ;;  %v205_v7 = vld [vmem:[%s300_s1 + $0x30] sm:$0xff]   ;;  %v206_v8 = vld [vmem:[%s300_s1 + $0x38] sm:$0xff]   ;;  %s144_s6 = sshll.u32 %s234_s5, 4  ;;  %s145_s6 = int_to_ptr.vmem [resolvable:$true] %s144_s6 }
   0xa   :  { %179 = vmatpush3.bf16.msra.mxu0 %v201_v3  ;;  %v207_v9 = vld [vmem:[%s299_s0] sm:$0xff]   ;;  %s208_s1 = scalar_lea.vmem %s145_s6, 256  ;;  %p213_p1 = scmp.lt.s32.totalorder %s145_s6, %s145_s6 }
   0xb   :  { %180 = vmatprep.subr.bf16.mxu0 %v232_v1  ;;  %v155_v10 = vld [vmem:[%s301_s2] ss:$0 sm:$0xff]  ;;  %p209_p0 = scmp.ne.s32.totalorder %s145_s6, %s208_s1  ;;  %p214_p2 = scmp.lt.s32.totalorder %s208_s1, %s208_s1 }
   0xd   :  { %p215_p3 = por %p214_p2, %p213_p1 }
   0xe   :  { %181 = vmatpush3.bf16.msra.mxu0 %v202_v4 }
   0xf   :  { %182 = vmatprep.subr.bf16.mxu0 %v232_v1  ;;  %p216_p4 = pnand %p215_p3, %p209_p0 }
  0x12   :  { %183 = vmatpush3.bf16.msra.mxu0 %v203_v5 }
  0x13   :  { %184 = vmatprep.subr.bf16.mxu0 %v232_v1 }
  0x16   :  { %185 = vmatpush3.bf16.msra.mxu0 %v204_v6 }
  0x17   :  { %186 = vmatprep.subr.bf16.mxu0 %v232_v1 }
  0x1a   :  { %187 = vmatpush3.bf16.msra.mxu0 %v205_v7 }
  0x1b   :  { %188 = vmatprep.subr.bf16.mxu0 %v232_v1 }
  0x1e   :  { %189 = vmatpush3.bf16.msra.mxu0 %v206_v8 }
  0x21   :  { %191 = vmatmul.mubr.bf16.vlgmr.msra.gmra.mrb[0].mxu0 %v207_v9 }
  0xf4   :  { %v129_v11 = vpop.f32.mrb[0].mxu0 }
  0xf5   :  { %v130_v12 = vadd.f32 %v155_v10, %v129_v11  ;;  %v192_v13 = vpop.f32.mrb[1].mxu0 }
  0xf6   :  { %v132_v14 = vpop.f32.mrb[2].mxu0 }
  0xf7   :  { %137 = vst.msk [vmem:[#allocation2] sm:$0xff] %vm136_vm1, %v130_v12  ;;  %v133_v15 = vadd.f32 %v155_v10, %v132_v14  ;;  %v193_v16 = vpop.f32.mrb[3].mxu0 }
  0xf9   :  { %138 = vst.msk [vmem:[#allocation2 + $0x8] sm:$0xff] %vm136_vm1, %v133_v15 }
  0xfa   :  { %219 = shalt.err (!%p216_p4)
}
  0xfb   :  { %s220_s7 = scalar_lea.hbm %s302_s3, 256 }
  0xfc   :  { %p221_p5 = scmp.ne.s32.totalorder %s302_s3, %s220_s7  ;;  %p224_p6 = scmp.lt.u32.totalorder %s220_s7, %s302_s3 }
  0xfe   :  { %p226_p7 = pnand %p224_p6, %p221_p5 }
 0x100   :  { %229 = shalt.err (!%p226_p7)
}
 0x101   :  { %s235_s12 = smov 128   ;;  %s236_s13 = smov 8  }
 0x102   :  { %150 = dma.vmem_to_hbm [thread:$0]  %s145_s6, 256, %s302_s3, [#allocation3], %s235_s12, %s235_s12, %s236_s13  }
 0x103   :  { %230 = dma.done.wait [#allocation3], 256  }
 0x104   :  { %231 = vsyncadd [#allocation3], 4294967040 }
 0x105   :  { %154 = vsyncpa [#allocation3], 1 }

// kernel: rnn_decoder_forward.2
= control target key start
LH: loop header
LB: loop body
LE: loop exit
PB: predicated region body
PF: predicated region fallthrough
CT: control target
= control target key end

     0   :  { %v5456_v1 = vmov 0   ;;  %vm131_vm0 = vcmask 261120   ;;  %v51_v47 = vlaneseq  ;;  %s5442_s3 = inlined_call_operand.vmem [shape: bf16[32,512], index: 3, kind: input, shape index: {}]   ;;  %s5443_s0 = inlined_call_operand.vmem [shape: bf16[64,32], index: 0, kind: input, shape index: {}]   ;;  %s5444_s4 = inlined_call_operand.vmem [shape: bf16[128,512], index: 4, kind: input, shape index: {}]   ;;  %s5445_s1 = inlined_call_operand.vmem [shape: f32[2,8,128], index: 1, kind: input, shape index: {}]   ;;  %s5446_s5 = inlined_call_operand.vmem [shape: f32[1,512], index: 5, kind: input, shape index: {}]   ;;  %s5447_s2 = inlined_call_operand.vmem [shape: f32[2,8,128], index: 2, kind: input, shape index: {}]   ;;  %s5448_s6 = inlined_call_operand.vmem [shape: bf16[128,512], index: 6, kind: input, shape index: {}]   ;;  %s5449_s7 = inlined_call_operand.vmem [shape: bf16[128,512], index: 7, kind: input, shape index: {}]   ;;  %s5450_s8 = inlined_call_operand.vmem [shape: f32[1,512], index: 8, kind: input, shape index: {}]   ;;  %s5451_s9 = inlined_call_operand.vmem [shape: f32[64,128], index: 9, kind: output, shape index: {}]  }
   0x1   :  { %v3195_v0 = vld [vmem:[%s5442_s3 + $0x4] ss:$16 sps:$4 sm:$0xff]   ;;  %176 = vmatprep.mubr.bf16.mxu0 %v5456_v1  ;;  %249 = vmatprep.mubr.bf16.mxu1 %v5456_v1  ;;  %v3197_v2 = vld [vmem:[%s5442_s3 + $0xc] ss:$16 sps:$4 sm:$0xff]   ;;  %v3199_v3 = vld [vmem:[%s5442_s3] ss:$16 sps:$4 sm:$0xff]  }
   0x2   :  { %144 = vmatprep.subr.bf16.mxu0 %v3195_v0  ;;  %v3200_v4 = vld [vmem:[%s5442_s3 + $0x8] ss:$16 sps:$4 sm:$0xff]   ;;  %217 = vmatprep.subr.bf16.mxu1 %v3197_v2  ;;  %v3201_v5 = vld [vmem:[%s5442_s3 + $0x24] ss:$16 sps:$4 sm:$0xff]   ;;  %v3203_v6 = vld [vmem:[%s5442_s3 + $0x2c] ss:$16 sps:$4 sm:$0xff]  }
   0x3   :  { %145 = vmatpush1.bf16.msra.mxu0 %v3199_v3  ;;  %218 = vmatpush1.bf16.msra.mxu1 %v3200_v4  ;;  %v3205_v7 = vld [vmem:[%s5442_s3 + $0x20] ss:$16 sps:$4 sm:$0xff]   ;;  %v3206_v8 = vld [vmem:[%s5442_s3 + $0x28] ss:$16 sps:$4 sm:$0xff]   ;;  %v3758_v10 = vld [vmem:[%s5444_s4 + $0x4] ss:$16 sps:$4 sm:$0xff]  }
   0x4   :  { %146 = vmatprep.subr.bf16.mxu0 %v3201_v5  ;;  %219 = vmatprep.subr.bf16.mxu1 %v3203_v6  ;;  %v3207_v9 = vld [vmem:[%s5443_s0] sm:$0xff]   ;;  %v3763_v11 = vld [vmem:[%s5444_s4 + $0xc] ss:$16 sps:$4 sm:$0xff]   ;;  %v3773_v13 = vld [vmem:[%s5444_s4 + $0x8] ss:$16 sps:$4 sm:$0xff]   ;;  %v4011_v48 = vshrl.u32 %v51_v47, 7 }
   0x5   :  { %v3768_v12 = vld [vmem:[%s5444_s4] ss:$16 sps:$4 sm:$0xff]   ;;  %v3779_v14 = vld [vmem:[%s5444_s4 + $0x24] ss:$16 sps:$4 sm:$0xff]   ;;  %v3785_v15 = vld [vmem:[%s5444_s4 + $0x2c] ss:$16 sps:$4 sm:$0xff]  }
   0x6   :  { %v3792_v16 = vld [vmem:[%s5444_s4 + $0x20] ss:$16 sps:$4 sm:$0xff]   ;;  %v3799_v17 = vld [vmem:[%s5444_s4 + $0x28] ss:$16 sps:$4 sm:$0xff]   ;;  %v3806_v18 = vld [vmem:[%s5444_s4 + $0x44] ss:$16 sps:$4 sm:$0xff]  }
   0x7   :  { %147 = vmatpush1.bf16.msra.mxu0 %v3205_v7  ;;  %220 = vmatpush1.bf16.msra.mxu1 %v3206_v8  ;;  %v3220_v19 = vld [vmem:[%s5443_s0 + $0x8] sm:$0xff]   ;;  %v3821_v21 = vld [vmem:[%s5444_s4 + $0x40] ss:$16 sps:$4 sm:$0xff]   ;;  %v3835_v23 = vld [vmem:[%s5444_s4 + $0x64] ss:$16 sps:$4 sm:$0xff]   ;;  %5460 = vst [vmem:[#allocation3_spill] sm:$0xff] %v4011_v48 }
   0x8   :  { %524 = vmatprep.subr.bf16.mxu0 %v3758_v10  ;;  %565 = vmatprep.subr.bf16.mxu1 %v3763_v11  ;;  %v3816_v20 = vld [vmem:[%s5444_s4 + $0x4c] ss:$16 sps:$4 sm:$0xff]   ;;  %v3828_v22 = vld [vmem:[%s5444_s4 + $0x48] ss:$16 sps:$4 sm:$0xff]   ;;  %v3847_v25 = vld [vmem:[%s5444_s4 + $0x60] ss:$16 sps:$4 sm:$0xff]  }
   0x9   :  { %v3840_v24 = vld [vmem:[%s5444_s4 + $0x6c] ss:$16 sps:$4 sm:$0xff]   ;;  %v3854_v26 = vld [vmem:[%s5444_s4 + $0x68] ss:$16 sps:$4 sm:$0xff]   ;;  %v3861_v27 = vld [vmem:[%s5444_s4 + $0x84] ss:$16 sps:$4 sm:$0xff]  }
   0xa   :  { %3026 = vmatmul.mubr.msk.bf16.vlgmr.msra.gmra.mrb[0].mxu0 %vm131_vm0, %v3207_v9  ;;  %3030 = vmatmul.mubr.msk.bf16.vlgmr.msra.gmra.mrb[0].mxu1 %vm131_vm0, %v3207_v9  ;;  %v3866_v28 = vld [vmem:[%s5444_s4 + $0x8c] ss:$16 sps:$4 sm:$0xff]   ;;  %v3233_v29 = vld [vmem:[%s5443_s0 + $0x10] sm:$0xff]   ;;  %v3881_v31 = vld [vmem:[%s5444_s4 + $0x88] ss:$16 sps:$4 sm:$0xff]   ;;  %v5454_v49 = vsub.s32 2, %v4011_v48 }
   0xb   :  { %525 = vmatpush1.bf16.msra.mxu0 %v3768_v12  ;;  %566 = vmatpush1.bf16.msra.mxu1 %v3773_v13  ;;  %v3876_v30 = vld [vmem:[%s5444_s4 + $0x80] ss:$16 sps:$4 sm:$0xff]   ;;  %v3888_v32 = vld [vmem:[%s5444_s4 + $0xa4] ss:$16 sps:$4 sm:$0xff]   ;;  %v3895_v33 = vld [vmem:[%s5444_s4 + $0xac] ss:$16 sps:$4 sm:$0xff]  }
   0xc   :  { %526 = vmatprep.subr.bf16.mxu0 %v3779_v14  ;;  %567 = vmatprep.subr.bf16.mxu1 %v3785_v15  ;;  %v3902_v34 = vld [vmem:[%s5444_s4 + $0xa0] ss:$16 sps:$4 sm:$0xff]   ;;  %v3907_v35 = vld [vmem:[%s5444_s4 + $0xa8] ss:$16 sps:$4 sm:$0xff]   ;;  %v3914_v36 = vld [vmem:[%s5444_s4 + $0xc4] ss:$16 sps:$4 sm:$0xff]  }
   0xd   :  { %186 = vmatprep.mubr.bf16.mxu0 %v5456_v1  ;;  %259 = vmatprep.mubr.bf16.mxu1 %v5456_v1  ;;  %v3921_v37 = vld [vmem:[%s5444_s4 + $0xcc] ss:$16 sps:$4 sm:$0xff]   ;;  %v3933_v39 = vld [vmem:[%s5444_s4 + $0xc0] ss:$16 sps:$4 sm:$0xff]   ;;  %v3938_v40 = vld [vmem:[%s5444_s4 + $0xc8] ss:$16 sps:$4 sm:$0xff]  }
   0xe   :  { %v3246_v38 = vld [vmem:[%s5443_s0 + $0x18] sm:$0xff]   ;;  %v3945_v41 = vld [vmem:[%s5444_s4 + $0xe4] ss:$16 sps:$4 sm:$0xff]   ;;  %v3959_v43 = vld [vmem:[%s5444_s4 + $0xe0] ss:$16 sps:$4 sm:$0xff]   ;;  %v5452_v50 = vsub.s32 3, %v4011_v48 }
   0xf   :  { %527 = vmatpush1.bf16.msra.mxu0 %v3792_v16  ;;  %568 = vmatpush1.bf16.msra.mxu1 %v3799_v17  ;;  %v3950_v42 = vld [vmem:[%s5444_s4 + $0xec] ss:$16 sps:$4 sm:$0xff]   ;;  %v3964_v44 = vld [vmem:[%s5444_s4 + $0xe8] ss:$16 sps:$4 sm:$0xff]   ;;  %v354_v45 = vld [vmem:[%s5445_s1] sm:$0xff]  ;;  %v5455_v51 = vsub.s32 0, %v4011_v48 }
  0x10   :  { %528 = vmatprep.subr.bf16.mxu0 %v3806_v18  ;;  %569 = vmatprep.subr.bf16.mxu1 %v3816_v20  ;;  %v363_v46 = vpack.c.bf16 %v354_v45, %v354_v45  ;;  %v49_v52 = vld [vmem:[%s5446_s5] sm:$0xf]  ;;  %v5453_v53 = vsub.s32 1, %v4011_v48 }
  0x11   :  { %v4022_v54 = vrot.slane %v49_v52, %v5454_v49  ;;  %v4030_v57 = vrot.slane %v49_v52, %v5452_v50  ;;  %v54_v58 = vrot.slane %v49_v52, %v5455_v51 }
  0x12   :  { %3027 = vmatmul.mubr.msk.bf16.gmra.mrb[4].mxu0 %vm131_vm0, %v3220_v19  ;;  %3031 = vmatmul.mubr.msk.bf16.gmra.mrb[4].mxu1 %vm131_vm0, %v3220_v19  ;;  %v58_v61 = vrot.slane %v49_v52, %v5453_v53 }
  0x13   :  { %529 = vmatpush1.bf16.msra.mxu0 %v3821_v21  ;;  %570 = vmatpush1.bf16.msra.mxu1 %v3828_v22 }
  0x14   :  { %530 = vmatprep.subr.bf16.mxu0 %v3835_v23  ;;  %571 = vmatprep.subr.bf16.mxu1 %v3840_v24 }
  0x15   :  { %196 = vmatprep.mubr.bf16.mxu0 %v5456_v1  ;;  %269 = vmatprep.mubr.bf16.mxu1 %v5456_v1 }
  0x17   :  { %531 = vmatpush1.bf16.msra.mxu0 %v3847_v25  ;;  %572 = vmatpush1.bf16.msra.mxu1 %v3854_v26 }
  0x18   :  { %532 = vmatprep.subr.bf16.mxu0 %v3861_v27  ;;  %573 = vmatprep.subr.bf16.mxu1 %v3866_v28 }
  0x1a   :  { %3028 = vmatmul.mubr.msk.bf16.gmra.mrb[8].mxu0 %vm131_vm0, %v3233_v29  ;;  %3032 = vmatmul.mubr.msk.bf16.gmra.mrb[8].mxu1 %vm131_vm0, %v3233_v29 }
  0x1b   :  { %533 = vmatpush1.bf16.msra.mxu0 %v3876_v30  ;;  %574 = vmatpush1.bf16.msra.mxu1 %v3881_v31 }
  0x1c   :  { %534 = vmatprep.subr.bf16.mxu0 %v3888_v32  ;;  %575 = vmatprep.subr.bf16.mxu1 %v3895_v33 }
  0x1d   :  { %206 = vmatprep.mubr.bf16.mxu0 %v5456_v1  ;;  %279 = vmatprep.mubr.bf16.mxu1 %v5456_v1 }
  0x1f   :  { %535 = vmatpush1.bf16.msra.mxu0 %v3902_v34  ;;  %576 = vmatpush1.bf16.msra.mxu1 %v3907_v35 }
  0x20   :  { %536 = vmatprep.subr.bf16.mxu0 %v3914_v36  ;;  %577 = vmatprep.subr.bf16.mxu1 %v3921_v37 }
  0x22   :  { %3029 = vmatmul.mubr.msk.bf16.gmra.mrb[12].mxu0 %vm131_vm0, %v3246_v38  ;;  %3033 = vmatmul.mubr.msk.bf16.gmra.mrb[12].mxu1 %vm131_vm0, %v3246_v38 }
  0x23   :  { %537 = vmatpush1.bf16.msra.mxu0 %v3933_v39  ;;  %578 = vmatpush1.bf16.msra.mxu1 %v3938_v40 }
  0x24   :  { %538 = vmatprep.subr.bf16.mxu0 %v3945_v41  ;;  %579 = vmatprep.subr.bf16.mxu1 %v3950_v42 }
  0x25   :  { %556 = vmatprep.mubr.bf16.mxu0 %v5456_v1  ;;  %597 = vmatprep.mubr.bf16.mxu1 %v5456_v1 }
  0x27   :  { %539 = vmatpush1.bf16.msra.mxu0 %v3959_v43  ;;  %580 = vmatpush1.bf16.msra.mxu1 %v3964_v44 }
  0x28   :  { %643 = vmatprep.subr.bf16.mxu0 %v3758_v10  ;;  %684 = vmatprep.subr.bf16.mxu1 %v3763_v11 }
  0x2a   :  { %557 = vmatmul.mubr.bf16.vlgmr.msra.gmra.mrb[16].mxu0 %v363_v46  ;;  %598 = vmatmul.mubr.bf16.vlgmr.msra.gmra.mrb[16].mxu1 %v363_v46 }
  0x2b   :  { %644 = vmatpush1.bf16.msra.mxu0 %v3768_v12  ;;  %685 = vmatpush1.bf16.msra.mxu1 %v3773_v13 }
  0x2c   :  { %645 = vmatprep.subr.bf16.mxu0 %v3779_v14  ;;  %686 = vmatprep.subr.bf16.mxu1 %v3785_v15 }
  0x2d   :  { %675 = vmatprep.mubr.bf16.mxu0 %v5456_v1  ;;  %716 = vmatprep.mubr.bf16.mxu1 %v5456_v1 }
  0x2f   :  { %646 = vmatpush1.bf16.msra.mxu0 %v3792_v16  ;;  %687 = vmatpush1.bf16.msra.mxu1 %v3799_v17 }
  0x30   :  { %647 = vmatprep.subr.bf16.mxu0 %v3806_v18  ;;  %688 = vmatprep.subr.bf16.mxu1 %v3816_v20 }
  0x33   :  { %648 = vmatpush1.bf16.msra.mxu0 %v3821_v21  ;;  %689 = vmatpush1.bf16.msra.mxu1 %v3828_v22 }
  0x34   :  { %649 = vmatprep.subr.bf16.mxu0 %v3835_v23  ;;  %690 = vmatprep.subr.bf16.mxu1 %v3840_v24 }
  0x37   :  { %650 = vmatpush1.bf16.msra.mxu0 %v3847_v25  ;;  %691 = vmatpush1.bf16.msra.mxu1 %v3854_v26 }
  0x38   :  { %651 = vmatprep.subr.bf16.mxu0 %v3861_v27  ;;  %692 = vmatprep.subr.bf16.mxu1 %v3866_v28 }
  0x3b   :  { %652 = vmatpush1.bf16.msra.mxu0 %v3876_v30  ;;  %693 = vmatpush1.bf16.msra.mxu1 %v3881_v31 }
  0x3c   :  { %653 = vmatprep.subr.bf16.mxu0 %v3888_v32  ;;  %694 = vmatprep.subr.bf16.mxu1 %v3895_v33 }
  0x3f   :  { %654 = vmatpush1.bf16.msra.mxu0 %v3902_v34  ;;  %695 = vmatpush1.bf16.msra.mxu1 %v3907_v35 }
  0x40   :  { %655 = vmatprep.subr.bf16.mxu0 %v3914_v36  ;;  %696 = vmatprep.subr.bf16.mxu1 %v3921_v37 }
  0x43   :  { %656 = vmatpush1.bf16.msra.mxu0 %v3933_v39  ;;  %697 = vmatpush1.bf16.msra.mxu1 %v3938_v40 }
  0x44   :  { %657 = vmatprep.subr.bf16.mxu0 %v3945_v41  ;;  %698 = vmatprep.subr.bf16.mxu1 %v3950_v42 }
  0x47   :  { %658 = vmatpush1.bf16.msra.mxu0 %v3959_v43  ;;  %699 = vmatpush1.bf16.msra.mxu1 %v3964_v44 }
  0x48   :  { %763 = vmatprep.subr.bf16.mxu0 %v3758_v10  ;;  %804 = vmatprep.subr.bf16.mxu1 %v3763_v11 }
  0xdd   :  { %v4024_v55 = vpop.f32.mrb[0].mxu0  ;;  %v4026_v56 = vpop.f32.mrb[0].mxu1 }
  0xde   :  { %v180_v59 = vpop.f32.mrb[1].mxu0  ;;  %v253_v60 = vpop.f32.mrb[1].mxu1 }
  0xdf   :  { %v182_v62 = vpop.f32.mrb[2].mxu0  ;;  %v255_v63 = vpop.f32.mrb[2].mxu1 }
  0xe0   :  { %v4036_v0 = vadd.f32 %v182_v62, %v54_v58  ;;  %v184_v2 = vpop.f32.mrb[3].mxu0  ;;  %v4039_v3 = vadd.f32 %v255_v63, %v4022_v54  ;;  %v257_v4 = vpop.f32.mrb[3].mxu1 }
  0xe1   :  { %v4041_v5 = vadd.f32 %v184_v2, %v58_v61  ;;  %v4044_v6 = vadd.f32 %v257_v4, %v4030_v57 }
  0xe5   :  { %v188_v7 = vpop.f32.mrb[4].mxu0  ;;  %v261_v8 = vpop.f32.mrb[4].mxu1 }
  0xe6   :  { %v4046_v9 = vadd.f32 %v188_v7, %v54_v58  ;;  %v190_v19 = vpop.f32.mrb[5].mxu0  ;;  %v4049_v29 = vadd.f32 %v261_v8, %v4022_v54  ;;  %v263_v38 = vpop.f32.mrb[5].mxu1 }
  0xe7   :  { %v4051_v45 = vadd.f32 %v190_v19, %v58_v61  ;;  %v192_v46 = vpop.f32.mrb[6].mxu0  ;;  %v4054_v47 = vadd.f32 %v263_v38, %v4030_v57  ;;  %v265_v52 = vpop.f32.mrb[6].mxu1 }
  0xe8   :  { %v4056_v62 = vadd.f32 %v192_v46, %v54_v58  ;;  %v194_v63 = vpop.f32.mrb[7].mxu0  ;;  %v4059_v2 = vadd.f32 %v265_v52, %v4022_v54  ;;  %v267_v4 = vpop.f32.mrb[7].mxu1 }
  0xe9   :  { %5461 = vst [vmem:[#allocation4_spill] sm:$0xff] %v4054_v47  ;;  %v4061_v7 = vadd.f32 %v194_v63, %v58_v61  ;;  %v4064_v8 = vadd.f32 %v267_v4, %v4030_v57 }
  0xea   :  { %5462 = vst [vmem:[#allocation5_spill] sm:$0xff] %v4056_v62  ;;  %5463 = vst [vmem:[#allocation6_spill] sm:$0xff] %v4059_v2 }
  0xeb   :  { %5464 = vst [vmem:[#allocation7_spill] sm:$0xff] %v4061_v7  ;;  %5465 = vst [vmem:[#allocation8_spill] sm:$0xff] %v4064_v8 }
  0xed   :  { %v198_v50 = vpop.f32.mrb[8].mxu0  ;;  %v271_v19 = vpop.f32.mrb[8].mxu1 }
  0xee   :  { %v4066_v53 = vadd.f32 %v198_v50, %v54_v58  ;;  %v200_v49 = vpop.f32.mrb[9].mxu0  ;;  %v4069_v38 = vadd.f32 %v271_v19, %v4022_v54  ;;  %v273_v46 = vpop.f32.mrb[9].mxu1 }
  0xef   :  { %v4071_v51 = vadd.f32 %v200_v49, %v58_v61  ;;  %v202_v1 = vpop.f32.mrb[10].mxu0  ;;  %v4074_v52 = vadd.f32 %v273_v46, %v4030_v57  ;;  %v275_v63 = vpop.f32.mrb[10].mxu1 }
  0xf0   :  { %5466 = vst [vmem:[#allocation9_spill] sm:$0xff] %v4066_v53  ;;  %5467 = vst [vmem:[#allocation10_spill] sm:$0xff] %v4069_v38  ;;  %v4076_v48 = vadd.f32 %v202_v1, %v54_v58  ;;  %v204_v4 = vpop.f32.mrb[11].mxu0  ;;  %v4079_v8 = vadd.f32 %v275_v63, %v4022_v54  ;;  %v277_v50 = vpop.f32.mrb[11].mxu1 }
  0xf1   :  { %5468 = vst [vmem:[#allocation11_spill] sm:$0xff] %v4071_v51  ;;  %5469 = vst [vmem:[#allocation12_spill] sm:$0xff] %v4074_v52  ;;  %v4081_v53 = vadd.f32 %v204_v4, %v58_v61  ;;  %v4084_v19 = vadd.f32 %v277_v50, %v4030_v57 }
  0xf2   :  { %5470 = vst [vmem:[#allocation13_spill] sm:$0xff] %v4076_v48  ;;  %5471 = vst [vmem:[#allocation14_spill] sm:$0xff] %v4079_v8 }
  0xf3   :  { %5472 = vst [vmem:[#allocation15_spill] sm:$0xff] %v4081_v53  ;;  %5473 = vst [vmem:[#allocation16_spill] sm:$0xff] %v4084_v19 }
  0xf5   :  { %v208_v38 = vpop.f32.mrb[12].mxu0  ;;  %v281_v49 = vpop.f32.mrb[12].mxu1 }
  0xf6   :  { %v4086_v51 = vadd.f32 %v208_v38, %v54_v58  ;;  %v210_v7 = vpop.f32.mrb[13].mxu0  ;;  %v4089_v46 = vadd.f32 %v281_v49, %v4022_v54  ;;  %v283_v1 = vpop.f32.mrb[13].mxu1 }
  0xf7   :  { %v4091_v48 = vadd.f32 %v210_v7, %v58_v61  ;;  %v212_v52 = vpop.f32.mrb[14].mxu0  ;;  %v4094_v63 = vadd.f32 %v283_v1, %v4030_v57  ;;  %v285_v4 = vpop.f32.mrb[14].mxu1  ;;  %v179_v7 = vadd.f32 %v4024_v55, %v54_v58  ;;  %v181_v1 = vadd.f32 %v180_v59, %v58_v61 }
  0xf8   :  { %5474 = vst [vmem:[#allocation17_spill] sm:$0xff] %v4086_v51  ;;  %5475 = vst [vmem:[#allocation18_spill] sm:$0xff] %v4089_v46  ;;  %v4096_v53 = vadd.f32 %v212_v52, %v54_v58  ;;  %v214_v50 = vpop.f32.mrb[15].mxu0  ;;  %v4099_v19 = vadd.f32 %v285_v4, %v4022_v54  ;;  %v287_v38 = vpop.f32.mrb[15].mxu1 }
  0xf9   :  { %5476 = vst [vmem:[#allocation19_spill] sm:$0xff] %v4091_v48  ;;  %5477 = vst [vmem:[#allocation20_spill] sm:$0xff] %v4094_v63  ;;  %v4101_v51 = vadd.f32 %v214_v50, %v58_v61  ;;  %v4104_v49 = vadd.f32 %v287_v38, %v4030_v57  ;;  %v252_v48 = vadd.f32 %v4026_v56, %v4022_v54 }
  0xfa   :  { %5478 = vst [vmem:[#allocation21_spill] sm:$0xff] %v4096_v53  ;;  %5479 = vst [vmem:[#allocation22_spill] sm:$0xff] %v4099_v19  ;;  %v254_v63 = vadd.f32 %v253_v60, %v4030_v57 }
  0xfb   :  { %5480 = vst [vmem:[#allocation23_spill] sm:$0xff] %v4101_v51  ;;  %5481 = vst [vmem:[#allocation24_spill] sm:$0xff] %v4104_v49 }
  0xfd   :  { %v558_v52 = vpop.f32.mrb[16].mxu0  ;;  %v599_v53 = vpop.f32.mrb[16].mxu1 }
  0xfe   :  { %v606_v46 = vadd.f32 %v558_v52, %v179_v7  ;;  %v608_v8 = vadd.f32 %v599_v53, %v252_v48  ;;  %v560_v4 = vpop.f32.mrb[17].mxu0  ;;  %v601_v19 = vpop.f32.mrb[17].mxu1  ;;  %v5482_v7 = vmov 0  }
  0xff   :  { %v607_v2 = vadd.f32 %v560_v4, %v181_v1  ;;  %v609_v50 = vadd.f32 %v601_v19, %v254_v63  ;;  %v562_v51 = vpop.f32.mrb[18].mxu0  ;;  %v603_v62 = vpop.f32.mrb[18].mxu1 }
 0x100   :  { %v3066_v38 = vmul.f32 -1.442695, %v606_v46  ;;  %v563_v49 = vpop.f32.mrb[19].mxu0  ;;  %v604_v47 = vpop.f32.mrb[19].mxu1  ;;  %v355_v51 = vld [vmem:[%s5447_s2] sm:$0xff] }
 0x101   :  { %v3067_v55 = vmul.f32 -1.442695, %v607_v2  ;;  %v3068_v54 = vmul.f32 -1.442695, %v609_v50 }
 0x102   :  { %3355 = vpow2.f32 %v3066_v38 }
 0x103   :  { %3357 = vpow2.f32 %v3067_v55 }
 0x104   :  { %3359 = vpow2.f32 %v3068_v54 }
 0x105   :  { %3361 = vtanh.f32 %v608_v8 }
 0x10c   :  { %v3356_v56 = vpop.eup %3355 }
 0x10d   :  { %v3358_v58 = vpop.eup %3357  ;;  %v613_v57 = vadd.f32 1.0, %v3356_v56 }
 0x10e   :  { %v619_v59 = vadd.f32 1.0, %v3358_v58  ;;  %v3360_v48 = vpop.eup %3359 }
 0x10f   :  { %3363 = vrcp.f32 %v613_v57  ;;  %v3362_v53 = vpop.eup %3361  ;;  %v626_v62 = vadd.f32 1.0, %v3360_v48 }
 0x110   :  { %3365 = vrcp.f32 %v619_v59 }
 0x111   :  { %3367 = vrcp.f32 %v626_v62 }
 0x119   :  { %v3364_v60 = vpop.eup %3363 }
 0x11a   :  { %v3366_v61 = vpop.eup %3365  ;;  %v630_v47 = vmul.f32 %v3364_v60, %v3362_v53 }
 0x11b   :  { %v629_v2 = vmul.f32 %v3366_v61, %v355_v51  ;;  %v3368_v8 = vpop.eup %3367 }
 0x11d   :  { %v4113_v19 = vadd.f32 %v630_v47, %v629_v2 }
 0x11f   :  { %3369 = vtanh.f32 %v4113_v19 }
 0x129   :  { %v3370_v46 = vpop.eup %3369 }
 0x12a   :  { %v4116_v63 = vmul.f32 %v3370_v46, %v3368_v8 }
 0x12c   :  { %v642_v49 = vpack.c.bf16 %v4116_v63, %v4116_v63 }
 0x12e   :  { %676 = vmatmul.mubr.bf16.vlgmr.msra.gmra.mrb[20].mxu0 %v642_v49  ;;  %717 = vmatmul.mubr.bf16.vlgmr.msra.gmra.mrb[20].mxu1 %v642_v49 }
 0x12f   :  { %764 = vmatpush1.bf16.msra.mxu0 %v3768_v12  ;;  %805 = vmatpush1.bf16.msra.mxu1 %v3773_v13 }
 0x130   :  { %765 = vmatprep.subr.bf16.mxu0 %v3779_v14  ;;  %806 = vmatprep.subr.bf16.mxu1 %v3785_v15 }
 0x131   :  { %795 = vmatprep.mubr.bf16.mxu0 %v5482_v7  ;;  %836 = vmatprep.mubr.bf16.mxu1 %v5482_v7 }
 0x133   :  { %766 = vmatpush1.bf16.msra.mxu0 %v3792_v16  ;;  %807 = vmatpush1.bf16.msra.mxu1 %v3799_v17 }
 0x134   :  { %767 = vmatprep.subr.bf16.mxu0 %v3806_v18  ;;  %808 = vmatprep.subr.bf16.mxu1 %v3816_v20 }
 0x137   :  { %768 = vmatpush1.bf16.msra.mxu0 %v3821_v21  ;;  %809 = vmatpush1.bf16.msra.mxu1 %v3828_v22 }
 0x138   :  { %769 = vmatprep.subr.bf16.mxu0 %v3835_v23  ;;  %810 = vmatprep.subr.bf16.mxu1 %v3840_v24 }
 0x13b   :  { %770 = vmatpush1.bf16.msra.mxu0 %v3847_v25  ;;  %811 = vmatpush1.bf16.msra.mxu1 %v3854_v26 }
 0x13c   :  { %771 = vmatprep.subr.bf16.mxu0 %v3861_v27  ;;  %812 = vmatprep.subr.bf16.mxu1 %v3866_v28 }
 0x13f   :  { %772 = vmatpush1.bf16.msra.mxu0 %v3876_v30  ;;  %813 = vmatpush1.bf16.msra.mxu1 %v3881_v31 }
 0x140   :  { %773 = vmatprep.subr.bf16.mxu0 %v3888_v32  ;;  %814 = vmatprep.subr.bf16.mxu1 %v3895_v33 }
 0x143   :  { %774 = vmatpush1.bf16.msra.mxu0 %v3902_v34  ;;  %815 = vmatpush1.bf16.msra.mxu1 %v3907_v35 }
 0x144   :  { %775 = vmatprep.subr.bf16.mxu0 %v3914_v36  ;;  %816 = vmatprep.subr.bf16.mxu1 %v3921_v37 }
 0x147   :  { %776 = vmatpush1.bf16.msra.mxu0 %v3933_v39  ;;  %817 = vmatpush1.bf16.msra.mxu1 %v3938_v40 }
 0x148   :  { %777 = vmatprep.subr.bf16.mxu0 %v3945_v41  ;;  %818 = vmatprep.subr.bf16.mxu1 %v3950_v42 }
 0x14b   :  { %778 = vmatpush1.bf16.msra.mxu0 %v3959_v43  ;;  %819 = vmatpush1.bf16.msra.mxu1 %v3964_v44 }
 0x14c   :  { %883 = vmatprep.subr.bf16.mxu0 %v3758_v10  ;;  %924 = vmatprep.subr.bf16.mxu1 %v3763_v11 }
 0x201   :  { %v677_v1 = vpop.f32.mrb[20].mxu0  ;;  %v718_v52 = vpop.f32.mrb[20].mxu1 }
 0x202   :  { %v725_v4 = vadd.f32 %v677_v1, %v4036_v0  ;;  %v727_v50 = vadd.f32 %v718_v52, %v4039_v3  ;;  %v679_v38 = vpop.f32.mrb[21].mxu0  ;;  %v720_v55 = vpop.f32.mrb[21].mxu1 }
 0x203   :  { %v726_v54 = vadd.f32 %v679_v38, %v4041_v5  ;;  %v728_v56 = vadd.f32 %v720_v55, %v4044_v6  ;;  %v681_v58 = vpop.f32.mrb[22].mxu0  ;;  %v722_v57 = vpop.f32.mrb[22].mxu1 }
 0x204   :  { %v3069_v59 = vmul.f32 -1.442695, %v725_v4  ;;  %v682_v48 = vpop.f32.mrb[23].mxu0  ;;  %v723_v53 = vpop.f32.mrb[23].mxu1 }
 0x205   :  { %v3070_v51 = vmul.f32 -1.442695, %v726_v54  ;;  %v3071_v60 = vmul.f32 -1.442695, %v728_v56  ;;  %v5483_v48 = vld [vmem:[#allocation4_spill] sm:$0xff] }
 0x206   :  { %3371 = vpow2.f32 %v3069_v59 }
 0x207   :  { %3373 = vpow2.f32 %v3070_v51 }
 0x208   :  { %3375 = vpow2.f32 %v3071_v60 }
 0x209   :  { %3377 = vtanh.f32 %v727_v50 }
 0x210   :  { %v3372_v61 = vpop.eup %3371 }
 0x211   :  { %v3374_v47 = vpop.eup %3373  ;;  %v732_v0 = vadd.f32 1.0, %v3372_v61 }
 0x212   :  { %v738_v3 = vadd.f32 1.0, %v3374_v47  ;;  %v3376_v5 = vpop.eup %3375 }
 0x213   :  { %3379 = vrcp.f32 %v732_v0  ;;  %v3378_v62 = vpop.eup %3377  ;;  %v745_v46 = vadd.f32 1.0, %v3376_v5 }
 0x214   :  { %3381 = vrcp.f32 %v738_v3 }
 0x215   :  { %3383 = vrcp.f32 %v745_v46 }
 0x21d   :  { %v3380_v6 = vpop.eup %3379 }
 0x21e   :  { %v3382_v2 = vpop.eup %3381  ;;  %v749_v8 = vmul.f32 %v3380_v6, %v3378_v62 }
 0x21f   :  { %v748_v49 = vmul.f32 %v3382_v2, %v4113_v19  ;;  %v3384_v52 = vpop.eup %3383 }
 0x221   :  { %v4159_v1 = vadd.f32 %v749_v8, %v748_v49 }
 0x223   :  { %3385 = vtanh.f32 %v4159_v1 }
 0x22d   :  { %v3386_v4 = vpop.eup %3385 }
 0x22e   :  { %v4162_v38 = vmul.f32 %v3386_v4, %v3384_v52 }
 0x230   :  { %v762_v50 = vpack.c.bf16 %v4162_v38, %v4162_v38 }
 0x232   :  { %796 = vmatmul.mubr.bf16.vlgmr.msra.gmra.mrb[24].mxu0 %v762_v50  ;;  %837 = vmatmul.mubr.bf16.vlgmr.msra.gmra.mrb[24].mxu1 %v762_v50 }
 0x233   :  { %884 = vmatpush1.bf16.msra.mxu0 %v3768_v12  ;;  %925 = vmatpush1.bf16.msra.mxu1 %v3773_v13 }
 0x234   :  { %885 = vmatprep.subr.bf16.mxu0 %v3779_v14  ;;  %926 = vmatprep.subr.bf16.mxu1 %v3785_v15 }
 0x235   :  { %915 = vmatprep.mubr.bf16.mxu0 %v5482_v7  ;;  %956 = vmatprep.mubr.bf16.mxu1 %v5482_v7 }
 0x237   :  { %886 = vmatpush1.bf16.msra.mxu0 %v3792_v16  ;;  %927 = vmatpush1.bf16.msra.mxu1 %v3799_v17 }
 0x238   :  { %887 = vmatprep.subr.bf16.mxu0 %v3806_v18  ;;  %928 = vmatprep.subr.bf16.mxu1 %v3816_v20 }
 0x23b   :  { %888 = vmatpush1.bf16.msra.mxu0 %v3821_v21  ;;  %929 = vmatpush1.bf16.msra.mxu1 %v3828_v22 }
 0x23c   :  { %889 = vmatprep.subr.bf16.mxu0 %v3835_v23  ;;  %930 = vmatprep.subr.bf16.mxu1 %v3840_v24 }
 0x23f   :  { %890 = vmatpush1.bf16.msra.mxu0 %v3847_v25  ;;  %931 = vmatpush1.bf16.msra.mxu1 %v3854_v26 }
 0x240   :  { %891 = vmatprep.subr.bf16.mxu0 %v3861_v27  ;;  %932 = vmatprep.subr.bf16.mxu1 %v3866_v28 }
 0x243   :  { %892 = vmatpush1.bf16.msra.mxu0 %v3876_v30  ;;  %933 = vmatpush1.bf16.msra.mxu1 %v3881_v31 }
 0x244   :  { %893 = vmatprep.subr.bf16.mxu0 %v3888_v32  ;;  %934 = vmatprep.subr.bf16.mxu1 %v3895_v33 }
 0x247   :  { %894 = vmatpush1.bf16.msra.mxu0 %v3902_v34  ;;  %935 = vmatpush1.bf16.msra.mxu1 %v3907_v35 }
 0x248   :  { %895 = vmatprep.subr.bf16.mxu0 %v3914_v36  ;;  %936 = vmatprep.subr.bf16.mxu1 %v3921_v37 }
 0x24b   :  { %896 = vmatpush1.bf16.msra.mxu0 %v3933_v39  ;;  %937 = vmatpush1.bf16.msra.mxu1 %v3938_v40 }
 0x24c   :  { %897 = vmatprep.subr.bf16.mxu0 %v3945_v41  ;;  %938 = vmatprep.subr.bf16.mxu1 %v3950_v42 }
 0x24f   :  { %898 = vmatpush1.bf16.msra.mxu0 %v3959_v43  ;;  %939 = vmatpush1.bf16.msra.mxu1 %v3964_v44 }
 0x250   :  { %1003 = vmatprep.subr.bf16.mxu0 %v3758_v10  ;;  %1044 = vmatprep.subr.bf16.mxu1 %v3763_v11 }
 0x305   :  { %v797_v19 = vpop.f32.mrb[24].mxu0  ;;  %v838_v55 = vpop.f32.mrb[24].mxu1 }
 0x306   :  { %v845_v54 = vadd.f32 %v797_v19, %v4046_v9  ;;  %v847_v56 = vadd.f32 %v838_v55, %v4049_v29  ;;  %v799_v58 = vpop.f32.mrb[25].mxu0  ;;  %v840_v57 = vpop.f32.mrb[25].mxu1 }
 0x307   :  { %v846_v59 = vadd.f32 %v799_v58, %v4051_v45  ;;  %v848_v53 = vadd.f32 %v840_v57, %v5483_v48  ;;  %v801_v51 = vpop.f32.mrb[26].mxu0  ;;  %v842_v60 = vpop.f32.mrb[26].mxu1  ;;  %v5484_v57 = vld [vmem:[#allocation5_spill] sm:$0xff]  ;;  %v5485_v48 = vld [vmem:[#allocation6_spill] sm:$0xff] }
 0x308   :  { %v3073_v61 = vmul.f32 -1.442695, %v845_v54  ;;  %v802_v47 = vpop.f32.mrb[27].mxu0  ;;  %v843_v0 = vpop.f32.mrb[27].mxu1 }
 0x309   :  { %v3074_v3 = vmul.f32 -1.442695, %v846_v59  ;;  %v3075_v5 = vmul.f32 -1.442695, %v848_v53  ;;  %v5487_v0 = vld [vmem:[#allocation8_spill] sm:$0xff] }
 0x30a   :  { %3387 = vpow2.f32 %v3073_v61  ;;  %v5486_v61 = vld [vmem:[#allocation7_spill] sm:$0xff] }
 0x30b   :  { %3389 = vpow2.f32 %v3074_v3 }
 0x30c   :  { %3391 = vpow2.f32 %v3075_v5 }
 0x30d   :  { %3393 = vtanh.f32 %v847_v56 }
 0x314   :  { %v3388_v62 = vpop.eup %3387 }
 0x315   :  { %v3390_v6 = vpop.eup %3389  ;;  %v852_v9 = vadd.f32 1.0, %v3388_v62 }
 0x316   :  { %v858_v29 = vadd.f32 1.0, %v3390_v6  ;;  %v3392_v45 = vpop.eup %3391 }
 0x317   :  { %3395 = vrcp.f32 %v852_v9  ;;  %v3394_v2 = vpop.eup %3393  ;;  %v865_v52 = vadd.f32 1.0, %v3392_v45 }
 0x318   :  { %3397 = vrcp.f32 %v858_v29 }
 0x319   :  { %3399 = vrcp.f32 %v865_v52 }
 0x321   :  { %v3396_v8 = vpop.eup %3395 }
 0x322   :  { %v3398_v46 = vpop.eup %3397  ;;  %v869_v49 = vmul.f32 %v3396_v8, %v3394_v2 }
 0x323   :  { %v868_v4 = vmul.f32 %v3398_v46, %v4159_v1  ;;  %v3400_v19 = vpop.eup %3399 }
 0x325   :  { %v4205_v50 = vadd.f32 %v869_v49, %v868_v4 }
 0x327   :  { %3401 = vtanh.f32 %v4205_v50 }
 0x331   :  { %v3402_v55 = vpop.eup %3401 }
 0x332   :  { %v4208_v54 = vmul.f32 %v3402_v55, %v3400_v19 }
 0x334   :  { %v882_v56 = vpack.c.bf16 %v4208_v54, %v4208_v54 }
 0x336   :  { %916 = vmatmul.mubr.bf16.vlgmr.msra.gmra.mrb[28].mxu0 %v882_v56  ;;  %957 = vmatmul.mubr.bf16.vlgmr.msra.gmra.mrb[28].mxu1 %v882_v56 }
 0x337   :  { %1004 = vmatpush1.bf16.msra.mxu0 %v3768_v12  ;;  %1045 = vmatpush1.bf16.msra.mxu1 %v3773_v13 }
 0x338   :  { %1005 = vmatprep.subr.bf16.mxu0 %v3779_v14  ;;  %1046 = vmatprep.subr.bf16.mxu1 %v3785_v15 }
 0x339   :  { %1035 = vmatprep.mubr.bf16.mxu0 %v5482_v7  ;;  %1076 = vmatprep.mubr.bf16.mxu1 %v5482_v7 }
 0x33b   :  { %1006 = vmatpush1.bf16.msra.mxu0 %v3792_v16  ;;  %1047 = vmatpush1.bf16.msra.mxu1 %v3799_v17 }
 0x33c   :  { %1007 = vmatprep.subr.bf16.mxu0 %v3806_v18  ;;  %1048 = vmatprep.subr.bf16.mxu1 %v3816_v20 }
 0x33f   :  { %1008 = vmatpush1.bf16.msra.mxu0 %v3821_v21  ;;  %1049 = vmatpush1.bf16.msra.mxu1 %v3828_v22 }
 0x340   :  { %1009 = vmatprep.subr.bf16.mxu0 %v3835_v23  ;;  %1050 = vmatprep.subr.bf16.mxu1 %v3840_v24 }
 0x343   :  { %1010 = vmatpush1.bf16.msra.mxu0 %v3847_v25  ;;  %1051 = vmatpush1.bf16.msra.mxu1 %v3854_v26 }
 0x344   :  { %1011 = vmatprep.subr.bf16.mxu0 %v3861_v27  ;;  %1052 = vmatprep.subr.bf16.mxu1 %v3866_v28 }
 0x347   :  { %1012 = vmatpush1.bf16.msra.mxu0 %v3876_v30  ;;  %1053 = vmatpush1.bf16.msra.mxu1 %v3881_v31 }
 0x348   :  { %1013 = vmatprep.subr.bf16.mxu0 %v3888_v32  ;;  %1054 = vmatprep.subr.bf16.mxu1 %v3895_v33 }
 0x34b   :  { %1014 = vmatpush1.bf16.msra.mxu0 %v3902_v34  ;;  %1055 = vmatpush1.bf16.msra.mxu1 %v3907_v35 }
 0x34c   :  { %1015 = vmatprep.subr.bf16.mxu0 %v3914_v36  ;;  %1056 = vmatprep.subr.bf16.mxu1 %v3921_v37 }
 0x34f   :  { %1016 = vmatpush1.bf16.msra.mxu0 %v3933_v39  ;;  %1057 = vmatpush1.bf16.msra.mxu1 %v3938_v40 }
 0x350   :  { %1017 = vmatprep.subr.bf16.mxu0 %v3945_v41  ;;  %1058 = vmatprep.subr.bf16.mxu1 %v3950_v42 }
 0x353   :  { %1018 = vmatpush1.bf16.msra.mxu0 %v3959_v43  ;;  %1059 = vmatpush1.bf16.msra.mxu1 %v3964_v44 }
 0x354   :  { %1123 = vmatprep.subr.bf16.mxu0 %v3758_v10  ;;  %1164 = vmatprep.subr.bf16.mxu1 %v3763_v11 }
 0x409   :  { %v917_v1 = vpop.f32.mrb[28].mxu0  ;;  %v958_v58 = vpop.f32.mrb[28].mxu1 }
 0x40a   :  { %v965_v59 = vadd.f32 %v917_v1, %v5484_v57  ;;  %v967_v53 = vadd.f32 %v958_v58, %v5485_v48  ;;  %v919_v51 = vpop.f32.mrb[29].mxu0  ;;  %v960_v60 = vpop.f32.mrb[29].mxu1 }
 0x40b   :  { %v966_v47 = vadd.f32 %v919_v51, %v5486_v61  ;;  %v968_v3 = vadd.f32 %v960_v60, %v5487_v0  ;;  %v921_v5 = vpop.f32.mrb[30].mxu0  ;;  %v962_v62 = vpop.f32.mrb[30].mxu1 }
 0x40c   :  { %v3077_v6 = vmul.f32 -1.442695, %v965_v59  ;;  %v922_v9 = vpop.f32.mrb[31].mxu0  ;;  %v963_v29 = vpop.f32.mrb[31].mxu1 }
 0x40d   :  { %v3078_v10 = vmul.f32 -1.442695, %v966_v47  ;;  %v3079_v11 = vmul.f32 -1.442695, %v968_v3 }
 0x40e   :  { %3403 = vpow2.f32 %v3077_v6 }
 0x40f   :  { %3405 = vpow2.f32 %v3078_v10 }
 0x410   :  { %3407 = vpow2.f32 %v3079_v11 }
 0x411   :  { %3409 = vtanh.f32 %v967_v53 }
 0x418   :  { %v3404_v45 = vpop.eup %3403 }
 0x419   :  { %v3406_v2 = vpop.eup %3405  ;;  %v972_v8 = vadd.f32 1.0, %v3404_v45  ;;  %v4317_v45 = vld [vmem:[%s5444_s4] ss:$16 sps:$4 sm:$0xff]  }
 0x41a   :  { %v978_v46 = vadd.f32 1.0, %v3406_v2  ;;  %v3408_v49 = vpop.eup %3407  ;;  %v4323_v2 = vld [vmem:[%s5444_s4 + $0x8] ss:$16 sps:$4 sm:$0xff]  }
 0x41b   :  { %3411 = vrcp.f32 %v972_v8  ;;  %v3410_v52 = vpop.eup %3409  ;;  %v985_v56 = vadd.f32 1.0, %v3408_v49  ;;  %v4329_v8 = vld [vmem:[%s5444_s4 + $0x24] ss:$16 sps:$4 sm:$0xff]   ;;  %v4343_v49 = vld [vmem:[%s5444_s4 + $0x20] ss:$16 sps:$4 sm:$0xff]  }
 0x41c   :  { %3413 = vrcp.f32 %v978_v46  ;;  %v4335_v46 = vld [vmem:[%s5444_s4 + $0x2c] ss:$16 sps:$4 sm:$0xff]  }
 0x41d   :  { %3415 = vrcp.f32 %v985_v56  ;;  %v4373_v56 = vld [vmem:[%s5444_s4 + $0x48] ss:$16 sps:$4 sm:$0xff]  }
 0x425   :  { %v3412_v4 = vpop.eup %3411 }
 0x426   :  { %v3414_v19 = vpop.eup %3413  ;;  %v989_v55 = vmul.f32 %v3412_v4, %v3410_v52  ;;  %v4349_v52 = vld [vmem:[%s5444_s4 + $0x28] ss:$16 sps:$4 sm:$0xff]   ;;  %v4355_v4 = vld [vmem:[%s5444_s4 + $0x44] ss:$16 sps:$4 sm:$0xff]  }
 0x427   :  { %v988_v1 = vmul.f32 %v3414_v19, %v4205_v50  ;;  %v3416_v57 = vpop.eup %3415  ;;  %v4361_v19 = vld [vmem:[%s5444_s4 + $0x4c] ss:$16 sps:$4 sm:$0xff]  }
 0x429   :  { %v4251_v58 = vadd.f32 %v989_v55, %v988_v1  ;;  %v4367_v55 = vld [vmem:[%s5444_s4 + $0x40] ss:$16 sps:$4 sm:$0xff]   ;;  %v4379_v1 = vld [vmem:[%s5444_s4 + $0x64] ss:$16 sps:$4 sm:$0xff]  }
 0x42b   :  { %3417 = vtanh.f32 %v4251_v58 }
 0x435   :  { %v3418_v59 = vpop.eup %3417 }
 0x436   :  { %v4254_v48 = vmul.f32 %v3418_v59, %v3416_v57  ;;  %v4391_v57 = vld [vmem:[%s5444_s4 + $0x60] ss:$16 sps:$4 sm:$0xff]   ;;  %v4397_v59 = vld [vmem:[%s5444_s4 + $0x68] ss:$16 sps:$4 sm:$0xff]  }
 0x438   :  { %v1002_v53 = vpack.c.bf16 %v4254_v48, %v4254_v48 }
 0x43a   :  { %1036 = vmatmul.mubr.bf16.vlgmr.msra.gmra.mrb[32].mxu0 %v1002_v53  ;;  %1077 = vmatmul.mubr.bf16.vlgmr.msra.gmra.mrb[32].mxu1 %v1002_v53  ;;  %v4403_v53 = vld [vmem:[%s5444_s4 + $0x84] ss:$16 sps:$4 sm:$0xff]  }
 0x43b   :  { %1124 = vmatpush1.bf16.msra.mxu0 %v3768_v12  ;;  %1165 = vmatpush1.bf16.msra.mxu1 %v3773_v13  ;;  %v4293_v12 = vld [vmem:[%s5444_s4 + $0x4] ss:$16 sps:$4 sm:$0xff]   ;;  %v4299_v13 = vld [vmem:[%s5444_s4 + $0xc] ss:$16 sps:$4 sm:$0xff]  }
 0x43c   :  { %1125 = vmatprep.subr.bf16.mxu0 %v3779_v14  ;;  %1166 = vmatprep.subr.bf16.mxu1 %v3785_v15 }
 0x43d   :  { %1155 = vmatprep.mubr.bf16.mxu0 %v5482_v7  ;;  %1196 = vmatprep.mubr.bf16.mxu1 %v5482_v7 }
 0x43f   :  { %1126 = vmatpush1.bf16.msra.mxu0 %v3792_v16  ;;  %1167 = vmatpush1.bf16.msra.mxu1 %v3799_v17  ;;  %v5488_v16 = vld [vmem:[#allocation9_spill] sm:$0xff] }
 0x440   :  { %1127 = vmatprep.subr.bf16.mxu0 %v3806_v18  ;;  %1168 = vmatprep.subr.bf16.mxu1 %v3816_v20  ;;  %v5489_v18 = vld [vmem:[#allocation10_spill] sm:$0xff] }
 0x443   :  { %1128 = vmatpush1.bf16.msra.mxu0 %v3821_v21  ;;  %1169 = vmatpush1.bf16.msra.mxu1 %v3828_v22 }
 0x444   :  { %1129 = vmatprep.subr.bf16.mxu0 %v3835_v23  ;;  %1170 = vmatprep.subr.bf16.mxu1 %v3840_v24  ;;  %v5490_v23 = vld [vmem:[#allocation11_spill] sm:$0xff] }
 0x447   :  { %1130 = vmatpush1.bf16.msra.mxu0 %v3847_v25  ;;  %1171 = vmatpush1.bf16.msra.mxu1 %v3854_v26  ;;  %v5491_v25 = vld [vmem:[#allocation12_spill] sm:$0xff] }
 0x448   :  { %1131 = vmatprep.subr.bf16.mxu0 %v3861_v27  ;;  %1172 = vmatprep.subr.bf16.mxu1 %v3866_v28 }
 0x44b   :  { %1132 = vmatpush1.bf16.msra.mxu0 %v3876_v30  ;;  %1173 = vmatpush1.bf16.msra.mxu1 %v3881_v31 }
 0x44c   :  { %1133 = vmatprep.subr.bf16.mxu0 %v3888_v32  ;;  %1174 = vmatprep.subr.bf16.mxu1 %v3895_v33 }
 0x44f   :  { %1134 = vmatpush1.bf16.msra.mxu0 %v3902_v34  ;;  %1175 = vmatpush1.bf16.msra.mxu1 %v3907_v35 }
 0x450   :  { %1135 = vmatprep.subr.bf16.mxu0 %v3914_v36  ;;  %1176 = vmatprep.subr.bf16.mxu1 %v3921_v37 }
 0x453   :  { %1136 = vmatpush1.bf16.msra.mxu0 %v3933_v39  ;;  %1177 = vmatpush1.bf16.msra.mxu1 %v3938_v40 }
 0x454   :  { %1137 = vmatprep.subr.bf16.mxu0 %v3945_v41  ;;  %1178 = vmatprep.subr.bf16.mxu1 %v3950_v42 }
 0x457   :  { %1138 = vmatpush1.bf16.msra.mxu0 %v3959_v43  ;;  %1179 = vmatpush1.bf16.msra.mxu1 %v3964_v44 }
 0x458   :  { %1243 = vmatprep.subr.bf16.mxu0 %v4293_v12  ;;  %1284 = vmatprep.subr.bf16.mxu1 %v4299_v13 }
 0x50d   :  { %v1037_v14 = vpop.f32.mrb[32].mxu0  ;;  %v1078_v15 = vpop.f32.mrb[32].mxu1 }
 0x50e   :  { %v1085_v17 = vadd.f32 %v1037_v14, %v5488_v16  ;;  %v1087_v20 = vadd.f32 %v1078_v15, %v5489_v18  ;;  %v1039_v21 = vpop.f32.mrb[33].mxu0  ;;  %v1080_v22 = vpop.f32.mrb[33].mxu1  ;;  %v4409_v14 = vld [vmem:[%s5444_s4 + $0x8c] ss:$16 sps:$4 sm:$0xff]   ;;  %v4415_v15 = vld [vmem:[%s5444_s4 + $0x80] ss:$16 sps:$4 sm:$0xff]  }
 0x50f   :  { %v1086_v24 = vadd.f32 %v1039_v21, %v5490_v23  ;;  %v1088_v26 = vadd.f32 %v1080_v22, %v5491_v25  ;;  %v1041_v27 = vpop.f32.mrb[34].mxu0  ;;  %v1082_v28 = vpop.f32.mrb[34].mxu1  ;;  %v4421_v16 = vld [vmem:[%s5444_s4 + $0x88] ss:$16 sps:$4 sm:$0xff]   ;;  %v4433_v18 = vld [vmem:[%s5444_s4 + $0xac] ss:$16 sps:$4 sm:$0xff]  }
 0x510   :  { %v3081_v30 = vmul.f32 -1.442695, %v1085_v17  ;;  %v1042_v31 = vpop.f32.mrb[35].mxu0  ;;  %v1083_v32 = vpop.f32.mrb[35].mxu1  ;;  %v4427_v17 = vld [vmem:[%s5444_s4 + $0xa4] ss:$16 sps:$4 sm:$0xff]  }
 0x511   :  { %v3082_v33 = vmul.f32 -1.442695, %v1086_v24  ;;  %v3083_v34 = vmul.f32 -1.442695, %v1088_v26  ;;  %v4445_v21 = vld [vmem:[%s5444_s4 + $0xa8] ss:$16 sps:$4 sm:$0xff]  }
 0x512   :  { %3419 = vpow2.f32 %v3081_v30  ;;  %v4451_v22 = vld [vmem:[%s5444_s4 + $0xc4] ss:$16 sps:$4 sm:$0xff]   ;;  %v5493_v26 = vld [vmem:[#allocation14_spill] sm:$0xff]  ;;  %v5495_v30 = vld [vmem:[#allocation16_spill] sm:$0xff] }
 0x513   :  { %3421 = vpow2.f32 %v3082_v33  ;;  %v5492_v25 = vld [vmem:[#allocation13_spill] sm:$0xff]  ;;  %v5494_v28 = vld [vmem:[#allocation15_spill] sm:$0xff] }
 0x514   :  { %3423 = vpow2.f32 %v3083_v34 }
 0x515   :  { %3425 = vtanh.f32 %v1087_v20  ;;  %v4439_v20 = vld [vmem:[%s5444_s4 + $0xa0] ss:$16 sps:$4 sm:$0xff]  }
 0x51c   :  { %v3420_v35 = vpop.eup %3419 }
 0x51d   :  { %v3422_v36 = vpop.eup %3421  ;;  %v1092_v50 = vadd.f32 1.0, %v3420_v35 }
 0x51e   :  { %v1098_v51 = vadd.f32 1.0, %v3422_v36  ;;  %v3424_v60 = vpop.eup %3423 }
 0x51f   :  { %3427 = vrcp.f32 %v1092_v50  ;;  %v3426_v61 = vpop.eup %3425  ;;  %v1105_v5 = vadd.f32 1.0, %v3424_v60 }
 0x520   :  { %3429 = vrcp.f32 %v1098_v51 }
 0x521   :  { %3431 = vrcp.f32 %v1105_v5 }
 0x529   :  { %v3428_v47 = vpop.eup %3427 }
 0x52a   :  { %v3430_v0 = vpop.eup %3429  ;;  %v1109_v3 = vmul.f32 %v3428_v47, %v3426_v61 }
 0x52b   :  { %v1108_v62 = vmul.f32 %v3430_v0, %v4251_v58  ;;  %v3432_v9 = vpop.eup %3431  ;;  %v4385_v58 = vld [vmem:[%s5444_s4 + $0x6c] ss:$16 sps:$4 sm:$0xff]  }
 0x52d   :  { %v4307_v6 = vadd.f32 %v1109_v3, %v1108_v62 }
 0x52f   :  { %3433 = vtanh.f32 %v4307_v6 }
 0x539   :  { %v3434_v29 = vpop.eup %3433 }
 0x53a   :  { %v4310_v10 = vmul.f32 %v3434_v29, %v3432_v9 }
 0x53c   :  { %v1122_v11 = vpack.c.bf16 %v4310_v10, %v4310_v10 }
 0x53e   :  { %1156 = vmatmul.mubr.bf16.vlgmr.msra.gmra.mrb[36].mxu0 %v1122_v11  ;;  %1197 = vmatmul.mubr.bf16.vlgmr.msra.gmra.mrb[36].mxu1 %v1122_v11 }
 0x53f   :  { %1244 = vmatpush1.bf16.msra.mxu0 %v4317_v45  ;;  %1285 = vmatpush1.bf16.msra.mxu1 %v4323_v2 }
 0x540   :  { %1245 = vmatprep.subr.bf16.mxu0 %v4329_v8  ;;  %1286 = vmatprep.subr.bf16.mxu1 %v4335_v46 }
 0x541   :  { %1275 = vmatprep.mubr.bf16.mxu0 %v5482_v7  ;;  %1316 = vmatprep.mubr.bf16.mxu1 %v5482_v7 }
 0x543   :  { %1246 = vmatpush1.bf16.msra.mxu0 %v4343_v49  ;;  %1287 = vmatpush1.bf16.msra.mxu1 %v4349_v52 }
 0x544   :  { %1247 = vmatprep.subr.bf16.mxu0 %v4355_v4  ;;  %1288 = vmatprep.subr.bf16.mxu1 %v4361_v19 }
 0x547   :  { %1248 = vmatpush1.bf16.msra.mxu0 %v4367_v55  ;;  %1289 = vmatpush1.bf16.msra.mxu1 %v4373_v56 }
 0x548   :  { %1249 = vmatprep.subr.bf16.mxu0 %v4379_v1  ;;  %1290 = vmatprep.subr.bf16.mxu1 %v4385_v58 }
 0x54b   :  { %1250 = vmatpush1.bf16.msra.mxu0 %v4391_v57  ;;  %1291 = vmatpush1.bf16.msra.mxu1 %v4397_v59 }
 0x54c   :  { %1251 = vmatprep.subr.bf16.mxu0 %v4403_v53  ;;  %1292 = vmatprep.subr.bf16.mxu1 %v4409_v14 }
 0x54f   :  { %1252 = vmatpush1.bf16.msra.mxu0 %v4415_v15  ;;  %1293 = vmatpush1.bf16.msra.mxu1 %v4421_v16 }
 0x550   :  { %1253 = vmatprep.subr.bf16.mxu0 %v4427_v17  ;;  %1294 = vmatprep.subr.bf16.mxu1 %v4433_v18 }
 0x553   :  { %1254 = vmatpush1.bf16.msra.mxu0 %v4439_v20  ;;  %1295 = vmatpush1.bf16.msra.mxu1 %v4445_v21 }
 0x554   :  { %1255 = vmatprep.subr.bf16.mxu0 %v4451_v22  ;;  %1296 = vmatprep.subr.bf16.mxu1 %v3921_v37 }
 0x557   :  { %1256 = vmatpush1.bf16.msra.mxu0 %v3933_v39  ;;  %1297 = vmatpush1.bf16.msra.mxu1 %v3938_v40 }
 0x558   :  { %1257 = vmatprep.subr.bf16.mxu0 %v3945_v41  ;;  %1298 = vmatprep.subr.bf16.mxu1 %v3950_v42 }
 0x55b   :  { %1258 = vmatpush1.bf16.msra.mxu0 %v3959_v43  ;;  %1299 = vmatpush1.bf16.msra.mxu1 %v3964_v44 }
 0x55c   :  { %1363 = vmatprep.subr.bf16.mxu0 %v4293_v12  ;;  %1404 = vmatprep.subr.bf16.mxu1 %v4299_v13 }
 0x611   :  { %v1157_v23 = vpop.f32.mrb[36].mxu0  ;;  %v1198_v24 = vpop.f32.mrb[36].mxu1 }
 0x612   :  { %v1205_v37 = vadd.f32 %v1157_v23, %v5492_v25  ;;  %v1207_v39 = vadd.f32 %v1198_v24, %v5493_v26  ;;  %v1159_v27 = vpop.f32.mrb[37].mxu0  ;;  %v1200_v40 = vpop.f32.mrb[37].mxu1 }
 0x613   :  { %v1206_v41 = vadd.f32 %v1159_v27, %v5494_v28  ;;  %v1208_v42 = vadd.f32 %v1200_v40, %v5495_v30  ;;  %v1161_v31 = vpop.f32.mrb[38].mxu0  ;;  %v1202_v43 = vpop.f32.mrb[38].mxu1 }
 0x614   :  { %v3085_v32 = vmul.f32 -1.442695, %v1205_v37  ;;  %v1162_v44 = vpop.f32.mrb[39].mxu0  ;;  %v1203_v33 = vpop.f32.mrb[39].mxu1 }
 0x615   :  { %v3086_v12 = vmul.f32 -1.442695, %v1206_v41  ;;  %v3087_v13 = vmul.f32 -1.442695, %v1208_v42 }
 0x616   :  { %3435 = vpow2.f32 %v3085_v32 }
 0x617   :  { %3437 = vpow2.f32 %v3086_v12 }
 0x618   :  { %3439 = vpow2.f32 %v3087_v13 }
 0x619   :  { %3441 = vtanh.f32 %v1207_v39 }
 0x620   :  { %v3436_v34 = vpop.eup %3435 }
 0x621   :  { %v3438_v35 = vpop.eup %3437  ;;  %v1212_v36 = vadd.f32 1.0, %v3436_v34 }
 0x622   :  { %v1218_v50 = vadd.f32 1.0, %v3438_v35  ;;  %v3440_v51 = vpop.eup %3439  ;;  %v3259_v35 = vld [vmem:[%s5448_s6] ss:$16 sps:$4 sm:$0xff]  }
 0x623   :  { %3443 = vrcp.f32 %v1212_v36  ;;  %v3442_v60 = vpop.eup %3441  ;;  %v1225_v3 = vadd.f32 1.0, %v3440_v51  ;;  %v3262_v36 = vld [vmem:[%s5448_s6 + $0x8] ss:$16 sps:$4 sm:$0xff]   ;;  %v3267_v51 = vld [vmem:[%s5448_s6 + $0x24] ss:$16 sps:$4 sm:$0xff]  }
 0x624   :  { %3445 = vrcp.f32 %v1218_v50 }
 0x625   :  { %3447 = vrcp.f32 %v1225_v3  ;;  %v3276_v3 = vld [vmem:[%s5448_s6 + $0x4c] ss:$16 sps:$4 sm:$0xff]  }
 0x62d   :  { %v3444_v61 = vpop.eup %3443 }
 0x62e   :  { %v3446_v47 = vpop.eup %3445  ;;  %v1229_v0 = vmul.f32 %v3444_v61, %v3442_v60  ;;  %v3270_v60 = vld [vmem:[%s5448_s6 + $0x2c] ss:$16 sps:$4 sm:$0xff]   ;;  %v3265_v61 = vld [vmem:[%s5448_s6 + $0x20] ss:$16 sps:$4 sm:$0xff]  }
 0x62f   :  { %v1228_v5 = vmul.f32 %v3446_v47, %v4307_v6  ;;  %v3448_v9 = vpop.eup %3447  ;;  %v3636_v6 = vld [vmem:[%s5444_s4 + $0xcc] ss:$16 sps:$4 sm:$0xff]   ;;  %v3268_v47 = vld [vmem:[%s5448_s6 + $0x28] ss:$16 sps:$4 sm:$0xff]  }
 0x631   :  { %v4468_v62 = vadd.f32 %v1229_v0, %v1228_v5  ;;  %v3273_v0 = vld [vmem:[%s5448_s6 + $0x44] ss:$16 sps:$4 sm:$0xff]   ;;  %v3271_v5 = vld [vmem:[%s5448_s6 + $0x40] ss:$16 sps:$4 sm:$0xff]  }
 0x633   :  { %3449 = vtanh.f32 %v4468_v62 }
 0x63d   :  { %v3450_v29 = vpop.eup %3449 }
 0x63e   :  { %v4471_v11 = vmul.f32 %v3450_v29, %v3448_v9  ;;  %v3279_v9 = vld [vmem:[%s5448_s6 + $0x64] ss:$16 sps:$4 sm:$0xff]   ;;  %v3282_v29 = vld [vmem:[%s5448_s6 + $0x6c] ss:$16 sps:$4 sm:$0xff]  }
 0x640   :  { %v1242_v23 = vpack.c.bf16 %v4471_v11, %v4471_v11 }
 0x642   :  { %1276 = vmatmul.mubr.bf16.vlgmr.msra.gmra.mrb[40].mxu0 %v1242_v23  ;;  %1317 = vmatmul.mubr.bf16.vlgmr.msra.gmra.mrb[40].mxu1 %v1242_v23  ;;  %v3277_v23 = vld [vmem:[%s5448_s6 + $0x60] ss:$16 sps:$4 sm:$0xff]  }
 0x643   :  { %1364 = vmatpush1.bf16.msra.mxu0 %v4317_v45  ;;  %1405 = vmatpush1.bf16.msra.mxu1 %v4323_v2  ;;  %v3637_v45 = vld [vmem:[%s5444_s4 + $0xc0] ss:$16 sps:$4 sm:$0xff]   ;;  %v3638_v2 = vld [vmem:[%s5444_s4 + $0xc8] ss:$16 sps:$4 sm:$0xff]  }
 0x644   :  { %1365 = vmatprep.subr.bf16.mxu0 %v4329_v8  ;;  %1406 = vmatprep.subr.bf16.mxu1 %v4335_v46  ;;  %v3639_v8 = vld [vmem:[%s5444_s4 + $0xe4] ss:$16 sps:$4 sm:$0xff]   ;;  %v3640_v46 = vld [vmem:[%s5444_s4 + $0xec] ss:$16 sps:$4 sm:$0xff]  }
 0x645   :  { %1395 = vmatprep.mubr.bf16.mxu0 %v5482_v7  ;;  %1436 = vmatprep.mubr.bf16.mxu1 %v5482_v7 }
 0x647   :  { %1366 = vmatpush1.bf16.msra.mxu0 %v4343_v49  ;;  %1407 = vmatpush1.bf16.msra.mxu1 %v4349_v52  ;;  %v3641_v49 = vld [vmem:[%s5444_s4 + $0xe0] ss:$16 sps:$4 sm:$0xff]   ;;  %v3642_v52 = vld [vmem:[%s5444_s4 + $0xe8] ss:$16 sps:$4 sm:$0xff]  }
 0x648   :  { %1367 = vmatprep.subr.bf16.mxu0 %v4355_v4  ;;  %1408 = vmatprep.subr.bf16.mxu1 %v4361_v19  ;;  %v3261_v4 = vld [vmem:[%s5448_s6 + $0x4] ss:$16 sps:$4 sm:$0xff]   ;;  %v3264_v19 = vld [vmem:[%s5448_s6 + $0xc] ss:$16 sps:$4 sm:$0xff]  }
 0x64b   :  { %1368 = vmatpush1.bf16.msra.mxu0 %v4367_v55  ;;  %1409 = vmatpush1.bf16.msra.mxu1 %v4373_v56 }
 0x64c   :  { %1369 = vmatprep.subr.bf16.mxu0 %v4379_v1  ;;  %1410 = vmatprep.subr.bf16.mxu1 %v4385_v58  ;;  %v5496_v1 = vld [vmem:[#allocation17_spill] sm:$0xff] }
 0x64f   :  { %1370 = vmatpush1.bf16.msra.mxu0 %v4391_v57  ;;  %1411 = vmatpush1.bf16.msra.mxu1 %v4397_v59  ;;  %v5497_v57 = vld [vmem:[#allocation18_spill] sm:$0xff] }
 0x650   :  { %1371 = vmatprep.subr.bf16.mxu0 %v4403_v53  ;;  %1412 = vmatprep.subr.bf16.mxu1 %v4409_v14 }
 0x653   :  { %1372 = vmatpush1.bf16.msra.mxu0 %v4415_v15  ;;  %1413 = vmatpush1.bf16.msra.mxu1 %v4421_v16  ;;  %v5498_v15 = vld [vmem:[#allocation19_spill] sm:$0xff] }
 0x654   :  { %1373 = vmatprep.subr.bf16.mxu0 %v4427_v17  ;;  %1414 = vmatprep.subr.bf16.mxu1 %v4433_v18  ;;  %v5499_v17 = vld [vmem:[#allocation20_spill] sm:$0xff] }
 0x657   :  { %1374 = vmatpush1.bf16.msra.mxu0 %v4439_v20  ;;  %1415 = vmatpush1.bf16.msra.mxu1 %v4445_v21 }
 0x658   :  { %1375 = vmatprep.subr.bf16.mxu0 %v4451_v22  ;;  %1416 = vmatprep.subr.bf16.mxu1 %v3636_v6  ;;  %v3280_v6 = vld [vmem:[%s5448_s6 + $0x68] ss:$16 sps:$4 sm:$0xff]  }
 0x65b   :  { %1376 = vmatpush1.bf16.msra.mxu0 %v3637_v45  ;;  %1417 = vmatpush1.bf16.msra.mxu1 %v3638_v2  ;;  %v3285_v45 = vld [vmem:[%s5448_s6 + $0x84] ss:$16 sps:$4 sm:$0xff]   ;;  %v3288_v2 = vld [vmem:[%s5448_s6 + $0x8c] ss:$16 sps:$4 sm:$0xff]  }
 0x65c   :  { %1377 = vmatprep.subr.bf16.mxu0 %v3639_v8  ;;  %1418 = vmatprep.subr.bf16.mxu1 %v3640_v46  ;;  %v3283_v8 = vld [vmem:[%s5448_s6 + $0x80] ss:$16 sps:$4 sm:$0xff]   ;;  %v3286_v46 = vld [vmem:[%s5448_s6 + $0x88] ss:$16 sps:$4 sm:$0xff]  }
 0x65f   :  { %1378 = vmatpush1.bf16.msra.mxu0 %v3641_v49  ;;  %1419 = vmatpush1.bf16.msra.mxu1 %v3642_v52  ;;  %v3291_v49 = vld [vmem:[%s5448_s6 + $0xa4] ss:$16 sps:$4 sm:$0xff]   ;;  %v3294_v52 = vld [vmem:[%s5448_s6 + $0xac] ss:$16 sps:$4 sm:$0xff]  }
 0x660   :  { %1701 = vmatprep.subr.bf16.mxu0 %v3261_v4  ;;  %1774 = vmatprep.subr.bf16.mxu1 %v3264_v19  ;;  %v3289_v4 = vld [vmem:[%s5448_s6 + $0xa0] ss:$16 sps:$4 sm:$0xff]   ;;  %v3292_v19 = vld [vmem:[%s5448_s6 + $0xa8] ss:$16 sps:$4 sm:$0xff]  }
 0x715   :  { %v1277_v55 = vpop.f32.mrb[40].mxu0  ;;  %v1318_v56 = vpop.f32.mrb[40].mxu1 }
 0x716   :  { %v1325_v58 = vadd.f32 %v1277_v55, %v5496_v1  ;;  %v1327_v59 = vadd.f32 %v1318_v56, %v5497_v57  ;;  %v1279_v53 = vpop.f32.mrb[41].mxu0  ;;  %v1320_v14 = vpop.f32.mrb[41].mxu1  ;;  %v3297_v55 = vld [vmem:[%s5448_s6 + $0xc4] ss:$16 sps:$4 sm:$0xff]   ;;  %v3300_v56 = vld [vmem:[%s5448_s6 + $0xcc] ss:$16 sps:$4 sm:$0xff]  }
 0x717   :  { %v1326_v16 = vadd.f32 %v1279_v53, %v5498_v15  ;;  %v1328_v18 = vadd.f32 %v1320_v14, %v5499_v17  ;;  %v1281_v20 = vpop.f32.mrb[42].mxu0  ;;  %v1322_v21 = vpop.f32.mrb[42].mxu1  ;;  %v3295_v1 = vld [vmem:[%s5448_s6 + $0xc0] ss:$16 sps:$4 sm:$0xff]   ;;  %v3303_v57 = vld [vmem:[%s5448_s6 + $0xe4] ss:$16 sps:$4 sm:$0xff]   ;;  %v1483_v15 = vpack.c.bf16 %v4162_v38, %v4116_v63  ;;  %v1485_v17 = vpack.c.bf16 %v4471_v11, %v4310_v10 }
 0x718   :  { %v3089_v22 = vmul.f32 -1.442695, %v1325_v58  ;;  %v1282_v24 = vpop.f32.mrb[43].mxu0  ;;  %v1323_v25 = vpop.f32.mrb[43].mxu1  ;;  %v3298_v58 = vld [vmem:[%s5448_s6 + $0xc8] ss:$16 sps:$4 sm:$0xff]  }
 0x719   :  { %v3090_v37 = vmul.f32 -1.442695, %v1326_v16  ;;  %v3091_v26 = vmul.f32 -1.442695, %v1328_v18  ;;  %v3301_v53 = vld [vmem:[%s5448_s6 + $0xe0] ss:$16 sps:$4 sm:$0xff]   ;;  %v1484_v16 = vpack.c.bf16 %v4254_v48, %v4208_v54 }
 0x71a   :  { %3451 = vpow2.f32 %v3089_v22  ;;  %v3304_v14 = vld [vmem:[%s5448_s6 + $0xe8] ss:$16 sps:$4 sm:$0xff]   ;;  %v4646_v63 = vld [vmem:[%s5449_s7 + $0x4] ss:$16 sps:$4 sm:$0xff]   ;;  %v4651_v38 = vld [vmem:[%s5449_s7 + $0xc] ss:$16 sps:$4 sm:$0xff]  }
 0x71b   :  { %3453 = vpow2.f32 %v3090_v37  ;;  %v4657_v54 = vld [vmem:[%s5449_s7] ss:$16 sps:$4 sm:$0xff]   ;;  %v4662_v48 = vld [vmem:[%s5449_s7 + $0x8] ss:$16 sps:$4 sm:$0xff]   ;;  %v4670_v10 = vld [vmem:[%s5449_s7 + $0x24] ss:$16 sps:$4 sm:$0xff]  }
 0x71c   :  { %3455 = vpow2.f32 %v3091_v26  ;;  %v4675_v11 = vld [vmem:[%s5449_s7 + $0x2c] ss:$16 sps:$4 sm:$0xff]   ;;  %v4680_v18 = vld [vmem:[%s5449_s7 + $0x20] ss:$16 sps:$4 sm:$0xff]   ;;  %v4685_v20 = vld [vmem:[%s5449_s7 + $0x28] ss:$16 sps:$4 sm:$0xff]  }
 0x71d   :  { %3457 = vtanh.f32 %v1327_v59  ;;  %v3306_v59 = vld [vmem:[%s5448_s6 + $0xec] ss:$16 sps:$4 sm:$0xff]   ;;  %v4694_v21 = vld [vmem:[%s5449_s7 + $0x44] ss:$16 sps:$4 sm:$0xff]   ;;  %v4704_v24 = vld [vmem:[%s5449_s7 + $0x40] ss:$16 sps:$4 sm:$0xff]  }
 0x71e   :  { %v4699_v22 = vld [vmem:[%s5449_s7 + $0x4c] ss:$16 sps:$4 sm:$0xff]   ;;  %v4709_v25 = vld [vmem:[%s5449_s7 + $0x48] ss:$16 sps:$4 sm:$0xff]   ;;  %v4718_v37 = vld [vmem:[%s5449_s7 + $0x64] ss:$16 sps:$4 sm:$0xff]  }
 0x71f   :  { %v4723_v26 = vld [vmem:[%s5449_s7 + $0x6c] ss:$16 sps:$4 sm:$0xff]  }
 0x724   :  { %v3452_v39 = vpop.eup %3451 }
 0x725   :  { %v3454_v27 = vpop.eup %3453  ;;  %v1332_v40 = vadd.f32 1.0, %v3452_v39  ;;  %v4728_v39 = vld [vmem:[%s5449_s7 + $0x60] ss:$16 sps:$4 sm:$0xff]  }
 0x726   :  { %v1338_v28 = vadd.f32 1.0, %v3454_v27  ;;  %v3456_v41 = vpop.eup %3455  ;;  %v4733_v27 = vld [vmem:[%s5449_s7 + $0x68] ss:$16 sps:$4 sm:$0xff]  }
 0x727   :  { %3459 = vrcp.f32 %v1332_v40  ;;  %v3458_v30 = vpop.eup %3457  ;;  %v1345_v32 = vadd.f32 1.0, %v3456_v41  ;;  %v4742_v40 = vld [vmem:[%s5449_s7 + $0x84] ss:$16 sps:$4 sm:$0xff]   ;;  %v4752_v41 = vld [vmem:[%s5449_s7 + $0x80] ss:$16 sps:$4 sm:$0xff]  }
 0x728   :  { %3461 = vrcp.f32 %v1338_v28  ;;  %v4747_v28 = vld [vmem:[%s5449_s7 + $0x8c] ss:$16 sps:$4 sm:$0xff]  }
 0x729   :  { %3463 = vrcp.f32 %v1345_v32  ;;  %v4781_v32 = vld [vmem:[%s5449_s7 + $0xa8] ss:$16 sps:$4 sm:$0xff]  }
 0x731   :  { %v3460_v42 = vpop.eup %3459 }
 0x732   :  { %v3462_v31 = vpop.eup %3461  ;;  %v1349_v43 = vmul.f32 %v3460_v42, %v3458_v30  ;;  %v4757_v30 = vld [vmem:[%s5449_s7 + $0x88] ss:$16 sps:$4 sm:$0xff]   ;;  %v4766_v42 = vld [vmem:[%s5449_s7 + $0xa4] ss:$16 sps:$4 sm:$0xff]  }
 0x733   :  { %v1348_v44 = vmul.f32 %v3462_v31, %v4468_v62  ;;  %v3464_v12 = vpop.eup %3463  ;;  %v3274_v62 = vld [vmem:[%s5448_s6 + $0x48] ss:$16 sps:$4 sm:$0xff]   ;;  %v4771_v31 = vld [vmem:[%s5449_s7 + $0xac] ss:$16 sps:$4 sm:$0xff]  }
 0x735   :  { %v4532_v33 = vadd.f32 %v1349_v43, %v1348_v44  ;;  %v4776_v43 = vld [vmem:[%s5449_s7 + $0xa0] ss:$16 sps:$4 sm:$0xff]   ;;  %v4790_v44 = vld [vmem:[%s5449_s7 + $0xc4] ss:$16 sps:$4 sm:$0xff]  }
 0x737   :  { %3465 = vtanh.f32 %v4532_v33 }
 0x741   :  { %v3466_v13 = vpop.eup %3465 }
 0x742   :  { %v4535_v34 = vmul.f32 %v3466_v13, %v3464_v12  ;;  %v4795_v12 = vld [vmem:[%s5449_s7 + $0xcc] ss:$16 sps:$4 sm:$0xff]   ;;  %v4800_v13 = vld [vmem:[%s5449_s7 + $0xc0] ss:$16 sps:$4 sm:$0xff]  }
 0x744   :  { %v1362_v50 = vpack.c.bf16 %v4535_v34, %v4535_v34 }
 0x746   :  { %1396 = vmatmul.mubr.bf16.vlgmr.msra.gmra.mrb[44].mxu0 %v1362_v50  ;;  %1437 = vmatmul.mubr.bf16.vlgmr.msra.gmra.mrb[44].mxu1 %v1362_v50  ;;  %v4819_v50 = vld [vmem:[%s5449_s7 + $0xec] ss:$16 sps:$4 sm:$0xff]  }
 0x747   :  { %1702 = vmatpush1.bf16.msra.mxu0 %v3259_v35  ;;  %1775 = vmatpush1.bf16.msra.mxu1 %v3262_v36  ;;  %v4805_v35 = vld [vmem:[%s5449_s7 + $0xc8] ss:$16 sps:$4 sm:$0xff]   ;;  %v4814_v36 = vld [vmem:[%s5449_s7 + $0xe4] ss:$16 sps:$4 sm:$0xff]  }
 0x748   :  { %1703 = vmatprep.subr.bf16.mxu0 %v3267_v51  ;;  %1776 = vmatprep.subr.bf16.mxu1 %v3270_v60  ;;  %v4824_v51 = vld [vmem:[%s5449_s7 + $0xe0] ss:$16 sps:$4 sm:$0xff]   ;;  %v4829_v60 = vld [vmem:[%s5449_s7 + $0xe8] ss:$16 sps:$4 sm:$0xff]  }
 0x749   :  { %1733 = vmatprep.mubr.bf16.mxu0 %v5482_v7  ;;  %1806 = vmatprep.mubr.bf16.mxu1 %v5482_v7 }
 0x74b   :  { %1704 = vmatpush1.bf16.msra.mxu0 %v3265_v61  ;;  %1777 = vmatpush1.bf16.msra.mxu1 %v3268_v47 }
 0x74c   :  { %1705 = vmatprep.subr.bf16.mxu0 %v3273_v0  ;;  %1778 = vmatprep.subr.bf16.mxu1 %v3276_v3  ;;  %v5500_v0 = vld [vmem:[#allocation21_spill] sm:$0xff] }
 0x74f   :  { %1706 = vmatpush1.bf16.msra.mxu0 %v3271_v5  ;;  %1779 = vmatpush1.bf16.msra.mxu1 %v3274_v62  ;;  %v5501_v5 = vld [vmem:[#allocation22_spill] sm:$0xff] }
 0x750   :  { %1707 = vmatprep.subr.bf16.mxu0 %v3279_v9  ;;  %1780 = vmatprep.subr.bf16.mxu1 %v3282_v29 }
 0x753   :  { %1708 = vmatpush1.bf16.msra.mxu0 %v3277_v23  ;;  %1781 = vmatpush1.bf16.msra.mxu1 %v3280_v6  ;;  %v5502_v23 = vld [vmem:[#allocation23_spill] sm:$0xff] }
 0x754   :  { %1709 = vmatprep.subr.bf16.mxu0 %v3285_v45  ;;  %1782 = vmatprep.subr.bf16.mxu1 %v3288_v2  ;;  %v5503_v45 = vld [vmem:[#allocation24_spill] sm:$0xff] }
 0x757   :  { %1710 = vmatpush1.bf16.msra.mxu0 %v3283_v8  ;;  %1783 = vmatpush1.bf16.msra.mxu1 %v3286_v46 }
 0x758   :  { %1711 = vmatprep.subr.bf16.mxu0 %v3291_v49  ;;  %1784 = vmatprep.subr.bf16.mxu1 %v3294_v52 }
 0x75b   :  { %1712 = vmatpush1.bf16.msra.mxu0 %v3289_v4  ;;  %1785 = vmatpush1.bf16.msra.mxu1 %v3292_v19 }
 0x75c   :  { %1713 = vmatprep.subr.bf16.mxu0 %v3297_v55  ;;  %1786 = vmatprep.subr.bf16.mxu1 %v3300_v56 }
 0x75f   :  { %1714 = vmatpush1.bf16.msra.mxu0 %v3295_v1  ;;  %1787 = vmatpush1.bf16.msra.mxu1 %v3298_v58 }
 0x760   :  { %1715 = vmatprep.subr.bf16.mxu0 %v3303_v57  ;;  %1788 = vmatprep.subr.bf16.mxu1 %v3306_v59 }
 0x763   :  { %1716 = vmatpush1.bf16.msra.mxu0 %v3301_v53  ;;  %1789 = vmatpush1.bf16.msra.mxu1 %v3304_v14 }
 0x764   :  { %2080 = vmatprep.subr.bf16.mxu0 %v4646_v63  ;;  %2121 = vmatprep.subr.bf16.mxu1 %v4651_v38 }
 0x766   :  { %1734 = vmatmul.mubr.bf16.vlgmr.msra.gmra.mrb[48].mxu0 %v1483_v15  ;;  %1807 = vmatmul.mubr.bf16.vlgmr.msra.gmra.mrb[48].mxu1 %v1483_v15 }
 0x767   :  { %1743 = vmatprep.mubr.bf16.mxu0 %v5482_v7  ;;  %1816 = vmatprep.mubr.bf16.mxu1 %v5482_v7 }
 0x768   :  { %2081 = vmatpush1.bf16.msra.mxu0 %v4657_v54  ;;  %2122 = vmatpush1.bf16.msra.mxu1 %v4662_v48 }
 0x769   :  { %2082 = vmatprep.subr.bf16.mxu0 %v4670_v10  ;;  %2123 = vmatprep.subr.bf16.mxu1 %v4675_v11 }
 0x76c   :  { %2083 = vmatpush1.bf16.msra.mxu0 %v4680_v18  ;;  %2124 = vmatpush1.bf16.msra.mxu1 %v4685_v20 }
 0x76d   :  { %2084 = vmatprep.subr.bf16.mxu0 %v4694_v21  ;;  %2125 = vmatprep.subr.bf16.mxu1 %v4699_v22 }
 0x76e   :  { %1744 = vmatmul.mubr.bf16.gmra.mrb[52].mxu0 %v1484_v16  ;;  %1817 = vmatmul.mubr.bf16.gmra.mrb[52].mxu1 %v1484_v16 }
 0x76f   :  { %1753 = vmatprep.mubr.bf16.mxu0 %v5482_v7  ;;  %1826 = vmatprep.mubr.bf16.mxu1 %v5482_v7 }
 0x770   :  { %2085 = vmatpush1.bf16.msra.mxu0 %v4704_v24  ;;  %2126 = vmatpush1.bf16.msra.mxu1 %v4709_v25 }
 0x771   :  { %2086 = vmatprep.subr.bf16.mxu0 %v4718_v37  ;;  %2127 = vmatprep.subr.bf16.mxu1 %v4723_v26 }
 0x774   :  { %2087 = vmatpush1.bf16.msra.mxu0 %v4728_v39  ;;  %2128 = vmatpush1.bf16.msra.mxu1 %v4733_v27 }
 0x775   :  { %2088 = vmatprep.subr.bf16.mxu0 %v4742_v40  ;;  %2129 = vmatprep.subr.bf16.mxu1 %v4747_v28 }
 0x776   :  { %1754 = vmatmul.mubr.bf16.gmra.mrb[56].mxu0 %v1485_v17  ;;  %1827 = vmatmul.mubr.bf16.gmra.mrb[56].mxu1 %v1485_v17 }
 0x777   :  { %1763 = vmatprep.mubr.bf16.mxu0 %v5482_v7  ;;  %1836 = vmatprep.mubr.bf16.mxu1 %v5482_v7 }
 0x778   :  { %2089 = vmatpush1.bf16.msra.mxu0 %v4752_v41  ;;  %2130 = vmatpush1.bf16.msra.mxu1 %v4757_v30 }
 0x779   :  { %2090 = vmatprep.subr.bf16.mxu0 %v4766_v42  ;;  %2131 = vmatprep.subr.bf16.mxu1 %v4771_v31 }
 0x77c   :  { %2091 = vmatpush1.bf16.msra.mxu0 %v4776_v43  ;;  %2132 = vmatpush1.bf16.msra.mxu1 %v4781_v32 }
 0x77d   :  { %2092 = vmatprep.subr.bf16.mxu0 %v4790_v44  ;;  %2133 = vmatprep.subr.bf16.mxu1 %v4795_v12 }
 0x780   :  { %2093 = vmatpush1.bf16.msra.mxu0 %v4800_v13  ;;  %2134 = vmatpush1.bf16.msra.mxu1 %v4805_v35 }
 0x781   :  { %2094 = vmatprep.subr.bf16.mxu0 %v4814_v36  ;;  %2135 = vmatprep.subr.bf16.mxu1 %v4819_v50 }
 0x784   :  { %2095 = vmatpush1.bf16.msra.mxu0 %v4824_v51  ;;  %2136 = vmatpush1.bf16.msra.mxu1 %v4829_v60 }
 0x785   :  { %2196 = vmatprep.subr.bf16.mxu0 %v4646_v63  ;;  %2237 = vmatprep.subr.bf16.mxu1 %v4651_v38 }
 0x819   :  { %v1397_v61 = vpop.f32.mrb[44].mxu0  ;;  %v1438_v47 = vpop.f32.mrb[44].mxu1 }
 0x81a   :  { %v1445_v3 = vadd.f32 %v1397_v61, %v5500_v0  ;;  %v1447_v62 = vadd.f32 %v1438_v47, %v5501_v5  ;;  %v1399_v9 = vpop.f32.mrb[45].mxu0  ;;  %v1440_v29 = vpop.f32.mrb[45].mxu1 }
 0x81b   :  { %v1446_v6 = vadd.f32 %v1399_v9, %v5502_v23  ;;  %v1448_v2 = vadd.f32 %v1440_v29, %v5503_v45  ;;  %v1401_v8 = vpop.f32.mrb[46].mxu0  ;;  %v1442_v46 = vpop.f32.mrb[46].mxu1 }
 0x81c   :  { %v3093_v49 = vmul.f32 -1.442695, %v1445_v3  ;;  %v1402_v52 = vpop.f32.mrb[47].mxu0  ;;  %v1443_v4 = vpop.f32.mrb[47].mxu1 }
 0x81d   :  { %v3094_v19 = vmul.f32 -1.442695, %v1446_v6  ;;  %v3095_v55 = vmul.f32 -1.442695, %v1448_v2 }
 0x81e   :  { %3467 = vpow2.f32 %v3093_v49 }
 0x81f   :  { %3469 = vpow2.f32 %v3094_v19 }
 0x820   :  { %3471 = vpow2.f32 %v3095_v55 }
 0x821   :  { %3473 = vtanh.f32 %v1447_v62 }
 0x828   :  { %v3468_v56 = vpop.eup %3467 }
 0x829   :  { %v3470_v1 = vpop.eup %3469  ;;  %v1452_v58 = vadd.f32 1.0, %v3468_v56 }
 0x82a   :  { %v1458_v57 = vadd.f32 1.0, %v3470_v1  ;;  %v3472_v59 = vpop.eup %3471 }
 0x82b   :  { %3475 = vrcp.f32 %v1452_v58  ;;  %v3474_v53 = vpop.eup %3473  ;;  %v1465_v17 = vadd.f32 1.0, %v3472_v59 }
 0x82c   :  { %3477 = vrcp.f32 %v1458_v57 }
 0x82d   :  { %3479 = vrcp.f32 %v1465_v17 }
 0x835   :  { %v3476_v14 = vpop.eup %3475 }
 0x836   :  { %v3478_v15 = vpop.eup %3477  ;;  %v1469_v16 = vmul.f32 %v3476_v14, %v3474_v53 }
 0x837   :  { %v1468_v61 = vmul.f32 %v3478_v15, %v4532_v33  ;;  %v3480_v52 = vpop.eup %3479 }
 0x839   :  { %v1470_v47 = vadd.f32 %v1469_v16, %v1468_v61  ;;  %v4842_v0 = vpop.f32.mrb[48].mxu0  ;;  %v4844_v3 = vpop.f32.mrb[48].mxu1 }
 0x83a   :  { %v4846_v5 = vpop.f32.mrb[49].mxu0  ;;  %v4848_v62 = vpop.f32.mrb[49].mxu1 }
 0x83b   :  { %3481 = vtanh.f32 %v1470_v47  ;;  %v4850_v9 = vpop.f32.mrb[50].mxu0  ;;  %v4852_v29 = vpop.f32.mrb[50].mxu1  ;;  %v1519_v47 = vld [vmem:[%s5450_s8] sm:$0xf] }
 0x83c   :  { %v4854_v23 = vpop.f32.mrb[51].mxu0  ;;  %v4856_v6 = vpop.f32.mrb[51].mxu1 }
 0x841   :  { %v4858_v33 = vpop.f32.mrb[52].mxu0  ;;  %v4860_v45 = vpop.f32.mrb[52].mxu1 }
 0x842   :  { %5504 = vst [vmem:[#allocation4_spill] sm:$0xff] %v4860_v45  ;;  %v4862_v2 = vpop.f32.mrb[53].mxu0  ;;  %v4864_v8 = vpop.f32.mrb[53].mxu1 }
 0x843   :  { %5505 = vst [vmem:[#allocation5_spill] sm:$0xff] %v4862_v2  ;;  %5506 = vst [vmem:[#allocation6_spill] sm:$0xff] %v4864_v8  ;;  %v4866_v46 = vpop.f32.mrb[54].mxu0  ;;  %v4868_v49 = vpop.f32.mrb[54].mxu1 }
 0x844   :  { %5507 = vst [vmem:[#allocation7_spill] sm:$0xff] %v4866_v46  ;;  %5508 = vst [vmem:[#allocation8_spill] sm:$0xff] %v4868_v49  ;;  %v4870_v4 = vpop.f32.mrb[55].mxu0  ;;  %v4872_v19 = vpop.f32.mrb[55].mxu1 }
 0x845   :  { %5509 = vst [vmem:[#allocation9_spill] sm:$0xff] %v4870_v4  ;;  %5510 = vst [vmem:[#allocation10_spill] sm:$0xff] %v4872_v19  ;;  %v3482_v55 = vpop.eup %3481 }
 0x846   :  { %v1472_v56 = vmul.f32 %v3482_v55, %v3480_v52 }
 0x848   :  { %v1486_v1 = vpack.c.bf16 %v1472_v56, %v4535_v34  ;;  %v3129_v34 = vld [vmem:[%s5445_s1 + $0x8] sm:$0xff] }
 0x849   :  { %v4875_v58 = vpop.f32.mrb[56].mxu0  ;;  %v4877_v57 = vpop.f32.mrb[56].mxu1  ;;  %v1919_v61 = vpack.c.bf16 %v3129_v34, %v3129_v34 }
 0x84a   :  { %5511 = vst [vmem:[#allocation11_spill] sm:$0xff] %v4875_v58  ;;  %5512 = vst [vmem:[#allocation12_spill] sm:$0xff] %v4877_v57  ;;  %v4879_v59 = vpop.f32.mrb[57].mxu0  ;;  %v4881_v53 = vpop.f32.mrb[57].mxu1  ;;  %1764 = vmatmul.mubr.bf16.gmra.mrb[60].mxu0 %v1486_v1  ;;  %1837 = vmatmul.mubr.bf16.gmra.mrb[60].mxu1 %v1486_v1 }
 0x84b   :  { %5513 = vst [vmem:[#allocation13_spill] sm:$0xff] %v4879_v59  ;;  %5514 = vst [vmem:[#allocation14_spill] sm:$0xff] %v4881_v53  ;;  %v4883_v14 = vpop.f32.mrb[58].mxu0  ;;  %v4885_v15 = vpop.f32.mrb[58].mxu1  ;;  %2112 = vmatprep.mubr.bf16.mxu0 %v5482_v7  ;;  %2153 = vmatprep.mubr.bf16.mxu1 %v5482_v7 }
 0x84c   :  { %5515 = vst [vmem:[#allocation15_spill] sm:$0xff] %v4883_v14  ;;  %5516 = vst [vmem:[#allocation16_spill] sm:$0xff] %v4885_v15  ;;  %v4892_v16 = vpop.f32.mrb[59].mxu0  ;;  %v4894_v17 = vpop.f32.mrb[59].mxu1 }
 0x84d   :  { %5517 = vst [vmem:[#allocation17_spill] sm:$0xff] %v4892_v16  ;;  %5518 = vst [vmem:[#allocation18_spill] sm:$0xff] %v4894_v17  ;;  %v5525_v17 = vld [vmem:[#allocation3_spill] sm:$0xff] }
 0x84e   :  { %v5526_v16 = vsub.s32 0, %v5525_v17  ;;  %v5527_v14 = vsub.s32 2, %v5525_v17 }
 0x850   :  { %v4947_v15 = vrot.slane %v1519_v47, %v5526_v16  ;;  %v4951_v53 = vrot.slane %v1519_v47, %v5527_v14 }
 0x852   :  { %2113 = vmatmul.mubr.bf16.vlgmr.msra.gmra.mrb[64].mxu0 %v1919_v61  ;;  %2154 = vmatmul.mubr.bf16.vlgmr.msra.gmra.mrb[64].mxu1 %v1919_v61  ;;  %v1736_v16 = vadd.f32 %v4842_v0, %v4947_v15 }
 0x853   :  { %2197 = vmatpush1.bf16.msra.mxu0 %v4657_v54  ;;  %2238 = vmatpush1.bf16.msra.mxu1 %v4662_v48 }
 0x854   :  { %2198 = vmatprep.subr.bf16.mxu0 %v4670_v10  ;;  %2239 = vmatprep.subr.bf16.mxu1 %v4675_v11 }
 0x855   :  { %2228 = vmatprep.mubr.bf16.mxu0 %v5482_v7  ;;  %2269 = vmatprep.mubr.bf16.mxu1 %v5482_v7 }
 0x857   :  { %2199 = vmatpush1.bf16.msra.mxu0 %v4680_v18  ;;  %2240 = vmatpush1.bf16.msra.mxu1 %v4685_v20 }
 0x858   :  { %2200 = vmatprep.subr.bf16.mxu0 %v4694_v21  ;;  %2241 = vmatprep.subr.bf16.mxu1 %v4699_v22 }
 0x85b   :  { %2201 = vmatpush1.bf16.msra.mxu0 %v4704_v24  ;;  %2242 = vmatpush1.bf16.msra.mxu1 %v4709_v25 }
 0x85c   :  { %2202 = vmatprep.subr.bf16.mxu0 %v4718_v37  ;;  %2243 = vmatprep.subr.bf16.mxu1 %v4723_v26 }
 0x85f   :  { %2203 = vmatpush1.bf16.msra.mxu0 %v4728_v39  ;;  %2244 = vmatpush1.bf16.msra.mxu1 %v4733_v27 }
 0x860   :  { %2204 = vmatprep.subr.bf16.mxu0 %v4742_v40  ;;  %2245 = vmatprep.subr.bf16.mxu1 %v4747_v28 }
 0x863   :  { %2205 = vmatpush1.bf16.msra.mxu0 %v4752_v41  ;;  %2246 = vmatpush1.bf16.msra.mxu1 %v4757_v30 }
 0x864   :  { %2206 = vmatprep.subr.bf16.mxu0 %v4766_v42  ;;  %2247 = vmatprep.subr.bf16.mxu1 %v4771_v31 }
 0x867   :  { %2207 = vmatpush1.bf16.msra.mxu0 %v4776_v43  ;;  %2248 = vmatpush1.bf16.msra.mxu1 %v4781_v32 }
 0x868   :  { %2208 = vmatprep.subr.bf16.mxu0 %v4790_v44  ;;  %2249 = vmatprep.subr.bf16.mxu1 %v4795_v12 }
 0x86b   :  { %2209 = vmatpush1.bf16.msra.mxu0 %v4800_v13  ;;  %2250 = vmatpush1.bf16.msra.mxu1 %v4805_v35 }
 0x86c   :  { %2210 = vmatprep.subr.bf16.mxu0 %v4814_v36  ;;  %2251 = vmatprep.subr.bf16.mxu1 %v4819_v50 }
 0x86f   :  { %2211 = vmatpush1.bf16.msra.mxu0 %v4824_v51  ;;  %2252 = vmatpush1.bf16.msra.mxu1 %v4829_v60 }
 0x870   :  { %2312 = vmatprep.subr.bf16.mxu0 %v4646_v63  ;;  %2353 = vmatprep.subr.bf16.mxu1 %v4651_v38 }
 0x91d   :  { %v4933_v52 = vpop.f32.mrb[60].mxu0  ;;  %v4935_v55 = vpop.f32.mrb[60].mxu1 }
 0x91e   :  { %5519 = vst [vmem:[#allocation19_spill] sm:$0xff] %v4933_v52  ;;  %5520 = vst [vmem:[#allocation20_spill] sm:$0xff] %v4935_v55  ;;  %v4937_v56 = vpop.f32.mrb[61].mxu0  ;;  %v4939_v1 = vpop.f32.mrb[61].mxu1 }
 0x91f   :  { %5521 = vst [vmem:[#allocation21_spill] sm:$0xff] %v4937_v56  ;;  %5522 = vst [vmem:[#allocation22_spill] sm:$0xff] %v4939_v1  ;;  %v4941_v34 = vpop.f32.mrb[62].mxu0  ;;  %v4943_v61 = vpop.f32.mrb[62].mxu1  ;;  %v5530_v56 = vsub.s32 1, %v5525_v17 }
 0x920   :  { %5523 = vst [vmem:[#allocation23_spill] sm:$0xff] %v4941_v34  ;;  %5524 = vst [vmem:[#allocation24_spill] sm:$0xff] %v4943_v61  ;;  %v4953_v59 = vpop.f32.mrb[63].mxu0  ;;  %v4955_v52 = vpop.f32.mrb[63].mxu1  ;;  %v5531_v34 = vsub.s32 3, %v5525_v17  ;;  %v1809_v61 = vadd.f32 %v4844_v3, %v4951_v53 }
 0x921   :  { %5528 = vst [vmem:[#allocation3_spill] sm:$0xff] %v4953_v59  ;;  %5529 = vst [vmem:[#allocation25_spill] sm:$0xff] %v4955_v52  ;;  %v4959_v55 = vrot.slane %v1519_v47, %v5530_v56 }
 0x922   :  { %v4963_v1 = vrot.slane %v1519_v47, %v5531_v34 }
 0x923   :  { %v1738_v14 = vadd.f32 %v4846_v5, %v4959_v55 }
 0x924   :  { %v1811_v52 = vadd.f32 %v4848_v62, %v4963_v1 }
 0x925   :  { %v2114_v59 = vpop.f32.mrb[64].mxu0  ;;  %v2155_v57 = vpop.f32.mrb[64].mxu1 }
 0x926   :  { %v2162_v56 = vadd.f32 %v2114_v59, %v1736_v16  ;;  %v2164_v58 = vadd.f32 %v2155_v57, %v1809_v61  ;;  %v2116_v19 = vpop.f32.mrb[65].mxu0  ;;  %v2157_v17 = vpop.f32.mrb[65].mxu1 }
 0x927   :  { %v2163_v47 = vadd.f32 %v2116_v19, %v1738_v14  ;;  %v2165_v34 = vadd.f32 %v2157_v17, %v1811_v52  ;;  %v2118_v4 = vpop.f32.mrb[66].mxu0  ;;  %v2159_v49 = vpop.f32.mrb[66].mxu1  ;;  %v1813_v17 = vadd.f32 %v4852_v29, %v4951_v53 }
 0x928   :  { %v3163_v0 = vmul.f32 -1.442695, %v2162_v56  ;;  %v2119_v46 = vpop.f32.mrb[67].mxu0  ;;  %v2160_v8 = vpop.f32.mrb[67].mxu1  ;;  %v3130_v49 = vld [vmem:[%s5447_s2 + $0x8] sm:$0xff]  ;;  %v1740_v56 = vadd.f32 %v4850_v9, %v4947_v15 }
 0x929   :  { %v3164_v3 = vmul.f32 -1.442695, %v2163_v47  ;;  %v3165_v5 = vmul.f32 -1.442695, %v2165_v34  ;;  %v1742_v47 = vadd.f32 %v4854_v23, %v4959_v55  ;;  %v1815_v34 = vadd.f32 %v4856_v6, %v4963_v1 }
 0x92a   :  { %3483 = vpow2.f32 %v3163_v0 }
 0x92b   :  { %3485 = vpow2.f32 %v3164_v3 }
 0x92c   :  { %3487 = vpow2.f32 %v3165_v5 }
 0x92d   :  { %3489 = vtanh.f32 %v2164_v58 }
 0x934   :  { %v3484_v2 = vpop.eup %3483 }
 0x935   :  { %v3486_v45 = vpop.eup %3485  ;;  %v2169_v62 = vadd.f32 1.0, %v3484_v2 }
 0x936   :  { %v2175_v59 = vadd.f32 1.0, %v3486_v45  ;;  %v3488_v57 = vpop.eup %3487 }
 0x937   :  { %3491 = vrcp.f32 %v2169_v62  ;;  %v3490_v19 = vpop.eup %3489  ;;  %v2182_v52 = vadd.f32 1.0, %v3488_v57 }
 0x938   :  { %3493 = vrcp.f32 %v2175_v59 }
 0x939   :  { %3495 = vrcp.f32 %v2182_v52 }
 0x941   :  { %v3492_v46 = vpop.eup %3491 }
 0x942   :  { %v3494_v8 = vpop.eup %3493  ;;  %v2186_v4 = vmul.f32 %v3492_v46, %v3490_v19 }
 0x943   :  { %v2185_v61 = vmul.f32 %v3494_v8, %v3130_v49  ;;  %v3496_v2 = vpop.eup %3495 }
 0x945   :  { %v4976_v16 = vadd.f32 %v2186_v4, %v2185_v61 }
 0x947   :  { %3497 = vtanh.f32 %v4976_v16 }
 0x951   :  { %v3498_v45 = vpop.eup %3497 }
 0x952   :  { %v2189_v58 = vmul.f32 %v3498_v45, %v3496_v2 }
 0x954   :  { %2190 = vst [vmem:[%s5451_s9] sm:$0xff] %v2189_v58  ;;  %v2195_v14 = vpack.c.bf16 %v2189_v58, %v2189_v58 }
 0x956   :  { %2229 = vmatmul.mubr.bf16.vlgmr.msra.gmra.mrb[68].mxu0 %v2195_v14  ;;  %2270 = vmatmul.mubr.bf16.vlgmr.msra.gmra.mrb[68].mxu1 %v2195_v14 }
 0x957   :  { %2313 = vmatpush1.bf16.msra.mxu0 %v4657_v54  ;;  %2354 = vmatpush1.bf16.msra.mxu1 %v4662_v48 }
 0x958   :  { %2314 = vmatprep.subr.bf16.mxu0 %v4670_v10  ;;  %2355 = vmatprep.subr.bf16.mxu1 %v4675_v11 }
 0x959   :  { %2344 = vmatprep.mubr.bf16.mxu0 %v5482_v7  ;;  %2385 = vmatprep.mubr.bf16.mxu1 %v5482_v7 }
 0x95b   :  { %2315 = vmatpush1.bf16.msra.mxu0 %v4680_v18  ;;  %2356 = vmatpush1.bf16.msra.mxu1 %v4685_v20 }
 0x95c   :  { %2316 = vmatprep.subr.bf16.mxu0 %v4694_v21  ;;  %2357 = vmatprep.subr.bf16.mxu1 %v4699_v22 }
 0x95f   :  { %2317 = vmatpush1.bf16.msra.mxu0 %v4704_v24  ;;  %2358 = vmatpush1.bf16.msra.mxu1 %v4709_v25 }
 0x960   :  { %2318 = vmatprep.subr.bf16.mxu0 %v4718_v37  ;;  %2359 = vmatprep.subr.bf16.mxu1 %v4723_v26 }
 0x963   :  { %2319 = vmatpush1.bf16.msra.mxu0 %v4728_v39  ;;  %2360 = vmatpush1.bf16.msra.mxu1 %v4733_v27 }
 0x964   :  { %2320 = vmatprep.subr.bf16.mxu0 %v4742_v40  ;;  %2361 = vmatprep.subr.bf16.mxu1 %v4747_v28 }
 0x967   :  { %2321 = vmatpush1.bf16.msra.mxu0 %v4752_v41  ;;  %2362 = vmatpush1.bf16.msra.mxu1 %v4757_v30 }
 0x968   :  { %2322 = vmatprep.subr.bf16.mxu0 %v4766_v42  ;;  %2363 = vmatprep.subr.bf16.mxu1 %v4771_v31 }
 0x96b   :  { %2323 = vmatpush1.bf16.msra.mxu0 %v4776_v43  ;;  %2364 = vmatpush1.bf16.msra.mxu1 %v4781_v32 }
 0x96c   :  { %2324 = vmatprep.subr.bf16.mxu0 %v4790_v44  ;;  %2365 = vmatprep.subr.bf16.mxu1 %v4795_v12 }
 0x96f   :  { %2325 = vmatpush1.bf16.msra.mxu0 %v4800_v13  ;;  %2366 = vmatpush1.bf16.msra.mxu1 %v4805_v35 }
 0x970   :  { %2326 = vmatprep.subr.bf16.mxu0 %v4814_v36  ;;  %2367 = vmatprep.subr.bf16.mxu1 %v4819_v50 }
 0x973   :  { %2327 = vmatpush1.bf16.msra.mxu0 %v4824_v51  ;;  %2368 = vmatpush1.bf16.msra.mxu1 %v4829_v60 }
 0x974   :  { %2428 = vmatprep.subr.bf16.mxu0 %v4646_v63  ;;  %2469 = vmatprep.subr.bf16.mxu1 %v4651_v38 }
 0xa29   :  { %v2230_v0 = vpop.f32.mrb[68].mxu0  ;;  %v2271_v3 = vpop.f32.mrb[68].mxu1 }
 0xa2a   :  { %v2278_v5 = vadd.f32 %v2230_v0, %v1740_v56  ;;  %v2280_v62 = vadd.f32 %v2271_v3, %v1813_v17  ;;  %v2232_v59 = vpop.f32.mrb[69].mxu0  ;;  %v2273_v57 = vpop.f32.mrb[69].mxu1 }
 0xa2b   :  { %v2279_v19 = vadd.f32 %v2232_v59, %v1742_v47  ;;  %v2281_v49 = vadd.f32 %v2273_v57, %v1815_v34  ;;  %v2234_v46 = vpop.f32.mrb[70].mxu0  ;;  %v2275_v8 = vpop.f32.mrb[70].mxu1 }
 0xa2c   :  { %v3166_v9 = vmul.f32 -1.442695, %v2278_v5  ;;  %v2235_v4 = vpop.f32.mrb[71].mxu0  ;;  %v2276_v52 = vpop.f32.mrb[71].mxu1  ;;  %v5533_v46 = vld [vmem:[#allocation5_spill] sm:$0xff] }
 0xa2d   :  { %v3167_v29 = vmul.f32 -1.442695, %v2279_v19  ;;  %v3168_v23 = vmul.f32 -1.442695, %v2281_v49  ;;  %v5532_v19 = vld [vmem:[#allocation4_spill] sm:$0xff]  ;;  %v1748_v8 = vadd.f32 %v5533_v46, %v4959_v55 }
 0xa2e   :  { %3499 = vpow2.f32 %v3166_v9  ;;  %v1819_v49 = vadd.f32 %v5532_v19, %v4951_v53  ;;  %v5534_v9 = vld [vmem:[#allocation6_spill] sm:$0xff] }
 0xa2f   :  { %3501 = vpow2.f32 %v3167_v29  ;;  %v1821_v4 = vadd.f32 %v5534_v9, %v4963_v1 }
 0xa30   :  { %3503 = vpow2.f32 %v3168_v23 }
 0xa31   :  { %3505 = vtanh.f32 %v2280_v62 }
 0xa38   :  { %v3500_v61 = vpop.eup %3499 }
 0xa39   :  { %v3502_v2 = vpop.eup %3501  ;;  %v2285_v6 = vadd.f32 1.0, %v3500_v61 }
 0xa3a   :  { %v2291_v45 = vadd.f32 1.0, %v3502_v2  ;;  %v3504_v58 = vpop.eup %3503 }
 0xa3b   :  { %3507 = vrcp.f32 %v2285_v6  ;;  %v3506_v14 = vpop.eup %3505  ;;  %v2298_v34 = vadd.f32 1.0, %v3504_v58 }
 0xa3c   :  { %3509 = vrcp.f32 %v2291_v45 }
 0xa3d   :  { %3511 = vrcp.f32 %v2298_v34 }
 0xa45   :  { %v3508_v56 = vpop.eup %3507 }
 0xa46   :  { %v3510_v17 = vpop.eup %3509  ;;  %v2302_v47 = vmul.f32 %v3508_v56, %v3506_v14 }
 0xa47   :  { %v2301_v0 = vmul.f32 %v3510_v17, %v4976_v16  ;;  %v3512_v5 = vpop.eup %3511  ;;  %v1746_v16 = vadd.f32 %v4858_v33, %v4947_v15 }
 0xa49   :  { %v5025_v3 = vadd.f32 %v2302_v47, %v2301_v0 }
 0xa4b   :  { %3513 = vtanh.f32 %v5025_v3 }
 0xa55   :  { %v3514_v59 = vpop.eup %3513 }
 0xa56   :  { %v2305_v57 = vmul.f32 %v3514_v59, %v3512_v5 }
 0xa58   :  { %3169 = vst [vmem:[%s5451_s9 + $0x8] sm:$0xff] %v2305_v57  ;;  %v2311_v62 = vpack.c.bf16 %v2305_v57, %v2305_v57 }
 0xa5a   :  { %2345 = vmatmul.mubr.bf16.vlgmr.msra.gmra.mrb[72].mxu0 %v2311_v62  ;;  %2386 = vmatmul.mubr.bf16.vlgmr.msra.gmra.mrb[72].mxu1 %v2311_v62 }
 0xa5b   :  { %2429 = vmatpush1.bf16.msra.mxu0 %v4657_v54  ;;  %2470 = vmatpush1.bf16.msra.mxu1 %v4662_v48 }
 0xa5c   :  { %2430 = vmatprep.subr.bf16.mxu0 %v4670_v10  ;;  %2471 = vmatprep.subr.bf16.mxu1 %v4675_v11 }
 0xa5d   :  { %2460 = vmatprep.mubr.bf16.mxu0 %v5482_v7  ;;  %2501 = vmatprep.mubr.bf16.mxu1 %v5482_v7 }
 0xa5f   :  { %2431 = vmatpush1.bf16.msra.mxu0 %v4680_v18  ;;  %2472 = vmatpush1.bf16.msra.mxu1 %v4685_v20 }
 0xa60   :  { %2432 = vmatprep.subr.bf16.mxu0 %v4694_v21  ;;  %2473 = vmatprep.subr.bf16.mxu1 %v4699_v22 }
 0xa63   :  { %2433 = vmatpush1.bf16.msra.mxu0 %v4704_v24  ;;  %2474 = vmatpush1.bf16.msra.mxu1 %v4709_v25 }
 0xa64   :  { %2434 = vmatprep.subr.bf16.mxu0 %v4718_v37  ;;  %2475 = vmatprep.subr.bf16.mxu1 %v4723_v26 }
 0xa67   :  { %2435 = vmatpush1.bf16.msra.mxu0 %v4728_v39  ;;  %2476 = vmatpush1.bf16.msra.mxu1 %v4733_v27 }
 0xa68   :  { %2436 = vmatprep.subr.bf16.mxu0 %v4742_v40  ;;  %2477 = vmatprep.subr.bf16.mxu1 %v4747_v28 }
 0xa6b   :  { %2437 = vmatpush1.bf16.msra.mxu0 %v4752_v41  ;;  %2478 = vmatpush1.bf16.msra.mxu1 %v4757_v30 }
 0xa6c   :  { %2438 = vmatprep.subr.bf16.mxu0 %v4766_v42  ;;  %2479 = vmatprep.subr.bf16.mxu1 %v4771_v31 }
 0xa6f   :  { %2439 = vmatpush1.bf16.msra.mxu0 %v4776_v43  ;;  %2480 = vmatpush1.bf16.msra.mxu1 %v4781_v32 }
 0xa70   :  { %2440 = vmatprep.subr.bf16.mxu0 %v4790_v44  ;;  %2481 = vmatprep.subr.bf16.mxu1 %v4795_v12 }
 0xa73   :  { %2441 = vmatpush1.bf16.msra.mxu0 %v4800_v13  ;;  %2482 = vmatpush1.bf16.msra.mxu1 %v4805_v35 }
 0xa74   :  { %2442 = vmatprep.subr.bf16.mxu0 %v4814_v36  ;;  %2483 = vmatprep.subr.bf16.mxu1 %v4819_v50 }
 0xa77   :  { %2443 = vmatpush1.bf16.msra.mxu0 %v4824_v51  ;;  %2484 = vmatpush1.bf16.msra.mxu1 %v4829_v60 }
 0xa78   :  { %2544 = vmatprep.subr.bf16.mxu0 %v4646_v63  ;;  %2585 = vmatprep.subr.bf16.mxu1 %v4651_v38 }
 0xb2d   :  { %v2346_v52 = vpop.f32.mrb[72].mxu0  ;;  %v2387_v29 = vpop.f32.mrb[72].mxu1 }
 0xb2e   :  { %v2394_v23 = vadd.f32 %v2346_v52, %v1746_v16  ;;  %v2396_v61 = vadd.f32 %v2387_v29, %v1819_v49  ;;  %v2348_v2 = vpop.f32.mrb[73].mxu0  ;;  %v2389_v6 = vpop.f32.mrb[73].mxu1 }
 0xb2f   :  { %v2395_v45 = vadd.f32 %v2348_v2, %v1748_v8  ;;  %v2397_v58 = vadd.f32 %v2389_v6, %v1821_v4  ;;  %v2350_v14 = vpop.f32.mrb[74].mxu0  ;;  %v2391_v56 = vpop.f32.mrb[74].mxu1 }
 0xb30   :  { %v3170_v33 = vmul.f32 -1.442695, %v2394_v23  ;;  %v2351_v17 = vpop.f32.mrb[75].mxu0  ;;  %v2392_v47 = vpop.f32.mrb[75].mxu1  ;;  %v5537_v14 = vld [vmem:[#allocation9_spill] sm:$0xff] }
 0xb31   :  { %v3171_v34 = vmul.f32 -1.442695, %v2395_v45  ;;  %v3172_v0 = vmul.f32 -1.442695, %v2397_v58  ;;  %v5536_v45 = vld [vmem:[#allocation8_spill] sm:$0xff]  ;;  %v1752_v56 = vadd.f32 %v5537_v14, %v4959_v55 }
 0xb32   :  { %3515 = vpow2.f32 %v3170_v33  ;;  %v1823_v58 = vadd.f32 %v5536_v45, %v4951_v53  ;;  %v5538_v33 = vld [vmem:[#allocation10_spill] sm:$0xff] }
 0xb33   :  { %3517 = vpow2.f32 %v3171_v34  ;;  %v1825_v17 = vadd.f32 %v5538_v33, %v4963_v1 }
 0xb34   :  { %3519 = vpow2.f32 %v3172_v0 }
 0xb35   :  { %3521 = vtanh.f32 %v2396_v61 }
 0xb3c   :  { %v3516_v5 = vpop.eup %3515 }
 0xb3d   :  { %v3518_v59 = vpop.eup %3517  ;;  %v2401_v57 = vadd.f32 1.0, %v3516_v5 }
 0xb3e   :  { %v2407_v62 = vadd.f32 1.0, %v3518_v59  ;;  %v3520_v16 = vpop.eup %3519 }
 0xb3f   :  { %3523 = vrcp.f32 %v2401_v57  ;;  %v3522_v19 = vpop.eup %3521  ;;  %v2414_v9 = vadd.f32 1.0, %v3520_v16 }
 0xb40   :  { %3525 = vrcp.f32 %v2407_v62 }
 0xb41   :  { %3527 = vrcp.f32 %v2414_v9 }
 0xb49   :  { %v3524_v49 = vpop.eup %3523 }
 0xb4a   :  { %v3526_v46 = vpop.eup %3525  ;;  %v2418_v8 = vmul.f32 %v3524_v49, %v3522_v19 }
 0xb4b   :  { %v2417_v4 = vmul.f32 %v3526_v46, %v5025_v3  ;;  %v3528_v29 = vpop.eup %3527  ;;  %v5535_v3 = vld [vmem:[#allocation7_spill] sm:$0xff] }
 0xb4c   :  { %v1750_v6 = vadd.f32 %v5535_v3, %v4947_v15 }
 0xb4d   :  { %v5074_v52 = vadd.f32 %v2418_v8, %v2417_v4 }
 0xb4f   :  { %3529 = vtanh.f32 %v5074_v52 }
 0xb59   :  { %v3530_v23 = vpop.eup %3529 }
 0xb5a   :  { %v2421_v2 = vmul.f32 %v3530_v23, %v3528_v29 }
 0xb5c   :  { %3173 = vst [vmem:[%s5451_s9 + $0x10] sm:$0xff] %v2421_v2  ;;  %v2427_v61 = vpack.c.bf16 %v2421_v2, %v2421_v2 }
 0xb5e   :  { %2461 = vmatmul.mubr.bf16.vlgmr.msra.gmra.mrb[76].mxu0 %v2427_v61  ;;  %2502 = vmatmul.mubr.bf16.vlgmr.msra.gmra.mrb[76].mxu1 %v2427_v61 }
 0xb5f   :  { %2545 = vmatpush1.bf16.msra.mxu0 %v4657_v54  ;;  %2586 = vmatpush1.bf16.msra.mxu1 %v4662_v48 }
 0xb60   :  { %2546 = vmatprep.subr.bf16.mxu0 %v4670_v10  ;;  %2587 = vmatprep.subr.bf16.mxu1 %v4675_v11 }
 0xb61   :  { %2576 = vmatprep.mubr.bf16.mxu0 %v5482_v7  ;;  %2617 = vmatprep.mubr.bf16.mxu1 %v5482_v7 }
 0xb63   :  { %2547 = vmatpush1.bf16.msra.mxu0 %v4680_v18  ;;  %2588 = vmatpush1.bf16.msra.mxu1 %v4685_v20 }
 0xb64   :  { %2548 = vmatprep.subr.bf16.mxu0 %v4694_v21  ;;  %2589 = vmatprep.subr.bf16.mxu1 %v4699_v22 }
 0xb67   :  { %2549 = vmatpush1.bf16.msra.mxu0 %v4704_v24  ;;  %2590 = vmatpush1.bf16.msra.mxu1 %v4709_v25 }
 0xb68   :  { %2550 = vmatprep.subr.bf16.mxu0 %v4718_v37  ;;  %2591 = vmatprep.subr.bf16.mxu1 %v4723_v26 }
 0xb6b   :  { %2551 = vmatpush1.bf16.msra.mxu0 %v4728_v39  ;;  %2592 = vmatpush1.bf16.msra.mxu1 %v4733_v27 }
 0xb6c   :  { %2552 = vmatprep.subr.bf16.mxu0 %v4742_v40  ;;  %2593 = vmatprep.subr.bf16.mxu1 %v4747_v28 }
 0xb6f   :  { %2553 = vmatpush1.bf16.msra.mxu0 %v4752_v41  ;;  %2594 = vmatpush1.bf16.msra.mxu1 %v4757_v30 }
 0xb70   :  { %2554 = vmatprep.subr.bf16.mxu0 %v4766_v42  ;;  %2595 = vmatprep.subr.bf16.mxu1 %v4771_v31 }
 0xb73   :  { %2555 = vmatpush1.bf16.msra.mxu0 %v4776_v43  ;;  %2596 = vmatpush1.bf16.msra.mxu1 %v4781_v32 }
 0xb74   :  { %2556 = vmatprep.subr.bf16.mxu0 %v4790_v44  ;;  %2597 = vmatprep.subr.bf16.mxu1 %v4795_v12 }
 0xb77   :  { %2557 = vmatpush1.bf16.msra.mxu0 %v4800_v13  ;;  %2598 = vmatpush1.bf16.msra.mxu1 %v4805_v35 }
 0xb78   :  { %2558 = vmatprep.subr.bf16.mxu0 %v4814_v36  ;;  %2599 = vmatprep.subr.bf16.mxu1 %v4819_v50 }
 0xb7b   :  { %2559 = vmatpush1.bf16.msra.mxu0 %v4824_v51  ;;  %2600 = vmatpush1.bf16.msra.mxu1 %v4829_v60 }
 0xb7c   :  { %2660 = vmatprep.subr.bf16.mxu0 %v4646_v63  ;;  %2701 = vmatprep.subr.bf16.mxu1 %v4651_v38 }
 0xc31   :  { %v2462_v47 = vpop.f32.mrb[76].mxu0  ;;  %v2503_v34 = vpop.f32.mrb[76].mxu1 }
 0xc32   :  { %v2510_v0 = vadd.f32 %v2462_v47, %v1750_v6  ;;  %v2512_v5 = vadd.f32 %v2503_v34, %v1823_v58  ;;  %v2464_v59 = vpop.f32.mrb[77].mxu0  ;;  %v2505_v63 = vpop.f32.mrb[77].mxu1 }
 0xc33   :  { %v2511_v57 = vadd.f32 %v2464_v59, %v1752_v56  ;;  %v2513_v38 = vadd.f32 %v2505_v63, %v1825_v17  ;;  %v2466_v62 = vpop.f32.mrb[78].mxu0  ;;  %v2507_v16 = vpop.f32.mrb[78].mxu1 }
 0xc34   :  { %v3174_v19 = vmul.f32 -1.442695, %v2510_v0  ;;  %v2467_v49 = vpop.f32.mrb[79].mxu0  ;;  %v2508_v46 = vpop.f32.mrb[79].mxu1 }
 0xc35   :  { %v3175_v8 = vmul.f32 -1.442695, %v2511_v57  ;;  %v3176_v9 = vmul.f32 -1.442695, %v2513_v38 }
 0xc36   :  { %3531 = vpow2.f32 %v3174_v19 }
 0xc37   :  { %3533 = vpow2.f32 %v3175_v8  ;;  %v5191_v8 = vld [vmem:[%s5449_s7] ss:$16 sps:$4 sm:$0xff]  }
 0xc38   :  { %3535 = vpow2.f32 %v3176_v9  ;;  %v5197_v9 = vld [vmem:[%s5449_s7 + $0x8] ss:$16 sps:$4 sm:$0xff]  }
 0xc39   :  { %3537 = vtanh.f32 %v2512_v5 }
 0xc40   :  { %v3532_v4 = vpop.eup %3531 }
 0xc41   :  { %v3534_v29 = vpop.eup %3533  ;;  %v2517_v23 = vadd.f32 1.0, %v3532_v4  ;;  %v5203_v4 = vld [vmem:[%s5449_s7 + $0x24] ss:$16 sps:$4 sm:$0xff]  }
 0xc42   :  { %v2523_v2 = vadd.f32 1.0, %v3534_v29  ;;  %v3536_v61 = vpop.eup %3535  ;;  %v5209_v29 = vld [vmem:[%s5449_s7 + $0x2c] ss:$16 sps:$4 sm:$0xff]  }
 0xc43   :  { %3539 = vrcp.f32 %v2517_v23  ;;  %v3538_v3 = vpop.eup %3537  ;;  %v2530_v14 = vadd.f32 1.0, %v3536_v61  ;;  %v5217_v23 = vld [vmem:[%s5449_s7 + $0x20] ss:$16 sps:$4 sm:$0xff]   ;;  %v5229_v61 = vld [vmem:[%s5449_s7 + $0x44] ss:$16 sps:$4 sm:$0xff]  }
 0xc44   :  { %3541 = vrcp.f32 %v2523_v2  ;;  %v5223_v2 = vld [vmem:[%s5449_s7 + $0x28] ss:$16 sps:$4 sm:$0xff]  }
 0xc45   :  { %3543 = vrcp.f32 %v2530_v14  ;;  %v5259_v14 = vld [vmem:[%s5449_s7 + $0x6c] ss:$16 sps:$4 sm:$0xff]  }
 0xc4d   :  { %v3540_v6 = vpop.eup %3539 }
 0xc4e   :  { %v3542_v45 = vpop.eup %3541  ;;  %v2534_v58 = vmul.f32 %v3540_v6, %v3538_v3  ;;  %v5235_v3 = vld [vmem:[%s5449_s7 + $0x4c] ss:$16 sps:$4 sm:$0xff]   ;;  %v5241_v6 = vld [vmem:[%s5449_s7 + $0x40] ss:$16 sps:$4 sm:$0xff]  }
 0xc4f   :  { %v2533_v56 = vmul.f32 %v3542_v45, %v5074_v52  ;;  %v3544_v17 = vpop.eup %3543  ;;  %v5247_v45 = vld [vmem:[%s5449_s7 + $0x48] ss:$16 sps:$4 sm:$0xff]  }
 0xc51   :  { %v5123_v33 = vadd.f32 %v2534_v58, %v2533_v56  ;;  %v5253_v58 = vld [vmem:[%s5449_s7 + $0x64] ss:$16 sps:$4 sm:$0xff]   ;;  %v5265_v56 = vld [vmem:[%s5449_s7 + $0x60] ss:$16 sps:$4 sm:$0xff]  }
 0xc53   :  { %3545 = vtanh.f32 %v5123_v33 }
 0xc5d   :  { %v3546_v47 = vpop.eup %3545 }
 0xc5e   :  { %v2537_v34 = vmul.f32 %v3546_v47, %v3544_v17  ;;  %v5277_v17 = vld [vmem:[%s5449_s7 + $0x84] ss:$16 sps:$4 sm:$0xff]   ;;  %v5283_v47 = vld [vmem:[%s5449_s7 + $0x8c] ss:$16 sps:$4 sm:$0xff]  }
 0xc60   :  { %3177 = vst [vmem:[%s5451_s9 + $0x18] sm:$0xff] %v2537_v34  ;;  %v2543_v0 = vpack.c.bf16 %v2537_v34, %v2537_v34  ;;  %v5289_v34 = vld [vmem:[%s5449_s7 + $0x80] ss:$16 sps:$4 sm:$0xff]  }
 0xc62   :  { %2577 = vmatmul.mubr.bf16.vlgmr.msra.gmra.mrb[80].mxu0 %v2543_v0  ;;  %2618 = vmatmul.mubr.bf16.vlgmr.msra.gmra.mrb[80].mxu1 %v2543_v0  ;;  %v5295_v0 = vld [vmem:[%s5449_s7 + $0x88] ss:$16 sps:$4 sm:$0xff]  }
 0xc63   :  { %2661 = vmatpush1.bf16.msra.mxu0 %v4657_v54  ;;  %2702 = vmatpush1.bf16.msra.mxu1 %v4662_v48  ;;  %v5164_v54 = vld [vmem:[%s5449_s7 + $0x4] ss:$16 sps:$4 sm:$0xff]   ;;  %v5170_v48 = vld [vmem:[%s5449_s7 + $0xc] ss:$16 sps:$4 sm:$0xff]  }
 0xc64   :  { %2662 = vmatprep.subr.bf16.mxu0 %v4670_v10  ;;  %2703 = vmatprep.subr.bf16.mxu1 %v4675_v11  ;;  %v5539_v10 = vld [vmem:[#allocation11_spill] sm:$0xff] }
 0xc65   :  { %2692 = vmatprep.mubr.bf16.mxu0 %v5482_v7  ;;  %2733 = vmatprep.mubr.bf16.mxu1 %v5482_v7  ;;  %v1756_v11 = vadd.f32 %v5539_v10, %v4947_v15  ;;  %v5301_v10 = vld [vmem:[%s5449_s7 + $0xa4] ss:$16 sps:$4 sm:$0xff]  }
 0xc67   :  { %2663 = vmatpush1.bf16.msra.mxu0 %v4680_v18  ;;  %2704 = vmatpush1.bf16.msra.mxu1 %v4685_v20  ;;  %v5540_v18 = vld [vmem:[#allocation12_spill] sm:$0xff] }
 0xc68   :  { %2664 = vmatprep.subr.bf16.mxu0 %v4694_v21  ;;  %2705 = vmatprep.subr.bf16.mxu1 %v4699_v22  ;;  %v1829_v20 = vadd.f32 %v5540_v18, %v4951_v53  ;;  %v5541_v21 = vld [vmem:[#allocation13_spill] sm:$0xff] }
 0xc69   :  { %v1758_v22 = vadd.f32 %v5541_v21, %v4959_v55  ;;  %v5313_v18 = vld [vmem:[%s5449_s7 + $0xa0] ss:$16 sps:$4 sm:$0xff]   ;;  %v5325_v21 = vld [vmem:[%s5449_s7 + $0xc4] ss:$16 sps:$4 sm:$0xff]  }
 0xc6b   :  { %2665 = vmatpush1.bf16.msra.mxu0 %v4704_v24  ;;  %2706 = vmatpush1.bf16.msra.mxu1 %v4709_v25  ;;  %v5542_v24 = vld [vmem:[#allocation14_spill] sm:$0xff] }
 0xc6c   :  { %2666 = vmatprep.subr.bf16.mxu0 %v4718_v37  ;;  %2707 = vmatprep.subr.bf16.mxu1 %v4723_v26  ;;  %v1831_v25 = vadd.f32 %v5542_v24, %v4963_v1  ;;  %v5337_v24 = vld [vmem:[%s5449_s7 + $0xc0] ss:$16 sps:$4 sm:$0xff]  }
 0xc6f   :  { %2667 = vmatpush1.bf16.msra.mxu0 %v4728_v39  ;;  %2708 = vmatpush1.bf16.msra.mxu1 %v4733_v27 }
 0xc70   :  { %2668 = vmatprep.subr.bf16.mxu0 %v4742_v40  ;;  %2709 = vmatprep.subr.bf16.mxu1 %v4747_v28 }
 0xc73   :  { %2669 = vmatpush1.bf16.msra.mxu0 %v4752_v41  ;;  %2710 = vmatpush1.bf16.msra.mxu1 %v4757_v30 }
 0xc74   :  { %2670 = vmatprep.subr.bf16.mxu0 %v4766_v42  ;;  %2711 = vmatprep.subr.bf16.mxu1 %v4771_v31 }
 0xc77   :  { %2671 = vmatpush1.bf16.msra.mxu0 %v4776_v43  ;;  %2712 = vmatpush1.bf16.msra.mxu1 %v4781_v32 }
 0xc78   :  { %2672 = vmatprep.subr.bf16.mxu0 %v4790_v44  ;;  %2713 = vmatprep.subr.bf16.mxu1 %v4795_v12 }
 0xc7b   :  { %2673 = vmatpush1.bf16.msra.mxu0 %v4800_v13  ;;  %2714 = vmatpush1.bf16.msra.mxu1 %v4805_v35 }
 0xc7c   :  { %2674 = vmatprep.subr.bf16.mxu0 %v4814_v36  ;;  %2715 = vmatprep.subr.bf16.mxu1 %v4819_v50 }
 0xc7f   :  { %2675 = vmatpush1.bf16.msra.mxu0 %v4824_v51  ;;  %2716 = vmatpush1.bf16.msra.mxu1 %v4829_v60 }
 0xc80   :  { %2776 = vmatprep.subr.bf16.mxu0 %v5164_v54  ;;  %2817 = vmatprep.subr.bf16.mxu1 %v5170_v48 }
 0xd35   :  { %v2578_v37 = vpop.f32.mrb[80].mxu0  ;;  %v2619_v26 = vpop.f32.mrb[80].mxu1 }
 0xd36   :  { %v2626_v39 = vadd.f32 %v2578_v37, %v1756_v11  ;;  %v2628_v27 = vadd.f32 %v2619_v26, %v1829_v20  ;;  %v2580_v40 = vpop.f32.mrb[81].mxu0  ;;  %v2621_v28 = vpop.f32.mrb[81].mxu1  ;;  %v5307_v11 = vld [vmem:[%s5449_s7 + $0xac] ss:$16 sps:$4 sm:$0xff]   ;;  %v5319_v20 = vld [vmem:[%s5449_s7 + $0xa8] ss:$16 sps:$4 sm:$0xff]  }
 0xd37   :  { %v2627_v41 = vadd.f32 %v2580_v40, %v1758_v22  ;;  %v2629_v30 = vadd.f32 %v2621_v28, %v1831_v25  ;;  %v2582_v42 = vpop.f32.mrb[82].mxu0  ;;  %v2623_v31 = vpop.f32.mrb[82].mxu1  ;;  %v5331_v22 = vld [vmem:[%s5449_s7 + $0xcc] ss:$16 sps:$4 sm:$0xff]   ;;  %v5343_v25 = vld [vmem:[%s5449_s7 + $0xc8] ss:$16 sps:$4 sm:$0xff]  }
 0xd38   :  { %v3178_v43 = vmul.f32 -1.442695, %v2626_v39  ;;  %v2583_v32 = vpop.f32.mrb[83].mxu0  ;;  %v2624_v44 = vpop.f32.mrb[83].mxu1  ;;  %v5349_v37 = vld [vmem:[%s5449_s7 + $0xe4] ss:$16 sps:$4 sm:$0xff]  }
 0xd39   :  { %v3179_v12 = vmul.f32 -1.442695, %v2627_v41  ;;  %v3180_v13 = vmul.f32 -1.442695, %v2629_v30  ;;  %v5355_v26 = vld [vmem:[%s5449_s7 + $0xec] ss:$16 sps:$4 sm:$0xff]  }
 0xd3a   :  { %3547 = vpow2.f32 %v3178_v43  ;;  %v5361_v39 = vld [vmem:[%s5449_s7 + $0xe0] ss:$16 sps:$4 sm:$0xff]   ;;  %v5544_v41 = vld [vmem:[#allocation16_spill] sm:$0xff]  ;;  %v5546_v43 = vld [vmem:[#allocation18_spill] sm:$0xff] }
 0xd3b   :  { %3549 = vpow2.f32 %v3179_v12  ;;  %v5543_v40 = vld [vmem:[#allocation15_spill] sm:$0xff]  ;;  %v1833_v30 = vadd.f32 %v5544_v41, %v4951_v53  ;;  %v5545_v42 = vld [vmem:[#allocation17_spill] sm:$0xff]  ;;  %v1835_v32 = vadd.f32 %v5546_v43, %v4963_v1 }
 0xd3c   :  { %3551 = vpow2.f32 %v3180_v13  ;;  %v1760_v28 = vadd.f32 %v5543_v40, %v4947_v15  ;;  %v1762_v31 = vadd.f32 %v5545_v42, %v4959_v55 }
 0xd3d   :  { %3553 = vtanh.f32 %v2628_v27  ;;  %v5367_v27 = vld [vmem:[%s5449_s7 + $0xe8] ss:$16 sps:$4 sm:$0xff]  }
 0xd44   :  { %v3548_v35 = vpop.eup %3547 }
 0xd45   :  { %v3550_v36 = vpop.eup %3549  ;;  %v2633_v50 = vadd.f32 1.0, %v3548_v35 }
 0xd46   :  { %v2639_v51 = vadd.f32 1.0, %v3550_v36  ;;  %v3552_v60 = vpop.eup %3551 }
 0xd47   :  { %3555 = vrcp.f32 %v2633_v50  ;;  %v3554_v52 = vpop.eup %3553  ;;  %v2646_v57 = vadd.f32 1.0, %v3552_v60 }
 0xd48   :  { %3557 = vrcp.f32 %v2639_v51 }
 0xd49   :  { %3559 = vrcp.f32 %v2646_v57 }
 0xd51   :  { %v3556_v5 = vpop.eup %3555 }
 0xd52   :  { %v3558_v59 = vpop.eup %3557  ;;  %v2650_v63 = vmul.f32 %v3556_v5, %v3554_v52 }
 0xd53   :  { %v2649_v38 = vmul.f32 %v3558_v59, %v5123_v33  ;;  %v3560_v16 = vpop.eup %3559  ;;  %v5271_v33 = vld [vmem:[%s5449_s7 + $0x68] ss:$16 sps:$4 sm:$0xff]  }
 0xd55   :  { %v5182_v62 = vadd.f32 %v2650_v63, %v2649_v38 }
 0xd57   :  { %3561 = vtanh.f32 %v5182_v62 }
 0xd61   :  { %v3562_v19 = vpop.eup %3561 }
 0xd62   :  { %v2653_v49 = vmul.f32 %v3562_v19, %v3560_v16 }
 0xd64   :  { %3181 = vst [vmem:[%s5451_s9 + $0x20] sm:$0xff] %v2653_v49  ;;  %v2659_v46 = vpack.c.bf16 %v2653_v49, %v2653_v49 }
 0xd66   :  { %2693 = vmatmul.mubr.bf16.vlgmr.msra.gmra.mrb[84].mxu0 %v2659_v46  ;;  %2734 = vmatmul.mubr.bf16.vlgmr.msra.gmra.mrb[84].mxu1 %v2659_v46 }
 0xd67   :  { %2777 = vmatpush1.bf16.msra.mxu0 %v5191_v8  ;;  %2818 = vmatpush1.bf16.msra.mxu1 %v5197_v9 }
 0xd68   :  { %2778 = vmatprep.subr.bf16.mxu0 %v5203_v4  ;;  %2819 = vmatprep.subr.bf16.mxu1 %v5209_v29 }
 0xd69   :  { %2808 = vmatprep.mubr.bf16.mxu0 %v5482_v7  ;;  %2849 = vmatprep.mubr.bf16.mxu1 %v5482_v7 }
 0xd6b   :  { %2779 = vmatpush1.bf16.msra.mxu0 %v5217_v23  ;;  %2820 = vmatpush1.bf16.msra.mxu1 %v5223_v2 }
 0xd6c   :  { %2780 = vmatprep.subr.bf16.mxu0 %v5229_v61  ;;  %2821 = vmatprep.subr.bf16.mxu1 %v5235_v3 }
 0xd6f   :  { %2781 = vmatpush1.bf16.msra.mxu0 %v5241_v6  ;;  %2822 = vmatpush1.bf16.msra.mxu1 %v5247_v45 }
 0xd70   :  { %2782 = vmatprep.subr.bf16.mxu0 %v5253_v58  ;;  %2823 = vmatprep.subr.bf16.mxu1 %v5259_v14 }
 0xd73   :  { %2783 = vmatpush1.bf16.msra.mxu0 %v5265_v56  ;;  %2824 = vmatpush1.bf16.msra.mxu1 %v5271_v33 }
 0xd74   :  { %2784 = vmatprep.subr.bf16.mxu0 %v5277_v17  ;;  %2825 = vmatprep.subr.bf16.mxu1 %v5283_v47 }
 0xd77   :  { %2785 = vmatpush1.bf16.msra.mxu0 %v5289_v34  ;;  %2826 = vmatpush1.bf16.msra.mxu1 %v5295_v0 }
 0xd78   :  { %2786 = vmatprep.subr.bf16.mxu0 %v5301_v10  ;;  %2827 = vmatprep.subr.bf16.mxu1 %v5307_v11 }
 0xd7b   :  { %2787 = vmatpush1.bf16.msra.mxu0 %v5313_v18  ;;  %2828 = vmatpush1.bf16.msra.mxu1 %v5319_v20 }
 0xd7c   :  { %2788 = vmatprep.subr.bf16.mxu0 %v5325_v21  ;;  %2829 = vmatprep.subr.bf16.mxu1 %v5331_v22 }
 0xd7f   :  { %2789 = vmatpush1.bf16.msra.mxu0 %v5337_v24  ;;  %2830 = vmatpush1.bf16.msra.mxu1 %v5343_v25 }
 0xd80   :  { %2790 = vmatprep.subr.bf16.mxu0 %v5349_v37  ;;  %2831 = vmatprep.subr.bf16.mxu1 %v5355_v26 }
 0xd83   :  { %2791 = vmatpush1.bf16.msra.mxu0 %v5361_v39  ;;  %2832 = vmatpush1.bf16.msra.mxu1 %v5367_v27 }
 0xd84   :  { %2892 = vmatprep.subr.bf16.mxu0 %v5164_v54  ;;  %2933 = vmatprep.subr.bf16.mxu1 %v5170_v48 }
 0xe39   :  { %v2694_v44 = vpop.f32.mrb[84].mxu0  ;;  %v2735_v12 = vpop.f32.mrb[84].mxu1 }
 0xe3a   :  { %v2742_v13 = vadd.f32 %v2694_v44, %v1760_v28  ;;  %v2744_v35 = vadd.f32 %v2735_v12, %v1833_v30  ;;  %v2696_v36 = vpop.f32.mrb[85].mxu0  ;;  %v2737_v54 = vpop.f32.mrb[85].mxu1 }
 0xe3b   :  { %v2743_v50 = vadd.f32 %v2696_v36, %v1762_v31  ;;  %v2745_v48 = vadd.f32 %v2737_v54, %v1835_v32  ;;  %v2698_v51 = vpop.f32.mrb[86].mxu0  ;;  %v2739_v60 = vpop.f32.mrb[86].mxu1 }
 0xe3c   :  { %v3182_v52 = vmul.f32 -1.442695, %v2742_v13  ;;  %v2699_v5 = vpop.f32.mrb[87].mxu0  ;;  %v2740_v59 = vpop.f32.mrb[87].mxu1 }
 0xe3d   :  { %v3183_v63 = vmul.f32 -1.442695, %v2743_v50  ;;  %v3184_v57 = vmul.f32 -1.442695, %v2745_v48  ;;  %v5552_v59 = vld [vmem:[#allocation24_spill] sm:$0xff] }
 0xe3e   :  { %3563 = vpow2.f32 %v3182_v52  ;;  %v5551_v52 = vld [vmem:[#allocation23_spill] sm:$0xff] }
 0xe3f   :  { %3565 = vpow2.f32 %v3183_v63  ;;  %v1770_v5 = vadd.f32 %v5551_v52, %v4947_v15  ;;  %v1843_v63 = vadd.f32 %v5552_v59, %v4951_v53 }
 0xe40   :  { %3567 = vpow2.f32 %v3184_v57  ;;  %v5553_v57 = vld [vmem:[#allocation3_spill] sm:$0xff] }
 0xe41   :  { %3569 = vtanh.f32 %v2744_v35 }
 0xe48   :  { %v3564_v38 = vpop.eup %3563 }
 0xe49   :  { %v3566_v16 = vpop.eup %3565  ;;  %v2749_v19 = vadd.f32 1.0, %v3564_v38  ;;  %v1772_v38 = vadd.f32 %v5553_v57, %v4959_v55 }
 0xe4a   :  { %v2755_v49 = vadd.f32 1.0, %v3566_v16  ;;  %v3568_v46 = vpop.eup %3567  ;;  %v5554_v16 = vld [vmem:[#allocation25_spill] sm:$0xff] }
 0xe4b   :  { %3571 = vrcp.f32 %v2749_v19  ;;  %v3570_v40 = vpop.eup %3569  ;;  %v2762_v42 = vadd.f32 1.0, %v3568_v46  ;;  %v1845_v19 = vadd.f32 %v5554_v16, %v4963_v1 }
 0xe4c   :  { %3573 = vrcp.f32 %v2755_v49 }
 0xe4d   :  { %3575 = vrcp.f32 %v2762_v42 }
 0xe55   :  { %v3572_v28 = vpop.eup %3571 }
 0xe56   :  { %v3574_v41 = vpop.eup %3573  ;;  %v2766_v30 = vmul.f32 %v3572_v28, %v3570_v40 }
 0xe57   :  { %v2765_v31 = vmul.f32 %v3574_v41, %v5182_v62  ;;  %v3576_v32 = vpop.eup %3575 }
 0xe59   :  { %v5381_v43 = vadd.f32 %v2766_v30, %v2765_v31 }
 0xe5b   :  { %3577 = vtanh.f32 %v5381_v43 }
 0xe65   :  { %v3578_v44 = vpop.eup %3577 }
 0xe66   :  { %v2769_v12 = vmul.f32 %v3578_v44, %v3576_v32 }
 0xe68   :  { %3185 = vst [vmem:[%s5451_s9 + $0x28] sm:$0xff] %v2769_v12  ;;  %v2775_v13 = vpack.c.bf16 %v2769_v12, %v2769_v12 }
 0xe6a   :  { %2809 = vmatmul.mubr.bf16.vlgmr.msra.gmra.mrb[88].mxu0 %v2775_v13  ;;  %2850 = vmatmul.mubr.bf16.vlgmr.msra.gmra.mrb[88].mxu1 %v2775_v13 }
 0xe6b   :  { %2893 = vmatpush1.bf16.msra.mxu0 %v5191_v8  ;;  %2934 = vmatpush1.bf16.msra.mxu1 %v5197_v9  ;;  %v5548_v8 = vld [vmem:[#allocation20_spill] sm:$0xff] }
 0xe6c   :  { %2894 = vmatprep.subr.bf16.mxu0 %v5203_v4  ;;  %2935 = vmatprep.subr.bf16.mxu1 %v5209_v29  ;;  %v1839_v9 = vadd.f32 %v5548_v8, %v4951_v53  ;;  %v5549_v4 = vld [vmem:[#allocation21_spill] sm:$0xff] }
 0xe6d   :  { %2924 = vmatprep.mubr.bf16.mxu0 %v5482_v7  ;;  %2965 = vmatprep.mubr.bf16.mxu1 %v5482_v7  ;;  %v5547_v7 = vld [vmem:[#allocation19_spill] sm:$0xff]  ;;  %v1768_v29 = vadd.f32 %v5549_v4, %v4959_v55 }
 0xe6e   :  { %v1766_v62 = vadd.f32 %v5547_v7, %v4947_v15 }
 0xe6f   :  { %2895 = vmatpush1.bf16.msra.mxu0 %v5217_v23  ;;  %2936 = vmatpush1.bf16.msra.mxu1 %v5223_v2  ;;  %v5550_v23 = vld [vmem:[#allocation22_spill] sm:$0xff] }
 0xe70   :  { %2896 = vmatprep.subr.bf16.mxu0 %v5229_v61  ;;  %2937 = vmatprep.subr.bf16.mxu1 %v5235_v3  ;;  %v1841_v2 = vadd.f32 %v5550_v23, %v4963_v1 }
 0xe73   :  { %2897 = vmatpush1.bf16.msra.mxu0 %v5241_v6  ;;  %2938 = vmatpush1.bf16.msra.mxu1 %v5247_v45 }
 0xe74   :  { %2898 = vmatprep.subr.bf16.mxu0 %v5253_v58  ;;  %2939 = vmatprep.subr.bf16.mxu1 %v5259_v14 }
 0xe77   :  { %2899 = vmatpush1.bf16.msra.mxu0 %v5265_v56  ;;  %2940 = vmatpush1.bf16.msra.mxu1 %v5271_v33 }
 0xe78   :  { %2900 = vmatprep.subr.bf16.mxu0 %v5277_v17  ;;  %2941 = vmatprep.subr.bf16.mxu1 %v5283_v47 }
 0xe7b   :  { %2901 = vmatpush1.bf16.msra.mxu0 %v5289_v34  ;;  %2942 = vmatpush1.bf16.msra.mxu1 %v5295_v0 }
 0xe7c   :  { %2902 = vmatprep.subr.bf16.mxu0 %v5301_v10  ;;  %2943 = vmatprep.subr.bf16.mxu1 %v5307_v11 }
 0xe7f   :  { %2903 = vmatpush1.bf16.msra.mxu0 %v5313_v18  ;;  %2944 = vmatpush1.bf16.msra.mxu1 %v5319_v20 }
 0xe80   :  { %2904 = vmatprep.subr.bf16.mxu0 %v5325_v21  ;;  %2945 = vmatprep.subr.bf16.mxu1 %v5331_v22 }
 0xe83   :  { %2905 = vmatpush1.bf16.msra.mxu0 %v5337_v24  ;;  %2946 = vmatpush1.bf16.msra.mxu1 %v5343_v25 }
 0xe84   :  { %2906 = vmatprep.subr.bf16.mxu0 %v5349_v37  ;;  %2947 = vmatprep.subr.bf16.mxu1 %v5355_v26 }
 0xe87   :  { %2907 = vmatpush1.bf16.msra.mxu0 %v5361_v39  ;;  %2948 = vmatpush1.bf16.msra.mxu1 %v5367_v27 }
 0xf3d   :  { %v2810_v61 = vpop.f32.mrb[88].mxu0  ;;  %v2851_v3 = vpop.f32.mrb[88].mxu1 }
 0xf3e   :  { %v2858_v6 = vadd.f32 %v2810_v61, %v1766_v62  ;;  %v2860_v45 = vadd.f32 %v2851_v3, %v1839_v9  ;;  %v2812_v58 = vpop.f32.mrb[89].mxu0  ;;  %v2853_v14 = vpop.f32.mrb[89].mxu1 }
 0xf3f   :  { %v2859_v56 = vadd.f32 %v2812_v58, %v1768_v29  ;;  %v2861_v33 = vadd.f32 %v2853_v14, %v1841_v2  ;;  %v2814_v17 = vpop.f32.mrb[90].mxu0  ;;  %v2855_v47 = vpop.f32.mrb[90].mxu1 }
 0xf40   :  { %v3186_v34 = vmul.f32 -1.442695, %v2858_v6  ;;  %v2815_v0 = vpop.f32.mrb[91].mxu0  ;;  %v2856_v10 = vpop.f32.mrb[91].mxu1 }
 0xf41   :  { %v3187_v11 = vmul.f32 -1.442695, %v2859_v56  ;;  %v3188_v18 = vmul.f32 -1.442695, %v2861_v33 }
 0xf42   :  { %3579 = vpow2.f32 %v3186_v34 }
 0xf43   :  { %3581 = vpow2.f32 %v3187_v11 }
 0xf44   :  { %3583 = vpow2.f32 %v3188_v18 }
 0xf45   :  { %3585 = vtanh.f32 %v2860_v45 }
 0xf4c   :  { %v3580_v20 = vpop.eup %3579 }
 0xf4d   :  { %v3582_v21 = vpop.eup %3581  ;;  %v2865_v22 = vadd.f32 1.0, %v3580_v20 }
 0xf4e   :  { %v2871_v24 = vadd.f32 1.0, %v3582_v21  ;;  %v3584_v25 = vpop.eup %3583 }
 0xf4f   :  { %3587 = vrcp.f32 %v2865_v22  ;;  %v3586_v37 = vpop.eup %3585  ;;  %v2878_v35 = vadd.f32 1.0, %v3584_v25 }
 0xf50   :  { %3589 = vrcp.f32 %v2871_v24 }
 0xf51   :  { %3591 = vrcp.f32 %v2878_v35 }
 0xf59   :  { %v3588_v26 = vpop.eup %3587 }
 0xf5a   :  { %v3590_v39 = vpop.eup %3589  ;;  %v2882_v27 = vmul.f32 %v3588_v26, %v3586_v37 }
 0xf5b   :  { %v2881_v36 = vmul.f32 %v3590_v39, %v5381_v43  ;;  %v3592_v50 = vpop.eup %3591 }
 0xf5d   :  { %v2883_v54 = vadd.f32 %v2882_v27, %v2881_v36 }
 0xf5f   :  { %3593 = vtanh.f32 %v2883_v54 }
 0xf69   :  { %v3594_v48 = vpop.eup %3593 }
 0xf6a   :  { %v2885_v51 = vmul.f32 %v3594_v48, %v3592_v50 }
 0xf6c   :  { %3189 = vst [vmem:[%s5451_s9 + $0x30] sm:$0xff] %v2885_v51  ;;  %v2891_v60 = vpack.c.bf16 %v2885_v51, %v2885_v51 }
 0xf6e   :  { %2925 = vmatmul.mubr.bf16.vlgmr.msra.gmra.mrb[92].mxu0 %v2891_v60  ;;  %2966 = vmatmul.mubr.bf16.vlgmr.msra.gmra.mrb[92].mxu1 %v2891_v60 }
0x1041   :  { %v2926_v49 = vpop.f32.mrb[92].mxu0  ;;  %v2967_v46 = vpop.f32.mrb[92].mxu1 }
0x1042   :  { %v2974_v40 = vadd.f32 %v2926_v49, %v1770_v5  ;;  %v2976_v28 = vadd.f32 %v2967_v46, %v1843_v63  ;;  %v2928_v41 = vpop.f32.mrb[93].mxu0  ;;  %v2969_v30 = vpop.f32.mrb[93].mxu1 }
0x1043   :  { %v2975_v42 = vadd.f32 %v2928_v41, %v1772_v38  ;;  %v2977_v31 = vadd.f32 %v2969_v30, %v1845_v19  ;;  %v2930_v43 = vpop.f32.mrb[94].mxu0  ;;  %v2971_v32 = vpop.f32.mrb[94].mxu1 }
0x1044   :  { %v3190_v15 = vmul.f32 -1.442695, %v2974_v40  ;;  %v2931_v44 = vpop.f32.mrb[95].mxu0  ;;  %v2972_v12 = vpop.f32.mrb[95].mxu1 }
0x1045   :  { %v3191_v53 = vmul.f32 -1.442695, %v2975_v42  ;;  %v3192_v55 = vmul.f32 -1.442695, %v2977_v31 }
0x1046   :  { %3595 = vpow2.f32 %v3190_v15 }
0x1047   :  { %3597 = vpow2.f32 %v3191_v53 }
0x1048   :  { %3599 = vpow2.f32 %v3192_v55 }
0x1049   :  { %3601 = vtanh.f32 %v2976_v28 }
0x1050   :  { %v3596_v13 = vpop.eup %3595 }
0x1051   :  { %v3598_v7 = vpop.eup %3597  ;;  %v2981_v1 = vadd.f32 1.0, %v3596_v13 }
0x1052   :  { %v2987_v62 = vadd.f32 1.0, %v3598_v7  ;;  %v3600_v8 = vpop.eup %3599 }
0x1053   :  { %3603 = vrcp.f32 %v2981_v1  ;;  %v3602_v9 = vpop.eup %3601  ;;  %v2994_v2 = vadd.f32 1.0, %v3600_v8 }
0x1054   :  { %3605 = vrcp.f32 %v2987_v62 }
0x1055   :  { %3607 = vrcp.f32 %v2994_v2 }
0x105d   :  { %v3604_v4 = vpop.eup %3603 }
0x105e   :  { %v3606_v29 = vpop.eup %3605  ;;  %v2998_v23 = vmul.f32 %v3604_v4, %v3602_v9 }
0x105f   :  { %v2997_v61 = vmul.f32 %v3606_v29, %v2883_v54  ;;  %v3608_v6 = vpop.eup %3607 }
0x1061   :  { %v2999_v3 = vadd.f32 %v2998_v23, %v2997_v61 }
0x1063   :  { %3609 = vtanh.f32 %v2999_v3 }
0x106d   :  { %v3610_v45 = vpop.eup %3609 }
0x106e   :  { %v3001_v58 = vmul.f32 %v3610_v45, %v3608_v6 }
0x1070   :  { %3193 = vst [vmem:[%s5451_s9 + $0x38] sm:$0xff] %v3001_v58 }

</bundles_post_ra>
